<compile_context>
chip_gen: v5e
topology: v5e:2x2
jax: 0.10.0
libtpu: 0.0.40
codegen_flags: <defaults>
</compile_context>

<pallas_src>
import functools

import jax
import jax.numpy as jnp
from jax.experimental import pallas as pl
from jax.experimental.pallas import tpu as pltpu


def _basic_block_kernel(x_ref, w1_ref, t1_ref, w2_ref, t2_ref, o_ref, h_ref,
                        *, Ho, Wo, stride, conv_shortcut):
    # x_ref : (Bt, stride*stride, Hph, Wph, Cin)   polyphase, zero-padded NHWC input
    # w1_ref: (9*Cin, Cmid)          conv1 weight, im2col layout, BN1 scale folded in
    # t1_ref: (1, Cmid)              folded BN1 shift (f32)
    # w2_ref: (9*Cmid [+ Cin], Cout) conv2 weight (+ 1x1 shortcut rows), BN2 folded in
    # t2_ref: (1, Cout)              folded BN2 (+ shortcut BN) shift (f32)
    # o_ref : (Bt, Ho, Wo, Cout)     output block (f32)
    # h_ref : (Bt, Ho+2, Wo+2, Cmid) VMEM scratch: relu(bn1(conv1(x))) with zero halo
    Bt = x_ref.shape[0]
    c_mid = w1_ref.shape[-1]
    c_out = o_ref.shape[-1]
    M = Bt * Ho * Wo

    x = x_ref[...]

    # ---- conv1 (3x3, stride s) + BN1 + ReLU as a single im2col matmul ----
    taps = []
    for ky in range(3):
        ry, qy = ky % stride, ky // stride
        for kx in range(3):
            rx, qx = kx % stride, kx // stride
            phase = x[:, ry * stride + rx]                    # (Bt, Hph, Wph, Cin)
            taps.append(phase[:, qy:qy + Ho, qx:qx + Wo])     # (Bt, Ho, Wo, Cin)
    center_x = taps[4]          # x sampled at the conv-output grid (shortcut input)
    p1 = jnp.concatenate(taps, axis=-1).reshape(M, -1)        # (M, 9*Cin)
    h = jnp.dot(p1, w1_ref[...], preferred_element_type=jnp.float32)
    h = jnp.maximum(h + t1_ref[...], 0.0)                     # (M, Cmid), f32

    # ---- stash h in VMEM with a 1-px zero halo (only border stripes are zeroed) ----
    h_ref[:, 0:1, :, :] = jnp.zeros((Bt, 1, Wo + 2, c_mid), h_ref.dtype)
    h_ref[:, Ho + 1:Ho + 2, :, :] = jnp.zeros((Bt, 1, Wo + 2, c_mid), h_ref.dtype)
    h_ref[:, 1:Ho + 1, 0:1, :] = jnp.zeros((Bt, Ho, 1, c_mid), h_ref.dtype)
    h_ref[:, 1:Ho + 1, Wo + 1:Wo + 2, :] = jnp.zeros((Bt, Ho, 1, c_mid), h_ref.dtype)
    h_ref[:, 1:Ho + 1, 1:Wo + 1, :] = h.reshape(Bt, Ho, Wo, c_mid).astype(h_ref.dtype)

    # ---- conv2 (3x3, stride 1) + BN2 + shortcut + ReLU as one im2col matmul ----
    hp = h_ref[...]                                           # (Bt, Ho+2, Wo+2, Cmid)
    taps2 = []
    for ky in range(3):
        rows = hp[:, ky:ky + Ho]
        for kx in range(3):
            taps2.append(rows[:, :, kx:kx + Wo])              # (Bt, Ho, Wo, Cmid)
    if conv_shortcut:
        taps2.append(center_x)      # 1x1-conv shortcut folded into extra w2 rows
    p2 = jnp.concatenate(taps2, axis=-1).reshape(M, -1)
    acc = jnp.dot(p2, w2_ref[...], preferred_element_type=jnp.float32) + t2_ref[...]
    if not conv_shortcut:
        # identity residual (Cin == Cout, stride == 1)
        acc = acc + center_x.reshape(M, c_out).astype(jnp.float32)
    o_ref[...] = jnp.maximum(acc, 0.0).reshape(Bt, Ho, Wo, c_out).astype(o_ref.dtype)


def _fold_bn_into_conv(conv_w, bn, eps):
    """conv_w: (Cout, Cin, kh, kw) -> ((kh, kw, Cin, Cout) scaled weight, (Cout,) bias)."""
    gamma, beta, mean, var = bn
    s = gamma / jnp.sqrt(var + eps)
    w = jnp.transpose(conv_w, (2, 3, 1, 0)) * s[None, None, None, :]
    b = beta - mean * s
    return w, b


def basic_block_forward(x_nchw, params, *, stride=1, compute_dtype=jnp.bfloat16,
                        batch_tile=None, vmem_budget_bytes=20 * 1024 * 1024):
    """Fused BasicBlock forward (inference-mode BatchNorm)."""
    N, C_in, H, W = x_nchw.shape
    w1 = params["conv1_w"]
    w2 = params["conv2_w"]
    C_mid, C_out = w1.shape[0], w2.shape[0]
    has_sc = params.get("shortcut") is not None
    if not has_sc:
        assert stride == 1 and C_in == C_out, "identity shortcut needs stride=1, Cin==Cout"
    eps = 1e-3                                    # nn.BatchNorm2d(..., eps=0.001)

    Ho = (H - 1) // stride + 1
    Wo = (W - 1) // stride + 1
    halo = -(-2 // stride)                        # ceil(2 / stride)
    Hph, Wph = Ho + halo, Wo + halo
    Hp, Wp = stride * Hph, stride * Wph           # >= H + 2, W + 2

    # ---- fold BN into conv weights / biases; build im2col weight layouts ----
    w1f, t1 = _fold_bn_into_conv(w1, params["bn1"], eps)
    w1f = w1f.reshape(9 * C_in, C_mid).astype(compute_dtype)
    t1 = t1.reshape(1, C_mid).astype(jnp.float32)

    w2f, t2 = _fold_bn_into_conv(w2, params["bn2"], eps)
    w2f = w2f.reshape(9 * C_mid, C_out)
    if has_sc:
        wsc, bnsc = params["shortcut"]
        wscf, tsc = _fold_bn_into_conv(wsc, bnsc, eps)        # (1,1,Cin,Cout), (Cout,)
        w2f = jnp.concatenate([w2f, wscf.reshape(C_in, C_out)], axis=0)
        t2 = t2 + tsc
    w2f = w2f.astype(compute_dtype)
    t2 = t2.reshape(1, C_out).astype(jnp.float32)

    # ---- NCHW -> NHWC, zero pad, polyphase split (one wrapper-side XLA pass) ----
    x_nhwc = jnp.transpose(x_nchw, (0, 2, 3, 1))
    xpad = jnp.pad(x_nhwc, ((0, 0), (1, Hp - H - 1), (1, Wp - W - 1), (0, 0)))
    xph = xpad.reshape(N, Hph, stride, Wph, stride, C_in)
    xph = jnp.transpose(xph, (0, 2, 4, 1, 3, 5))
    xph = xph.reshape(N, stride * stride, Hph, Wph, C_in).astype(compute_dtype)

    # ---- pick batch tile against a per-step VMEM budget (keep >= 2 grid steps) ----
    cbytes = jnp.dtype(compute_dtype).itemsize
    per_img = (2 * stride * stride * Hph * Wph * C_in * cbytes       # x block (2x buf)
               + 2 * Ho * Wo * C_out * 4                             # out block (2x buf)
               + (Ho + 2) * (Wo + 2) * C_mid * cbytes                # halo scratch
               + Ho * Wo * (9 * C_in + 9 * C_mid + C_in) * cbytes    # im2col patches
               + Ho * Wo * (C_mid + 2 * C_out) * 4)                  # f32 intermediates
    if batch_tile is None:
        fit = [d for d in range(1, N + 1)
               if N % d == 0 and d * per_img <= vmem_budget_bytes] or [1]
        multi = [d for d in fit if N // d >= 2]
        batch_tile = max(multi) if multi else max(fit)
    Bt = batch_tile
    assert N % Bt == 0, "batch_tile must divide N"

    kern = functools.partial(_basic_block_kernel, Ho=Ho, Wo=Wo, stride=stride,
                             conv_shortcut=has_sc)
    out_nhwc = pl.pallas_call(
        kern,
        out_shape=jax.ShapeDtypeStruct((N, Ho, Wo, C_out), jnp.float32),
        grid_spec=pltpu.PrefetchScalarGridSpec(
            num_scalar_prefetch=0,
            grid=(N // Bt,),
            in_specs=[
                pl.BlockSpec((Bt, stride * stride, Hph, Wph, C_in),
                             lambda n: (n, 0, 0, 0, 0)),
                pl.BlockSpec(w1f.shape, lambda n: (0, 0)),
                pl.BlockSpec((1, C_mid), lambda n: (0, 0)),
                pl.BlockSpec(w2f.shape, lambda n: (0, 0)),
                pl.BlockSpec((1, C_out), lambda n: (0, 0)),
            ],
            out_specs=pl.BlockSpec((Bt, Ho, Wo, C_out), lambda n: (n, 0, 0, 0)),
            scratch_shapes=[pltpu.VMEM((Bt, Ho + 2, Wo + 2, C_mid), compute_dtype)],
        ),
        compiler_params=pltpu.CompilerParams(
            dimension_semantics=("parallel",),
            vmem_limit_bytes=48 * 1024 * 1024),
    )(xph, w1f, t1, w2f, t2)

    return jnp.transpose(out_nhwc, (0, 3, 1, 2))    # back to NCHW


# ------------------------- plain-JAX reference (f32) -------------------------

def _reference(x_nchw, params, *, stride=1):
    def conv(x, w, s, pad):
        return jax.lax.conv_general_dilated(
            x, w, window_strides=(s, s), padding=((pad, pad), (pad, pad)),
            dimension_numbers=("NCHW", "OIHW", "NCHW"))

    def bn(y, g, b, m, v, eps=1e-3):
        return ((y - m[None, :, None, None])
                / jnp.sqrt(v[None, :, None, None] + eps)
                * g[None, :, None, None] + b[None, :, None, None])

    x = x_nchw.astype(jnp.float32)
    out = jax.nn.relu(bn(conv(x, params["conv1_w"], stride, 1), *params["bn1"]))
    out = bn(conv(out, params["conv2_w"], 1, 1), *params["bn2"])
    if params.get("shortcut") is not None:
        wsc, bnsc = params["shortcut"]
        sc = bn(conv(x, wsc, stride, 0), *bnsc)
    else:
        sc = x
    return jax.nn.relu(out + sc)


# --------------------------------- test ---------------------------------

def _make_bn(key, c):
    k = jax.random.split(key, 4)
    gamma = 1.0 + 0.1 * jax.random.normal(k[0], (c,), jnp.float32)
    beta = 0.1 * jax.random.normal(k[1], (c,), jnp.float32)
    mean = 0.1 * jax.random.normal(k[2], (c,), jnp.float32)
    var = 1.0 + 0.1 * jax.random.uniform(k[3], (c,), jnp.float32)
    return (gamma, beta, mean, var)


def _make_params(key, c_in, planes, stride):
    k = jax.random.split(key, 6)
    p = dict(
        conv1_w=0.1 * jax.random.normal(k[0], (planes, c_in, 3, 3), jnp.float32),
        bn1=_make_bn(k[2], planes),
        conv2_w=0.1 * jax.random.normal(k[1], (planes, planes, 3, 3), jnp.float32),
        bn2=_make_bn(k[3], planes),
    )
    if stride != 1 or c_in != planes:
        wsc = 0.1 * jax.random.normal(k[4], (planes, c_in, 1, 1), jnp.float32)
        p["shortcut"] = (wsc, _make_bn(k[5], planes))
    else:
        p["shortcut"] = None
    return p


def _check(name, x, p, stride):
    ref = _reference(x, p, stride=stride)
    out32 = jax.block_until_ready(
        basic_block_forward(x, p, stride=stride, compute_dtype=jnp.float32))
    assert out32.shape == ref.shape, (name, out32.shape, ref.shape)
    err32 = float(jnp.max(jnp.abs(out32 - ref)))
    assert jnp.allclose(out32, ref, atol=1e-4, rtol=1e-4), f"{name} f32 max err {err32}"
    outbf = jax.block_until_ready(
        basic_block_forward(x, p, stride=stride, compute_dtype=jnp.bfloat16))
    errbf = float(jnp.max(jnp.abs(outbf - ref)))
    assert jnp.allclose(outbf, ref, atol=5e-2, rtol=5e-2), f"{name} bf16 max err {errbf}"


if __name__ == "__main__":
    key = jax.random.PRNGKey(0)
    kx1, kx2, kx3, kp1, kp2, kp3 = jax.random.split(key, 6)

    # Config A: in_planes=4, planes=8, stride=1 -> conv1x1+BN shortcut path.
    xA = jax.random.normal(kx1, (2, 4, 16, 16), jnp.float32)
    pA = _make_params(kp1, 4, 8, 1)
    _check("A(conv-shortcut,s1)", xA, pA, stride=1)

    # Config B: in_planes=planes=8, stride=1 -> identity shortcut path.
    xB = jax.random.normal(kx2, (2, 8, 16, 16), jnp.float32)
    pB = _make_params(kp2, 8, 8, 1)
    _check("B(identity,s1)", xB, pB, stride=1)

    # Config C: in_planes=4, planes=8, stride=2 -> strided conv + conv shortcut path.
    xC = jax.random.normal(kx3, (2, 4, 16, 16), jnp.float32)
    pC = _make_params(kp3, 4, 8, 2)
    _check("C(conv-shortcut,s2)", xC, pC, stride=2)

    print("KERNEL_OK")
</pallas_src>

<mosaic_0001>
module attributes {stable_mosaic.version = 11 : i64} {
  func.func @_basic_block_kernel(%arg0: i32, %arg1: memref<1x1x18x18x4xf32, #tpu.memory_space<vmem>>, %arg2: memref<36x8xf32, #tpu.memory_space<vmem>>, %arg3: memref<1x8xf32, #tpu.memory_space<vmem>>, %arg4: memref<76x8xf32, #tpu.memory_space<vmem>>, %arg5: memref<1x8xf32, #tpu.memory_space<vmem>>, %arg6: memref<1x16x16x8xf32, #tpu.memory_space<vmem>>, %arg7: memref<1x18x18x8xf32, #tpu.memory_space<vmem>>) attributes {dimension_semantics = [#tpu.dimension_semantics<parallel>], iteration_bounds = array<i64: 2>, scalar_prefetch = 0 : i64, scratch_operands = 1 : i64, tpu.core_type = #tpu.core_type<tc>, window_params = [{transform_indices = @transform_0, window_bounds = array<i64: 1, 1, 18, 18, 4>}, {pipeline_mode = #tpu.pipeline_mode<synchronous>, transform_indices = @transform_1, window_bounds = array<i64: 36, 8>}, {pipeline_mode = #tpu.pipeline_mode<synchronous>, transform_indices = @transform_2, window_bounds = array<i64: 1, 8>}, {pipeline_mode = #tpu.pipeline_mode<synchronous>, transform_indices = @transform_3, window_bounds = array<i64: 76, 8>}, {pipeline_mode = #tpu.pipeline_mode<synchronous>, transform_indices = @transform_4, window_bounds = array<i64: 1, 8>}, {transform_indices = @transform_5, window_bounds = array<i64: 1, 16, 16, 8>}]} {
    %c0 = arith.constant 0 : index
    %c0_0 = arith.constant 0 : index
    %c0_1 = arith.constant 0 : index
    %c0_2 = arith.constant 0 : index
    %c0_3 = arith.constant 0 : index
    %0 = vector.load %arg1[%c0, %c0_0, %c0_1, %c0_2, %c0_3] : memref<1x1x18x18x4xf32, #tpu.memory_space<vmem>>, vector<1x1x18x18x4xf32>
    %1 = vector.shape_cast %0 : vector<1x1x18x18x4xf32> to vector<1x18x18x4xf32>
    %2 = vector.extract_strided_slice %1 {offsets = [0, 0, 0, 0], sizes = [1, 16, 16, 4], strides = [1, 1, 1, 1]} : vector<1x18x18x4xf32> to vector<1x16x16x4xf32>
    %3 = vector.shape_cast %0 : vector<1x1x18x18x4xf32> to vector<1x18x18x4xf32>
    %4 = vector.extract_strided_slice %3 {offsets = [0, 0, 1, 0], sizes = [1, 16, 16, 4], strides = [1, 1, 1, 1]} : vector<1x18x18x4xf32> to vector<1x16x16x4xf32>
    %5 = vector.shape_cast %0 : vector<1x1x18x18x4xf32> to vector<1x18x18x4xf32>
    %6 = vector.extract_strided_slice %5 {offsets = [0, 0, 2, 0], sizes = [1, 16, 16, 4], strides = [1, 1, 1, 1]} : vector<1x18x18x4xf32> to vector<1x16x16x4xf32>
    %7 = vector.shape_cast %0 : vector<1x1x18x18x4xf32> to vector<1x18x18x4xf32>
    %8 = vector.extract_strided_slice %7 {offsets = [0, 1, 0, 0], sizes = [1, 16, 16, 4], strides = [1, 1, 1, 1]} : vector<1x18x18x4xf32> to vector<1x16x16x4xf32>
    %9 = vector.shape_cast %0 : vector<1x1x18x18x4xf32> to vector<1x18x18x4xf32>
    %10 = vector.extract_strided_slice %9 {offsets = [0, 1, 1, 0], sizes = [1, 16, 16, 4], strides = [1, 1, 1, 1]} : vector<1x18x18x4xf32> to vector<1x16x16x4xf32>
    %11 = vector.shape_cast %0 : vector<1x1x18x18x4xf32> to vector<1x18x18x4xf32>
    %12 = vector.extract_strided_slice %11 {offsets = [0, 1, 2, 0], sizes = [1, 16, 16, 4], strides = [1, 1, 1, 1]} : vector<1x18x18x4xf32> to vector<1x16x16x4xf32>
    %13 = vector.shape_cast %0 : vector<1x1x18x18x4xf32> to vector<1x18x18x4xf32>
    %14 = vector.extract_strided_slice %13 {offsets = [0, 2, 0, 0], sizes = [1, 16, 16, 4], strides = [1, 1, 1, 1]} : vector<1x18x18x4xf32> to vector<1x16x16x4xf32>
    %15 = vector.shape_cast %0 : vector<1x1x18x18x4xf32> to vector<1x18x18x4xf32>
    %16 = vector.extract_strided_slice %15 {offsets = [0, 2, 1, 0], sizes = [1, 16, 16, 4], strides = [1, 1, 1, 1]} : vector<1x18x18x4xf32> to vector<1x16x16x4xf32>
    %17 = vector.shape_cast %0 : vector<1x1x18x18x4xf32> to vector<1x18x18x4xf32>
    %18 = vector.extract_strided_slice %17 {offsets = [0, 2, 2, 0], sizes = [1, 16, 16, 4], strides = [1, 1, 1, 1]} : vector<1x18x18x4xf32> to vector<1x16x16x4xf32>
    %19 = tpu.concatenate %2, %4, %6, %8, %10, %12, %14, %16, %18 in 3 : vector<1x16x16x4xf32>, vector<1x16x16x4xf32>, vector<1x16x16x4xf32>, vector<1x16x16x4xf32>, vector<1x16x16x4xf32>, vector<1x16x16x4xf32>, vector<1x16x16x4xf32>, vector<1x16x16x4xf32>, vector<1x16x16x4xf32> -> vector<1x16x16x36xf32>
    %20 = vector.shape_cast %19 : vector<1x16x16x36xf32> to vector<256x36xf32>
    %c0_4 = arith.constant 0 : index
    %c0_5 = arith.constant 0 : index
    %21 = vector.load %arg2[%c0_4, %c0_5] : memref<36x8xf32, #tpu.memory_space<vmem>>, vector<36x8xf32>
    %cst = arith.constant dense<0.000000e+00> : vector<256x8xf32>
    %22 = tpu.matmul %20, %21, %cst {dimension_numbers = #tpu.dot_dimension_numbers<[1], [0], [0], [1], [0, 0, 1, 1], [], []>} : vector<256x36xf32>, vector<36x8xf32>, vector<256x8xf32> -> vector<256x8xf32>
    %c0_6 = arith.constant 0 : index
    %c0_7 = arith.constant 0 : index
    %23 = vector.load %arg3[%c0_6, %c0_7] : memref<1x8xf32, #tpu.memory_space<vmem>>, vector<1x8xf32>
    %24 = vector.broadcast %23 : vector<1x8xf32> to vector<256x8xf32>
    %25 = arith.addf %22, %24 : vector<256x8xf32>
    %cst_8 = arith.constant 0.000000e+00 : f32
    %26 = vector.broadcast %cst_8 : f32 to vector<256x8xf32>
    %27 = arith.maximumf %25, %26 : vector<256x8xf32>
    %cst_9 = arith.constant 0.000000e+00 : f32
    %28 = vector.broadcast %cst_9 : f32 to vector<1x1x18x8xf32>
    %c0_10 = arith.constant 0 : index
    %c0_11 = arith.constant 0 : index
    %c0_12 = arith.constant 0 : index
    %c0_13 = arith.constant 0 : index
    %29 = vector.load %arg7[%c0_10, %c0_11, %c0_12, %c0_13] : memref<1x18x18x8xf32, #tpu.memory_space<vmem>>, vector<1x1x18x8xf32>
    tpu.vector_store %arg7[%c0_10, %c0_11, %c0_12, %c0_13], %28 {strides = array<i32>} : memref<1x18x18x8xf32, #tpu.memory_space<vmem>>, vector<1x1x18x8xf32>,
    %cst_14 = arith.constant 0.000000e+00 : f32
    %30 = vector.broadcast %cst_14 : f32 to vector<1x1x18x8xf32>
    %c0_15 = arith.constant 0 : index
    %c17 = arith.constant 17 : index
    %c0_16 = arith.constant 0 : index
    %c0_17 = arith.constant 0 : index
    %31 = vector.load %arg7[%c0_15, %c17, %c0_16, %c0_17] : memref<1x18x18x8xf32, #tpu.memory_space<vmem>>, vector<1x1x18x8xf32>
    tpu.vector_store %arg7[%c0_15, %c17, %c0_16, %c0_17], %30 {strides = array<i32>} : memref<1x18x18x8xf32, #tpu.memory_space<vmem>>, vector<1x1x18x8xf32>,
    %cst_18 = arith.constant 0.000000e+00 : f32
    %32 = vector.broadcast %cst_18 : f32 to vector<1x16x1x8xf32>
    %c0_19 = arith.constant 0 : index
    %c1 = arith.constant 1 : index
    %c0_20 = arith.constant 0 : index
    %c0_21 = arith.constant 0 : index
    %33 = vector.load %arg7[%c0_19, %c1, %c0_20, %c0_21] : memref<1x18x18x8xf32, #tpu.memory_space<vmem>>, vector<1x16x1x8xf32>
    tpu.vector_store %arg7[%c0_19, %c1, %c0_20, %c0_21], %32 {strides = array<i32>} : memref<1x18x18x8xf32, #tpu.memory_space<vmem>>, vector<1x16x1x8xf32>,
    %cst_22 = arith.constant 0.000000e+00 : f32
    %34 = vector.broadcast %cst_22 : f32 to vector<1x16x1x8xf32>
    %c0_23 = arith.constant 0 : index
    %c1_24 = arith.constant 1 : index
    %c17_25 = arith.constant 17 : index
    %c0_26 = arith.constant 0 : index
    %35 = vector.load %arg7[%c0_23, %c1_24, %c17_25, %c0_26] : memref<1x18x18x8xf32, #tpu.memory_space<vmem>>, vector<1x16x1x8xf32>
    tpu.vector_store %arg7[%c0_23, %c1_24, %c17_25, %c0_26], %34 {strides = array<i32>} : memref<1x18x18x8xf32, #tpu.memory_space<vmem>>, vector<1x16x1x8xf32>,
    %36 = vector.shape_cast %27 : vector<256x8xf32> to vector<1x16x16x8xf32>
    %c0_27 = arith.constant 0 : index
    %c1_28 = arith.constant 1 : index
    %c1_29 = arith.constant 1 : index
    %c0_30 = arith.constant 0 : index
    %37 = vector.load %arg7[%c0_27, %c1_28, %c1_29, %c0_30] : memref<1x18x18x8xf32, #tpu.memory_space<vmem>>, vector<1x16x16x8xf32>
    tpu.vector_store %arg7[%c0_27, %c1_28, %c1_29, %c0_30], %36 {strides = array<i32>} : memref<1x18x18x8xf32, #tpu.memory_space<vmem>>, vector<1x16x16x8xf32>,
    %c0_31 = arith.constant 0 : index
    %c0_32 = arith.constant 0 : index
    %c0_33 = arith.constant 0 : index
    %c0_34 = arith.constant 0 : index
    %38 = vector.load %arg7[%c0_31, %c0_32, %c0_33, %c0_34] : memref<1x18x18x8xf32, #tpu.memory_space<vmem>>, vector<1x18x18x8xf32>
    %39 = vector.extract_strided_slice %38 {offsets = [0, 0, 0, 0], sizes = [1, 16, 18, 8], strides = [1, 1, 1, 1]} : vector<1x18x18x8xf32> to vector<1x16x18x8xf32>
    %40 = vector.extract_strided_slice %39 {offsets = [0, 0, 0, 0], sizes = [1, 16, 16, 8], strides = [1, 1, 1, 1]} : vector<1x16x18x8xf32> to vector<1x16x16x8xf32>
    %41 = vector.extract_strided_slice %39 {offsets = [0, 0, 1, 0], sizes = [1, 16, 16, 8], strides = [1, 1, 1, 1]} : vector<1x16x18x8xf32> to vector<1x16x16x8xf32>
    %42 = vector.extract_strided_slice %39 {offsets = [0, 0, 2, 0], sizes = [1, 16, 16, 8], strides = [1, 1, 1, 1]} : vector<1x16x18x8xf32> to vector<1x16x16x8xf32>
    %43 = vector.extract_strided_slice %38 {offsets = [0, 1, 0, 0], sizes = [1, 16, 18, 8], strides = [1, 1, 1, 1]} : vector<1x18x18x8xf32> to vector<1x16x18x8xf32>
    %44 = vector.extract_strided_slice %43 {offsets = [0, 0, 0, 0], sizes = [1, 16, 16, 8], strides = [1, 1, 1, 1]} : vector<1x16x18x8xf32> to vector<1x16x16x8xf32>
    %45 = vector.extract_strided_slice %43 {offsets = [0, 0, 1, 0], sizes = [1, 16, 16, 8], strides = [1, 1, 1, 1]} : vector<1x16x18x8xf32> to vector<1x16x16x8xf32>
    %46 = vector.extract_strided_slice %43 {offsets = [0, 0, 2, 0], sizes = [1, 16, 16, 8], strides = [1, 1, 1, 1]} : vector<1x16x18x8xf32> to vector<1x16x16x8xf32>
    %47 = vector.extract_strided_slice %38 {offsets = [0, 2, 0, 0], sizes = [1, 16, 18, 8], strides = [1, 1, 1, 1]} : vector<1x18x18x8xf32> to vector<1x16x18x8xf32>
    %48 = vector.extract_strided_slice %47 {offsets = [0, 0, 0, 0], sizes = [1, 16, 16, 8], strides = [1, 1, 1, 1]} : vector<1x16x18x8xf32> to vector<1x16x16x8xf32>
    %49 = vector.extract_strided_slice %47 {offsets = [0, 0, 1, 0], sizes = [1, 16, 16, 8], strides = [1, 1, 1, 1]} : vector<1x16x18x8xf32> to vector<1x16x16x8xf32>
    %50 = vector.extract_strided_slice %47 {offsets = [0, 0, 2, 0], sizes = [1, 16, 16, 8], strides = [1, 1, 1, 1]} : vector<1x16x18x8xf32> to vector<1x16x16x8xf32>
    %51 = tpu.concatenate %40, %41, %42, %44, %45, %46, %48, %49, %50, %10 in 3 : vector<1x16x16x8xf32>, vector<1x16x16x8xf32>, vector<1x16x16x8xf32>, vector<1x16x16x8xf32>, vector<1x16x16x8xf32>, vector<1x16x16x8xf32>, vector<1x16x16x8xf32>, vector<1x16x16x8xf32>, vector<1x16x16x8xf32>, vector<1x16x16x4xf32> -> vector<1x16x16x76xf32>
    %52 = vector.shape_cast %51 : vector<1x16x16x76xf32> to vector<256x76xf32>
    %c0_35 = arith.constant 0 : index
    %c0_36 = arith.constant 0 : index
    %53 = vector.load %arg4[%c0_35, %c0_36] : memref<76x8xf32, #tpu.memory_space<vmem>>, vector<76x8xf32>
    %cst_37 = arith.constant dense<0.000000e+00> : vector<256x8xf32>
    %54 = tpu.matmul %52, %53, %cst_37 {dimension_numbers = #tpu.dot_dimension_numbers<[1], [0], [0], [1], [0, 0, 1, 1], [], []>} : vector<256x76xf32>, vector<76x8xf32>, vector<256x8xf32> -> vector<256x8xf32>
    %c0_38 = arith.constant 0 : index
    %c0_39 = arith.constant 0 : index
    %55 = vector.load %arg5[%c0_38, %c0_39] : memref<1x8xf32, #tpu.memory_space<vmem>>, vector<1x8xf32>
    %56 = vector.broadcast %55 : vector<1x8xf32> to vector<256x8xf32>
    %57 = arith.addf %54, %56 : vector<256x8xf32>
    %cst_40 = arith.constant 0.000000e+00 : f32
    %58 = vector.broadcast %cst_40 : f32 to vector<256x8xf32>
    %59 = arith.maximumf %57, %58 : vector<256x8xf32>
    %60 = vector.shape_cast %59 : vector<256x8xf32> to vector<1x16x16x8xf32>
    %c0_41 = arith.constant 0 : index
    %c0_42 = arith.constant 0 : index
    %c0_43 = arith.constant 0 : index
    %c0_44 = arith.constant 0 : index
    %61 = vector.load %arg6[%c0_41, %c0_42, %c0_43, %c0_44] : memref<1x16x16x8xf32, #tpu.memory_space<vmem>>, vector<1x16x16x8xf32>
    tpu.vector_store %arg6[%c0_41, %c0_42, %c0_43, %c0_44], %60 {strides = array<i32>} : memref<1x16x16x8xf32, #tpu.memory_space<vmem>>, vector<1x16x16x8xf32>,
    return
  }
  func.func @transform_0(%arg0: i32) -> (i32, i32, i32, i32, i32) {
    %c0_i32 = arith.constant 0 : i32
    %c0_i32_0 = arith.constant 0 : i32
    %c0_i32_1 = arith.constant 0 : i32
    %c0_i32_2 = arith.constant 0 : i32
    %c0_i32_3 = arith.constant 0 : i32
    return %arg0, %c0_i32, %c0_i32_0, %c0_i32_1, %c0_i32_2 : i32, i32, i32, i32, i32
  }
  func.func @transform_1(%arg0: i32) -> (i32, i32) {
    %c0_i32 = arith.constant 0 : i32
    %c0_i32_0 = arith.constant 0 : i32
    %c0_i32_1 = arith.constant 0 : i32
    return %c0_i32, %c0_i32_0 : i32, i32
  }
  func.func @transform_2(%arg0: i32) -> (i32, i32) {
    %c0_i32 = arith.constant 0 : i32
    %c0_i32_0 = arith.constant 0 : i32
    %c0_i32_1 = arith.constant 0 : i32
    return %c0_i32, %c0_i32_0 : i32, i32
  }
  func.func @transform_3(%arg0: i32) -> (i32, i32) {
    %c0_i32 = arith.constant 0 : i32
    %c0_i32_0 = arith.constant 0 : i32
    %c0_i32_1 = arith.constant 0 : i32
    return %c0_i32, %c0_i32_0 : i32, i32
  }
  func.func @transform_4(%arg0: i32) -> (i32, i32) {
    %c0_i32 = arith.constant 0 : i32
    %c0_i32_0 = arith.constant 0 : i32
    %c0_i32_1 = arith.constant 0 : i32
    return %c0_i32, %c0_i32_0 : i32, i32
  }
  func.func @transform_5(%arg0: i32) -> (i32, i32, i32, i32) {
    %c0_i32 = arith.constant 0 : i32
    %c0_i32_0 = arith.constant 0 : i32
    %c0_i32_1 = arith.constant 0 : i32
    %c0_i32_2 = arith.constant 0 : i32
    return %arg0, %c0_i32, %c0_i32_0, %c0_i32_1 : i32, i32, i32, i32
  }
}

</mosaic_0001>

<bundles_post_ra>
// kernel: tpu_custom_call.1
= control target key start
LH: loop header
LB: loop body
LE: loop exit
PB: predicated region body
PF: predicated region fallthrough
CT: control target
= control target key end

     0   :  { %s3916_s18 = smov 0   ;;  %s8118_s0 = inlined_call_operand.vmem [shape: f32[2,1,18,18,4], index: 0, kind: input, shape index: {}]   ;;  %s8119_s1 = inlined_call_operand.vmem [shape: f32[36,8], index: 1, kind: input, shape index: {}]   ;;  %s8120_s2 = inlined_call_operand.vmem [shape: f32[1,8], index: 2, kind: input, shape index: {}]   ;;  %s8121_s3 = inlined_call_operand.vmem [shape: f32[76,8], index: 3, kind: input, shape index: {}]   ;;  %s8122_s4 = inlined_call_operand.vmem [shape: f32[1,8], index: 4, kind: input, shape index: {}]   ;;  %s8123_s5 = inlined_call_operand.vmem [shape: f32[2,16,16,8], index: 5, kind: output, shape index: {}]  }
   0x1 LB: > { %s3667_s19 = sadd.s32 4294967295, %s3870_s18   ;;  %p3671_p0 = scmp.ge.s32.totalorder %s3870_s18, 1  ;;  %s3870_s18 = sphi %s3916_s18, %s15_s18  }
   0x2   : > { %p187_p1 = scmp.lt.s32.totalorder %s3870_s18, 3 }
   0x4   : > { %p188_p2 = pnand %p3671_p0, %p187_p1 }
   0x6   : > { %191 = sbr.rel (%p188_p2) target bundleno = 1960 (0x7a8), region = 40 }
   0xb   : > { %p215_p3 = scmp.lt.s32.totalorder %s3667_s19, 1  ;;  %vm327_vm0 = vcmask 1046528   ;;  %s3872_s24 = smov 4   ;;  %vm504_vm1 = vcmask 1045504   ;;  %vm1653_vm2 = vcmask 1043456   ;;  %vm1283_vm3 = vcmask 31744  }
   0xc   : > { %s3873_s25 = smov 8   ;;  %s3874_s26 = smov 12   ;;  %vm1316_vm4 = vcmask 64512   ;;  %vm1349_vm5 = vcmask 97280   ;;  %vm1415_vm6 = vcmask 162816   ;;  %vm1382_vm7 = vcmask 130048  }
   0xd   : > { %s9176_s19 = smov (!%p215_p3, %s3667_s19), 1  ;;  %s3875_s27 = smov 16   ;;  %vm1448_vm8 = vcmask 195584   ;;  %vm1514_vm9 = vcmask 261120   ;;  %vm1481_vm10 = vcmask 228352   ;;  %vm1556_vm11 = vcmask 293888  }
   0xe   : > { %s3769_s20 = smul.u32 432, %s9176_s19  ;;  %s3876_s28 = smov 20   ;;  %vm1811_vm12 = vcmask 57344   ;;  %vm1804_vm13 = vcmask 58368   ;;  %vm3156_vm14 = vcmask 326656   ;;  %vm3189_vm15 = vcmask 392192  }
   0xf   : > { %s3877_s29 = smov 24   ;;  %s3878_s30 = smov 28  }
  0x10   : > { %s3930_s23 = scalar_lea.vmem %s8118_s0, %s3769_s20  ;;  %s3879_s6 = smov 32  }
  0x11   : > { %v3933_v0 = vld [vmem:[%s3930_s23 + $0x30] sm:$0xff]  ;;  %v3936_v1 = vld [vmem:[%s3930_s23 + $0x38] sm:$0xff]  ;;  %v3944_v5 = vld [vmem:[%s3930_s23 + $0x20] sm:$0xff]  ;;  %s3881_s21 = smov 40   ;;  %s3882_s22 = smov 48  }
  0x12   : > { %v3939_v2 = vld [vmem:[%s3930_s23 + $0x18] sm:$0xff]  ;;  %v338_v3 = vrot.slane %v3933_v0, 1  ;;  %v339_v4 = vrot.slane %v3936_v1, 1  ;;  %v3948_v7 = vld [vmem:[%s3930_s23] sm:$0xff]  ;;  %v3951_v8 = vld [vmem:[%s3930_s23 + $0x8] sm:$0xff]  ;;  %v334_v9 = vrot.slane %v3944_v5, 1 }
  0x13   : > { %v333_v6 = vrot.slane %v3939_v2, 1  ;;  %v328_v10 = vrot.slane %v3948_v7, 1  ;;  %v329_v11 = vrot.slane %v3951_v8, 1  ;;  %v3957_v12 = vld [vmem:[%s3930_s23 + $0x40] sm:$0x3]  ;;  %v3991_v25 = vld [vmem:[%s3930_s23 + $0x68] sm:$0xff] }
  0x14   : > { %v3960_v13 = vsel %vm327_vm0, %v338_v3, %v339_v4  ;;  %v3963_v14 = vld [vmem:[%s3930_s23 + $0x28] sm:$0x3]  ;;  %v3966_v15 = vld [vmem:[%s3930_s23 + $0x10] sm:$0x3]  ;;  %v341_v18 = vrot.slane %v3957_v12, 1  ;;  %v3988_v24 = vld [vmem:[%s3930_s23 + $0x60] sm:$0xff] }
  0x15   : > { %8306 = vst [vmem:[#allocation3_spill] sm:$0xff] %v3960_v13  ;;  %416 = vrot.lane.b32.xlu2 %v3960_v13, %s3872_s24  ;;  %v3971_v16 = vsel %vm327_vm0, %v333_v6, %v334_v9  ;;  %v330_v17 = vsel %vm327_vm0, %v328_v10, %v329_v11  ;;  %v336_v19 = vrot.slane %v3963_v14, 1  ;;  %v331_v20 = vrot.slane %v3966_v15, 1  ;;  %v3994_v26 = vld [vmem:[%s3930_s23 + $0x50] sm:$0xff]  ;;  %v3997_v27 = vld [vmem:[%s3930_s23 + $0x58] sm:$0x3] }
  0x16   : > { %8307 = vst [vmem:[#allocation4_spill] sm:$0xff] %v3971_v16  ;;  %412 = vrot.lane.b32.xlu1 %v3971_v16, %s3872_s24  ;;  %408 = vrot.lane.b32.xlu0 %v330_v17, %s3872_s24  ;;  %v3981_v21 = vsel %vm327_vm0, %v339_v4, %v341_v18  ;;  %v4000_v28 = vld [vmem:[%s3930_s23 + $0x48] sm:$0xff]  ;;  %v348_v29 = vrot.slane %v3988_v24, 1  ;;  %v349_v30 = vrot.slane %v3991_v25, 1  ;;  %v344_v31 = vrot.slane %v3994_v26, 1  ;;  %v4022_v37 = vld [vmem:[%s3930_s23 + $0x80] sm:$0xff] }
  0x17   : > { %8308 = vst [vmem:[#allocation5_spill] sm:$0xff] %v3981_v21  ;;  %v3984_v22 = vsel %vm327_vm0, %v334_v9, %v336_v19  ;;  %v332_v23 = vsel %vm327_vm0, %v329_v11, %v331_v20  ;;  %v346_v32 = vrot.slane %v3997_v27, 1  ;;  %v343_v33 = vrot.slane %v4000_v28, 1  ;;  %v4025_v38 = vld [vmem:[%s3930_s23 + $0x88] sm:$0x3]  ;;  %v4028_v39 = vld [vmem:[%s3930_s23 + $0x78] sm:$0xff] }
  0x18   : > { %8309 = vst [vmem:[#allocation6_spill] sm:$0xff] %v3984_v22  ;;  %v4013_v34 = vsel %vm327_vm0, %v348_v29, %v349_v30  ;;  %v4031_v40 = vld [vmem:[%s3930_s23 + $0x70] sm:$0x3]  ;;  %v354_v41 = vrot.slane %v4022_v37, 1  ;;  %v356_v42 = vrot.slane %v4025_v38, 1  ;;  %v353_v43 = vrot.slane %v4028_v39, 1 }
  0x19   : > { %8310 = vst [vmem:[#allocation7_spill] sm:$0xff] %v4013_v34  ;;  %v4016_v35 = vsel %vm327_vm0, %v344_v31, %v346_v32  ;;  %v4019_v36 = vsel %vm327_vm0, %v343_v33, %v344_v31  ;;  %v351_v44 = vrot.slane %v4031_v40, 1  ;;  %v4053_v48 = vld [vmem:[%s3930_s23 + $0xa8] sm:$0xff]  ;;  %v4056_v49 = vld [vmem:[%s3930_s23 + $0xb0] sm:$0xff]  ;;  %v4059_v50 = vld [vmem:[%s3930_s23 + $0x98] sm:$0xff] }
  0x1a   : > { %8311 = vst [vmem:[#allocation8_spill] sm:$0xff] %v4016_v35  ;;  %v4044_v45 = vsel %vm327_vm0, %v354_v41, %v356_v42  ;;  %v4047_v46 = vsel %vm327_vm0, %v353_v43, %v354_v41  ;;  %v4062_v51 = vld [vmem:[%s3930_s23 + $0xa0] sm:$0x3]  ;;  %v4065_v52 = vld [vmem:[%s3930_s23 + $0x90] sm:$0xff]  ;;  %v363_v53 = vrot.slane %v4053_v48, 1  ;;  %v364_v54 = vrot.slane %v4056_v49, 1 }
  0x1b   : > { %8312 = vst [vmem:[#allocation9_spill] sm:$0xff] %v4019_v36  ;;  %v4050_v47 = vsel %vm327_vm0, %v349_v30, %v351_v44  ;;  %v359_v55 = vrot.slane %v4059_v50, 1  ;;  %v361_v56 = vrot.slane %v4062_v51, 1  ;;  %v358_v57 = vrot.slane %v4065_v52, 1  ;;  %v4088_v61 = vld [vmem:[%s3930_s23 + $0xc8] sm:$0xff]  ;;  %v4094_v63 = vld [vmem:[%s3930_s23 + $0xc0] sm:$0xff] }
  0x1c   : > { %8313 = vst [vmem:[#allocation10_spill] sm:$0xff] %v4044_v45  ;;  %v4079_v58 = vsel %vm327_vm0, %v363_v53, %v364_v54  ;;  %v4091_v62 = vld [vmem:[%s3930_s23 + $0xd0] sm:$0x3]  ;;  %v4097_v3 = vld [vmem:[%s3930_s23 + $0xb8] sm:$0x3]  ;;  %v369_v4 = vrot.slane %v4088_v61, 1 }
  0x1d   : > { %418 = vrot.lane.b32.xlu2 %v3981_v21, %s3872_s24  ;;  %8314 = vst [vmem:[#allocation11_spill] sm:$0xff] %v4047_v46  ;;  %v4082_v59 = vsel %vm327_vm0, %v359_v55, %v361_v56  ;;  %v4085_v60 = vsel %vm327_vm0, %v358_v57, %v359_v55  ;;  %v371_v6 = vrot.slane %v4091_v62, 1  ;;  %v368_v9 = vrot.slane %v4094_v63, 1  ;;  %v4119_v19 = vld [vmem:[%s3930_s23 + $0xf0] sm:$0xff]  ;;  %v4122_v20 = vld [vmem:[%s3930_s23 + $0xf8] sm:$0xff]  ;;  %v4160_v56 = vld [vmem:[%s3930_s23 + $0x108] sm:$0xff] }
  0x1e   : > { %414 = vrot.lane.b32.xlu1 %v3984_v22, %s3872_s24  ;;  %410 = vrot.lane.b32.xlu0 %v332_v23, %s3872_s24  ;;  %8315 = vst [vmem:[#allocation12_spill] sm:$0xff] %v4050_v47  ;;  %v366_v10 = vrot.slane %v4097_v3, 1  ;;  %v4125_v23 = vld [vmem:[%s3930_s23 + $0xe0] sm:$0xff]  ;;  %v4128_v29 = vld [vmem:[%s3930_s23 + $0xe8] sm:$0x3]  ;;  %v378_v31 = vrot.slane %v4119_v19, 1 }
  0x1f   : > { %8316 = vst [vmem:[#allocation13_spill] sm:$0xff] %v4079_v58  ;;  %v4110_v11 = vsel %vm327_vm0, %v369_v4, %v371_v6  ;;  %v4113_v17 = vsel %vm327_vm0, %v368_v9, %v369_v4  ;;  %v4131_v30 = vld [vmem:[%s3930_s23 + $0xd8] sm:$0xff]  ;;  %v379_v32 = vrot.slane %v4122_v20, 1  ;;  %v374_v33 = vrot.slane %v4125_v23, 1  ;;  %v4163_v57 = vld [vmem:[%s3930_s23 + $0x100] sm:$0x3] }
  0x20   : > { %8317 = vst [vmem:[#allocation14_spill] sm:$0xff] %v4082_v59  ;;  %v4116_v18 = vsel %vm327_vm0, %v364_v54, %v366_v10  ;;  %v376_v41 = vrot.slane %v4128_v29, 1  ;;  %v373_v42 = vrot.slane %v4131_v30, 1  ;;  %v4154_v54 = vld [vmem:[%s3930_s23 + $0x110] sm:$0xff]  ;;  %v4157_v55 = vld [vmem:[%s3930_s23 + $0x118] sm:$0x3] }
  0x21   : > { %8318 = vst [vmem:[#allocation15_spill] sm:$0xff] %v4085_v60  ;;  %v4145_v43 = vsel %vm327_vm0, %v378_v31, %v379_v32  ;;  %v384_v4 = vrot.slane %v4154_v54, 1  ;;  %v386_v6 = vrot.slane %v4157_v55, 1  ;;  %v383_v9 = vrot.slane %v4160_v56, 1 }
  0x22   : > { %8319 = vst [vmem:[#allocation16_spill] sm:$0xff] %v4110_v11  ;;  %v4148_v44 = vsel %vm327_vm0, %v374_v33, %v376_v41  ;;  %v4151_v53 = vsel %vm327_vm0, %v373_v42, %v374_v33  ;;  %v381_v10 = vrot.slane %v4163_v57, 1  ;;  %v4185_v42 = vld [vmem:[%s3930_s23 + $0x138] sm:$0xff] }
  0x23   : > { %8320 = vst [vmem:[#allocation17_spill] sm:$0xff] %v4113_v17  ;;  %v4176_v31 = vsel %vm327_vm0, %v384_v4, %v386_v6  ;;  %v4179_v33 = vsel %vm327_vm0, %v383_v9, %v384_v4  ;;  %v4197_v6 = vld [vmem:[%s3930_s23 + $0x120] sm:$0xff] }
  0x24   : > { %8321 = vst [vmem:[#allocation18_spill] sm:$0xff] %v4116_v18  ;;  %v4182_v41 = vsel %vm327_vm0, %v379_v32, %v381_v10  ;;  %v393_v32 = vrot.slane %v4185_v42, 1 }
  0x25   : > { %424 = vrot.lane.b32.xlu2 %v4013_v34, %s3872_s24  ;;  %8322 = vst [vmem:[#allocation19_spill] sm:$0xff] %v4145_v43  ;;  %v4257_v34 = vld [vmem:[%s3930_s23 + $0x168] sm:$0xff] }
  0x26   : > { %422 = vrot.lane.b32.xlu1 %v4016_v35, %s3872_s24  ;;  %420 = vrot.lane.b32.xlu0 %v4019_v36, %s3872_s24  ;;  %8323 = vst [vmem:[#allocation20_spill] sm:$0xff] %v4148_v44 }
  0x27   : > { %8324 = vst [vmem:[#allocation21_spill] sm:$0xff] %v4151_v53 }
  0x28   : > { %8325 = vst [vmem:[#allocation22_spill] sm:$0xff] %v4176_v31 }
  0x29   : > { %8326 = vst [vmem:[#allocation23_spill] sm:$0xff] %v4179_v33 }
  0x2a   : > { %8327 = vst [vmem:[#allocation24_spill] sm:$0xff] %v4182_v41 }
  0x2d   : > { %430 = vrot.lane.b32.xlu2 %v4044_v45, %s3872_s24  ;;  %v4229_v45 = vld [vmem:[%s3930_s23 + $0x148] sm:$0x3] }
  0x2e   : > { %428 = vrot.lane.b32.xlu1 %v4047_v46, %s3872_s24  ;;  %426 = vrot.lane.b32.xlu0 %v4050_v47, %s3872_s24 }
  0x35   : > { %436 = vrot.lane.b32.xlu2 %v4079_v58, %s3872_s24 }
  0x36   : > { %434 = vrot.lane.b32.xlu1 %v4082_v59, %s3872_s24  ;;  %432 = vrot.lane.b32.xlu0 %v4085_v60, %s3872_s24 }
  0x3d   : > { %442 = vrot.lane.b32.xlu2 %v4110_v11, %s3872_s24  ;;  %v4191_v11 = vld [vmem:[%s3930_s23 + $0x128] sm:$0xff] }
  0x3e   : > { %440 = vrot.lane.b32.xlu1 %v4113_v17, %s3872_s24  ;;  %438 = vrot.lane.b32.xlu0 %v4116_v18, %s3872_s24  ;;  %v389_v9 = vrot.slane %v4191_v11, 1  ;;  %v4223_v18 = vld [vmem:[%s3930_s23 + $0x160] sm:$0x3]  ;;  %v4226_v17 = vld [vmem:[%s3930_s23 + $0x150] sm:$0xff] }
  0x45   : > { %448 = vrot.lane.b32.xlu2 %v4145_v43, %s3872_s24  ;;  %v4188_v43 = vld [vmem:[%s3930_s23 + $0x140] sm:$0xff] }
  0x46   : > { %446 = vrot.lane.b32.xlu1 %v4148_v44, %s3872_s24  ;;  %444 = vrot.lane.b32.xlu0 %v4151_v53, %s3872_s24  ;;  %v4194_v53 = vld [vmem:[%s3930_s23 + $0x130] sm:$0x3]  ;;  %v394_v4 = vrot.slane %v4188_v43, 1  ;;  %v388_v44 = vrot.slane %v4197_v6, 1 }
  0x47   : > { %v391_v10 = vrot.slane %v4194_v53, 1 }
  0x48   : > { %v4211_v58 = vsel %vm327_vm0, %v393_v32, %v394_v4  ;;  %v401_v32 = vrot.slane %v4223_v18, 1 }
  0x49   : > { %8328 = vst [vmem:[#allocation25_spill] sm:$0xff] %v4211_v58 }
  0x4d   : > { %454 = vrot.lane.b32.xlu2 %v4176_v31, %s3872_s24  ;;  %v4214_v31 = vsel %vm327_vm0, %v389_v9, %v391_v10  ;;  %v396_v10 = vrot.slane %v4229_v45, 1 }
  0x4e   : > { %452 = vrot.lane.b32.xlu1 %v4179_v33, %s3872_s24  ;;  %450 = vrot.lane.b32.xlu0 %v4182_v41, %s3872_s24  ;;  %8329 = vst [vmem:[#allocation26_spill] sm:$0xff] %v4214_v31  ;;  %v4217_v33 = vsel %vm327_vm0, %v388_v44, %v389_v9  ;;  %v4220_v41 = vld [vmem:[%s3930_s23 + $0x158] sm:$0xff]  ;;  %v398_v9 = vrot.slane %v4226_v17, 1 }
  0x4f   : > { %8330 = vst [vmem:[#allocation27_spill] sm:$0xff] %v4217_v33  ;;  %v399_v44 = vrot.slane %v4220_v41, 1 }
  0x51   : > { %v4242_v60 = vsel %vm327_vm0, %v399_v44, %v401_v32  ;;  %v4245_v59 = vsel %vm327_vm0, %v398_v9, %v399_v44  ;;  %v505_v44 = vrot.slane %v3948_v7, 2  ;;  %v511_v7 = vrot.slane %v3944_v5, 2 }
  0x52   : > { %8331 = vst [vmem:[#allocation28_spill] sm:$0xff] %v4242_v60 }
  0x53   : > { %8332 = vst [vmem:[#allocation29_spill] sm:$0xff] %v4245_v59 }
  0x55   : > { %460 = vrot.lane.b32.xlu2 %v4211_v58, %s3872_s24  ;;  %v4248_v58 = vsel %vm327_vm0, %v394_v4, %v396_v10  ;;  %v506_v4 = vrot.slane %v3951_v8, 2  ;;  %v403_v10 = vrot.slane %v4257_v34, 1  ;;  %v513_v8 = vrot.slane %v3963_v14, 2 }
  0x56   : > { %458 = vrot.lane.b32.xlu1 %v4214_v31, %s3872_s24  ;;  %456 = vrot.lane.b32.xlu0 %v4217_v33, %s3872_s24  ;;  %8333 = vst [vmem:[#allocation30_spill] sm:$0xff] %v4248_v58  ;;  %v4251_v31 = vld [vmem:[%s3930_s23 + $0x170] sm:$0xff]  ;;  %v4254_v33 = vld [vmem:[%s3930_s23 + $0x178] sm:$0x3]  ;;  %v520_v14 = vrot.slane %v4000_v28, 2 }
  0x57   : > { %v404_v32 = vrot.slane %v4251_v31, 1  ;;  %v406_v9 = vrot.slane %v4254_v33, 1  ;;  %v507_v47 = vsel %vm504_vm1, %v505_v44, %v506_v4  ;;  %v510_v44 = vrot.slane %v3939_v2, 2 }
  0x5d   : > { %466 = vrot.lane.b32.xlu2 %v4242_v60, %s3872_s24  ;;  %v4272_v60 = vsel %vm327_vm0, %v404_v32, %v406_v9  ;;  %v508_v9 = vrot.slane %v3966_v15, 2  ;;  %v521_v15 = vrot.slane %v3994_v26, 2 }
  0x5e   : > { %464 = vrot.lane.b32.xlu1 %v4245_v59, %s3872_s24  ;;  %462 = vrot.lane.b32.xlu0 %v4248_v58, %s3872_s24  ;;  %8334 = vst [vmem:[#allocation31_spill] sm:$0xff] %v4272_v60  ;;  %v4275_v59 = vsel %vm327_vm0, %v403_v10, %v404_v32  ;;  %v4287_v32 = vsel %vm504_vm1, %v511_v7, %v513_v8  ;;  %v516_v8 = vrot.slane %v3936_v1, 2 }
  0x5f   : > { %8335 = vst [vmem:[#allocation32_spill] sm:$0xff] %v4275_v59  ;;  %v4290_v10 = vsel %vm504_vm1, %v510_v44, %v511_v7  ;;  %v518_v7 = vrot.slane %v3957_v12, 2  ;;  %v4306_v44 = vsel %vm504_vm1, %v520_v14, %v521_v15  ;;  %v526_v12 = vrot.slane %v3991_v25, 2 }
  0x60   : > { %8336 = vst [vmem:[#allocation33_spill] sm:$0xff] %v4287_v32  ;;  %v528_v14 = vrot.slane %v4031_v40, 2  ;;  %v536_v40 = vrot.slane %v4059_v50, 2 }
  0x61   : > { %8338 = vst [vmem:[#allocation35_spill] sm:$0xff] %v4306_v44 }
  0x65   : > { %585 = vrot.lane.b32.xlu2 %v507_v47, %s3873_s25  ;;  %v509_v47 = vsel %vm504_vm1, %v506_v4, %v508_v9  ;;  %v515_v4 = vrot.slane %v3933_v0, 2  ;;  %v4309_v9 = vsel %vm504_vm1, %v516_v8, %v518_v7  ;;  %v525_v7 = vrot.slane %v3988_v24, 2 }
  0x66   : > { %470 = vrot.lane.b32.xlu1 %v4272_v60, %s3872_s24  ;;  %468 = vrot.lane.b32.xlu0 %v4275_v59, %s3872_s24  ;;  %8339 = vst [vmem:[#allocation36_spill] sm:$0xff] %v4309_v9  ;;  %s3884_s24 = smov 56  }
  0x6d   : > { %591 = vrot.lane.b32.xlu2 %v4287_v32, %s3873_s25 }
  0x6e   : > { %589 = vrot.lane.b32.xlu1 %v4290_v10, %s3873_s25  ;;  %587 = vrot.lane.b32.xlu0 %v509_v47, %s3873_s25  ;;  %v4312_v47 = vsel %vm504_vm1, %v515_v4, %v516_v8  ;;  %v523_v8 = vrot.slane %v3997_v27, 2  ;;  %v4327_v4 = vsel %vm504_vm1, %v526_v12, %v528_v14  ;;  %v535_v27 = vrot.slane %v4065_v52, 2 }
  0x6f   : > { %v4300_v59 = vpop.permute.xlu2 %416  ;;  %8341 = vst [vmem:[#allocation38_spill] sm:$0xff] %v4327_v4 }
  0x70   : > { %8337 = vst [vmem:[#allocation34_spill] sm:$0xff] %v4300_v59  ;;  %v4333_v32 = vsel %vm504_vm1, %v521_v15, %v523_v8  ;;  %v533_v15 = vrot.slane %v4025_v38, 2  ;;  %v4349_v8 = vsel %vm504_vm1, %v535_v27, %v536_v40  ;;  %v541_v38 = vrot.slane %v4056_v49, 2 }
  0x71   : > { %8343 = vst [vmem:[#allocation40_spill] sm:$0xff] %v4333_v32  ;;  %v543_v27 = vrot.slane %v4097_v3, 2  ;;  %v551_v3 = vrot.slane %v4125_v23, 2 }
  0x72   : > { %8345 = vst [vmem:[#allocation42_spill] sm:$0xff] %v4349_v8 }
  0x75   : > { %597 = vrot.lane.b32.xlu2 %v4306_v44, %s3873_s25  ;;  %v4330_v44 = vsel %vm504_vm1, %v525_v7, %v526_v12  ;;  %v531_v12 = vrot.slane %v4022_v37, 2  ;;  %v530_v7 = vrot.slane %v4028_v39, 2 }
  0x76   : > { %595 = vrot.lane.b32.xlu1 %v4309_v9, %s3873_s25  ;;  %593 = vrot.lane.b32.xlu0 %v4312_v47, %s3873_s25  ;;  %8342 = vst [vmem:[#allocation39_spill] sm:$0xff] %v4330_v44 }
  0x77   : > { %v4322_v59 = vpop.permute.xlu2 %418 }
  0x78   : > { %8340 = vst [vmem:[#allocation37_spill] sm:$0xff] %v4322_v59  ;;  %v4352_v59 = vsel %vm504_vm1, %v531_v12, %v533_v15  ;;  %v540_v15 = vrot.slane %v4053_v48, 2 }
  0x79   : > { %8346 = vst [vmem:[#allocation43_spill] sm:$0xff] %v4352_v59 }
  0x7d   : > { %603 = vrot.lane.b32.xlu2 %v4327_v4, %s3873_s25  ;;  %v4355_v4 = vsel %vm504_vm1, %v530_v7, %v531_v12  ;;  %v538_v12 = vrot.slane %v4062_v51, 2  ;;  %v550_v51 = vrot.slane %v4131_v30, 2 }
  0x7e   : > { %601 = vrot.lane.b32.xlu1 %v4330_v44, %s3873_s25  ;;  %599 = vrot.lane.b32.xlu0 %v4333_v32, %s3873_s25  ;;  %8347 = vst [vmem:[#allocation44_spill] sm:$0xff] %v4355_v4 }
  0x7f   : > { %v4343_v14 = vpop.permute.xlu2 %424 }
  0x80   : > { %8344 = vst [vmem:[#allocation41_spill] sm:$0xff] %v4343_v14 }
  0x85   : > { %609 = vrot.lane.b32.xlu2 %v4349_v8, %s3873_s25  ;;  %v4374_v8 = vsel %vm504_vm1, %v541_v38, %v543_v27 }
  0x86   : > { %607 = vrot.lane.b32.xlu1 %v4352_v59, %s3873_s25  ;;  %605 = vrot.lane.b32.xlu0 %v4355_v4, %s3873_s25  ;;  %8351 = vst [vmem:[#allocation48_spill] sm:$0xff] %v4374_v8  ;;  %v4377_v59 = vsel %vm504_vm1, %v540_v15, %v541_v38  ;;  %v4380_v4 = vsel %vm504_vm1, %v536_v40, %v538_v12  ;;  %v546_v38 = vrot.slane %v4088_v61, 2  ;;  %v548_v40 = vrot.slane %v4091_v62, 2 }
  0x87   : > { %v4365_v14 = vpop.permute.xlu2 %430  ;;  %8352 = vst [vmem:[#allocation49_spill] sm:$0xff] %v4377_v59  ;;  %v545_v15 = vrot.slane %v4094_v63, 2  ;;  %v556_v62 = vrot.slane %v4122_v20, 2 }
  0x88   : > { %8348 = vst [vmem:[#allocation45_spill] sm:$0xff] %v4365_v14  ;;  %v4369_v7 = vpop.permute.xlu1 %412  ;;  %v4371_v32 = vpop.permute.xlu0 %408 }
  0x89   : > { %8349 = vst [vmem:[#allocation46_spill] sm:$0xff] %v4369_v7  ;;  %v4400_v7 = vsel %vm504_vm1, %v550_v51, %v551_v3  ;;  %v558_v51 = vrot.slane %v4163_v57, 2  ;;  %v566_v57 = vrot.slane %v4191_v11, 2 }
  0x8a   : > { %8350 = vst [vmem:[#allocation47_spill] sm:$0xff] %v4371_v32  ;;  %v4403_v32 = vsel %vm504_vm1, %v546_v38, %v548_v40  ;;  %v555_v40 = vrot.slane %v4119_v19, 2 }
  0x8b   : > { %8356 = vst [vmem:[#allocation53_spill] sm:$0xff] %v4400_v7 }
  0x8c   : > { %8357 = vst [vmem:[#allocation54_spill] sm:$0xff] %v4403_v32 }
  0x8d   : > { %615 = vrot.lane.b32.xlu2 %v4374_v8, %s3873_s25  ;;  %v4406_v8 = vsel %vm504_vm1, %v545_v15, %v546_v38  ;;  %v553_v38 = vrot.slane %v4128_v29, 2  ;;  %v565_v29 = vrot.slane %v4197_v6, 2 }
  0x8e   : > { %613 = vrot.lane.b32.xlu1 %v4377_v59, %s3873_s25  ;;  %611 = vrot.lane.b32.xlu0 %v4380_v4, %s3873_s25  ;;  %8358 = vst [vmem:[#allocation55_spill] sm:$0xff] %v4406_v8 }
  0x8f   : > { %v4390_v27 = vpop.permute.xlu2 %436 }
  0x90   : > { %8353 = vst [vmem:[#allocation50_spill] sm:$0xff] %v4390_v27  ;;  %v4395_v12 = vpop.permute.xlu1 %414  ;;  %v4397_v14 = vpop.permute.xlu0 %410 }
  0x91   : > { %8354 = vst [vmem:[#allocation51_spill] sm:$0xff] %v4395_v12 }
  0x92   : > { %8355 = vst [vmem:[#allocation52_spill] sm:$0xff] %v4397_v14  ;;  %v4425_v14 = vsel %vm504_vm1, %v556_v62, %v558_v51 }
  0x93   : > { %8362 = vst [vmem:[#allocation59_spill] sm:$0xff] %v4425_v14 }
  0x95   : > { %621 = vrot.lane.b32.xlu2 %v4400_v7, %s3873_s25  ;;  %v4428_v7 = vsel %vm504_vm1, %v555_v40, %v556_v62  ;;  %v561_v62 = vrot.slane %v4154_v54, 2  ;;  %v560_v40 = vrot.slane %v4160_v56, 2 }
  0x96   : > { %619 = vrot.lane.b32.xlu1 %v4403_v32, %s3873_s25  ;;  %617 = vrot.lane.b32.xlu0 %v4406_v8, %s3873_s25  ;;  %8363 = vst [vmem:[#allocation60_spill] sm:$0xff] %v4428_v7  ;;  %v4431_v8 = vsel %vm504_vm1, %v551_v3, %v553_v38  ;;  %v563_v3 = vrot.slane %v4157_v55, 2  ;;  %v571_v55 = vrot.slane %v4188_v43, 2 }
  0x97   : > { %v4416_v27 = vpop.permute.xlu2 %442 }
  0x98   : > { %8359 = vst [vmem:[#allocation56_spill] sm:$0xff] %v4416_v27  ;;  %v4420_v15 = vpop.permute.xlu1 %422  ;;  %v4422_v12 = vpop.permute.xlu0 %420  ;;  %v4454_v27 = vsel %vm504_vm1, %v561_v62, %v563_v3  ;;  %v570_v3 = vrot.slane %v4185_v42, 2 }
  0x99   : > { %8360 = vst [vmem:[#allocation57_spill] sm:$0xff] %v4420_v15 }
  0x9a   : > { %8361 = vst [vmem:[#allocation58_spill] sm:$0xff] %v4422_v12  ;;  %v4451_v12 = vsel %vm504_vm1, %v565_v29, %v566_v57  ;;  %v573_v29 = vrot.slane %v4229_v45, 2  ;;  %v580_v45 = vrot.slane %v4257_v34, 2 }
  0x9b   : > { %8367 = vst [vmem:[#allocation64_spill] sm:$0xff] %v4451_v12 }
  0x9c   : > { %8368 = vst [vmem:[#allocation65_spill] sm:$0xff] %v4454_v27 }
  0x9d   : > { %627 = vrot.lane.b32.xlu2 %v4425_v14, %s3873_s25  ;;  %v4457_v14 = vsel %vm504_vm1, %v560_v40, %v561_v62  ;;  %v568_v62 = vrot.slane %v4194_v53, 2  ;;  %v581_v53 = vrot.slane %v4251_v31, 2 }
  0x9e   : > { %625 = vrot.lane.b32.xlu1 %v4428_v7, %s3873_s25  ;;  %623 = vrot.lane.b32.xlu0 %v4431_v8, %s3873_s25  ;;  %8369 = vst [vmem:[#allocation66_spill] sm:$0xff] %v4457_v14 }
  0x9f   : > { %v4441_v51 = vpop.permute.xlu2 %448 }
  0xa0   : > { %8364 = vst [vmem:[#allocation61_spill] sm:$0xff] %v4441_v51  ;;  %v4446_v38 = vpop.permute.xlu1 %428  ;;  %v4448_v15 = vpop.permute.xlu0 %426  ;;  %v4476_v51 = vsel %vm504_vm1, %v571_v55, %v573_v29 }
  0xa1   : > { %8365 = vst [vmem:[#allocation62_spill] sm:$0xff] %v4446_v38 }
  0xa2   : > { %8366 = vst [vmem:[#allocation63_spill] sm:$0xff] %v4448_v15 }
  0xa3   : > { %8373 = vst [vmem:[#allocation70_spill] sm:$0xff] %v4476_v51 }
  0xa5   : > { %633 = vrot.lane.b32.xlu2 %v4451_v12, %s3873_s25  ;;  %v4479_v12 = vsel %vm504_vm1, %v570_v3, %v571_v55  ;;  %v576_v55 = vrot.slane %v4220_v41, 2  ;;  %v575_v3 = vrot.slane %v4226_v17, 2 }
  0xa6   : > { %631 = vrot.lane.b32.xlu1 %v4454_v27, %s3873_s25  ;;  %629 = vrot.lane.b32.xlu0 %v4457_v14, %s3873_s25  ;;  %8374 = vst [vmem:[#allocation71_spill] sm:$0xff] %v4479_v12  ;;  %v4482_v14 = vsel %vm504_vm1, %v566_v57, %v568_v62  ;;  %v578_v57 = vrot.slane %v4223_v18, 2 }
  0xa7   : > { %v4467_v38 = vpop.permute.xlu2 %454 }
  0xa8   : > { %8370 = vst [vmem:[#allocation67_spill] sm:$0xff] %v4467_v38  ;;  %v4471_v40 = vpop.permute.xlu1 %434  ;;  %v4473_v15 = vpop.permute.xlu0 %432  ;;  %v4505_v38 = vsel %vm504_vm1, %v576_v55, %v578_v57 }
  0xa9   : > { %8371 = vst [vmem:[#allocation68_spill] sm:$0xff] %v4471_v40 }
  0xaa   : > { %8372 = vst [vmem:[#allocation69_spill] sm:$0xff] %v4473_v15  ;;  %v4502_v15 = vsel %vm504_vm1, %v580_v45, %v581_v53  ;;  %v583_v45 = vrot.slane %v4254_v33, 2 }
  0xab   : > { %8378 = vst [vmem:[#allocation75_spill] sm:$0xff] %v4505_v38 }
  0xad   : > { %639 = vrot.lane.b32.xlu2 %v4476_v51, %s3873_s25  ;;  %v4508_v51 = vsel %vm504_vm1, %v575_v3, %v576_v55  ;;  %v4524_v55 = vsel %vm504_vm1, %v581_v53, %v583_v45 }
  0xae   : > { %637 = vrot.lane.b32.xlu1 %v4479_v12, %s3873_s25  ;;  %635 = vrot.lane.b32.xlu0 %v4482_v14, %s3873_s25 }
  0xaf   : > { %v4492_v29 = vpop.permute.xlu2 %460 }
  0xb0   : > { %8375 = vst [vmem:[#allocation72_spill] sm:$0xff] %v4492_v29  ;;  %v4497_v62 = vpop.permute.xlu1 %440  ;;  %v4499_v40 = vpop.permute.xlu0 %438 }
  0xb1   : > { %8376 = vst [vmem:[#allocation73_spill] sm:$0xff] %v4497_v62 }
  0xb2   : > { %8377 = vst [vmem:[#allocation74_spill] sm:$0xff] %v4499_v40 }
  0xb5   : > { %645 = vrot.lane.b32.xlu2 %v4502_v15, %s3873_s25 }
  0xb6   : > { %643 = vrot.lane.b32.xlu1 %v4505_v38, %s3873_s25  ;;  %641 = vrot.lane.b32.xlu0 %v4508_v51, %s3873_s25 }
  0xb7   : > { %v4516_v18 = vpop.permute.xlu2 %466 }
  0xb8   : > { %8379 = vst [vmem:[#allocation76_spill] sm:$0xff] %v4516_v18  ;;  %v4519_v62 = vpop.permute.xlu1 %446  ;;  %v4521_v57 = vpop.permute.xlu0 %444 }
  0xb9   : > { %8380 = vst [vmem:[#allocation77_spill] sm:$0xff] %v4519_v62 }
  0xba   : > { %8381 = vst [vmem:[#allocation78_spill] sm:$0xff] %v4521_v57 }
  0xbd   : > { %685 = vrot.lane.b32.xlu2 %v3944_v5, %s3874_s26 }
  0xbe   : > { %683 = vrot.lane.b32.xlu1 %v3939_v2, %s3874_s26  ;;  %647 = vrot.lane.b32.xlu0 %v4524_v55, %s3873_s25 }
  0xbf   : > { %v4532_v3 = vpop.permute.xlu2 %585 }
  0xc0   : > { %8382 = vst [vmem:[#allocation79_spill] sm:$0xff] %v4532_v3  ;;  %v4534_v33 = vpop.permute.xlu1 %452  ;;  %v4536_v18 = vpop.permute.xlu0 %450 }
  0xc1   : > { %8383 = vst [vmem:[#allocation80_spill] sm:$0xff] %v4534_v33 }
  0xc2   : > { %8384 = vst [vmem:[#allocation81_spill] sm:$0xff] %v4536_v18 }
  0xc5   : > { %691 = vrot.lane.b32.xlu2 %v4000_v28, %s3874_s26 }
  0xc6   : > { %689 = vrot.lane.b32.xlu1 %v3936_v1, %s3874_s26  ;;  %687 = vrot.lane.b32.xlu0 %v3933_v0, %s3874_s26 }
  0xc7   : > { %v4544_v5 = vpop.permute.xlu2 %591 }
  0xc8   : > { %8385 = vst [vmem:[#allocation82_spill] sm:$0xff] %v4544_v5  ;;  %v4546_v2 = vpop.permute.xlu1 %458  ;;  %v4548_v53 = vpop.permute.xlu0 %456 }
  0xc9   : > { %8386 = vst [vmem:[#allocation83_spill] sm:$0xff] %v4546_v2 }
  0xca   : > { %8387 = vst [vmem:[#allocation84_spill] sm:$0xff] %v4548_v53 }
  0xcd   : > { %697 = vrot.lane.b32.xlu2 %v3991_v25, %s3874_s26 }
  0xce   : > { %695 = vrot.lane.b32.xlu1 %v3988_v24, %s3874_s26  ;;  %693 = vrot.lane.b32.xlu0 %v3994_v26, %s3874_s26 }
  0xcf   : > { %v4556_v45 = vpop.permute.xlu2 %597 }
  0xd0   : > { %8388 = vst [vmem:[#allocation85_spill] sm:$0xff] %v4556_v45  ;;  %v4558_v40 = vpop.permute.xlu1 %464  ;;  %v4560_v29 = vpop.permute.xlu0 %462 }
  0xd1   : > { %8389 = vst [vmem:[#allocation86_spill] sm:$0xff] %v4558_v40 }
  0xd2   : > { %8390 = vst [vmem:[#allocation87_spill] sm:$0xff] %v4560_v29 }
  0xd5   : > { %703 = vrot.lane.b32.xlu2 %v4065_v52, %s3874_s26 }
  0xd6   : > { %701 = vrot.lane.b32.xlu1 %v4022_v37, %s3874_s26  ;;  %699 = vrot.lane.b32.xlu0 %v4028_v39, %s3874_s26 }
  0xd7   : > { %v4568_v2 = vpop.permute.xlu2 %603 }
  0xd8   : > { %8391 = vst [vmem:[#allocation88_spill] sm:$0xff] %v4568_v2  ;;  %v4570_v53 = vpop.permute.xlu1 %470  ;;  %v4572_v33 = vpop.permute.xlu0 %468 }
  0xd9   : > { %8392 = vst [vmem:[#allocation89_spill] sm:$0xff] %v4570_v53 }
  0xda   : > { %8393 = vst [vmem:[#allocation90_spill] sm:$0xff] %v4572_v33 }
  0xdd   : > { %709 = vrot.lane.b32.xlu2 %v4056_v49, %s3874_s26 }
  0xde   : > { %707 = vrot.lane.b32.xlu1 %v4053_v48, %s3874_s26  ;;  %705 = vrot.lane.b32.xlu0 %v4059_v50, %s3874_s26 }
  0xdf   : > { %v4580_v40 = vpop.permute.xlu2 %609 }
  0xe0   : > { %8394 = vst [vmem:[#allocation91_spill] sm:$0xff] %v4580_v40  ;;  %v4582_v29 = vpop.permute.xlu1 %589  ;;  %v4584_v18 = vpop.permute.xlu0 %587 }
  0xe1   : > { %8395 = vst [vmem:[#allocation92_spill] sm:$0xff] %v4582_v29 }
  0xe2   : > { %8396 = vst [vmem:[#allocation93_spill] sm:$0xff] %v4584_v18 }
  0xe5   : > { %715 = vrot.lane.b32.xlu2 %v4131_v30, %s3874_s26 }
  0xe6   : > { %713 = vrot.lane.b32.xlu1 %v4088_v61, %s3874_s26  ;;  %711 = vrot.lane.b32.xlu0 %v4094_v63, %s3874_s26 }
  0xe7   : > { %v4592_v53 = vpop.permute.xlu2 %615 }
  0xe8   : > { %8397 = vst [vmem:[#allocation94_spill] sm:$0xff] %v4592_v53  ;;  %v4594_v33 = vpop.permute.xlu1 %595  ;;  %v4596_v2 = vpop.permute.xlu0 %593 }
  0xe9   : > { %8398 = vst [vmem:[#allocation95_spill] sm:$0xff] %v4594_v33 }
  0xea   : > { %8399 = vst [vmem:[#allocation96_spill] sm:$0xff] %v4596_v2 }
  0xed   : > { %721 = vrot.lane.b32.xlu2 %v4122_v20, %s3874_s26 }
  0xee   : > { %719 = vrot.lane.b32.xlu1 %v4119_v19, %s3874_s26  ;;  %717 = vrot.lane.b32.xlu0 %v4125_v23, %s3874_s26 }
  0xef   : > { %v4604_v40 = vpop.permute.xlu2 %621 }
  0xf0   : > { %8400 = vst [vmem:[#allocation97_spill] sm:$0xff] %v4604_v40  ;;  %v4606_v62 = vpop.permute.xlu1 %601  ;;  %v4608_v57 = vpop.permute.xlu0 %599 }
  0xf1   : > { %8401 = vst [vmem:[#allocation98_spill] sm:$0xff] %v4606_v62 }
  0xf2   : > { %8402 = vst [vmem:[#allocation99_spill] sm:$0xff] %v4608_v57 }
  0xf5   : > { %727 = vrot.lane.b32.xlu2 %v4197_v6, %s3874_s26 }
  0xf6   : > { %725 = vrot.lane.b32.xlu1 %v4154_v54, %s3874_s26  ;;  %723 = vrot.lane.b32.xlu0 %v4160_v56, %s3874_s26 }
  0xf7   : > { %v4616_v53 = vpop.permute.xlu2 %627 }
  0xf8   : > { %8403 = vst [vmem:[#allocation100_spill] sm:$0xff] %v4616_v53  ;;  %v4618_v45 = vpop.permute.xlu1 %607  ;;  %v4620_v40 = vpop.permute.xlu0 %605 }
  0xf9   : > { %8404 = vst [vmem:[#allocation101_spill] sm:$0xff] %v4618_v45 }
  0xfa   : > { %8405 = vst [vmem:[#allocation102_spill] sm:$0xff] %v4620_v40 }
  0xfd   : > { %733 = vrot.lane.b32.xlu2 %v4188_v43, %s3874_s26 }
  0xfe   : > { %731 = vrot.lane.b32.xlu1 %v4185_v42, %s3874_s26  ;;  %729 = vrot.lane.b32.xlu0 %v4191_v11, %s3874_s26 }
  0xff   : > { %v4628_v62 = vpop.permute.xlu2 %633 }
 0x100   : > { %8406 = vst [vmem:[#allocation103_spill] sm:$0xff] %v4628_v62  ;;  %v4630_v57 = vpop.permute.xlu1 %613  ;;  %v4632_v33 = vpop.permute.xlu0 %611  ;;  %v4647_v62 = vld [vmem:[%s3930_s23 + $0x188] sm:$0xff] }
 0x101   : > { %8407 = vst [vmem:[#allocation104_spill] sm:$0xff] %v4630_v57  ;;  %v4650_v57 = vld [vmem:[%s3930_s23 + $0x180] sm:$0xff] }
 0x102   : > { %8408 = vst [vmem:[#allocation105_spill] sm:$0xff] %v4632_v33 }
 0x105   : > { %739 = vrot.lane.b32.xlu2 %v4257_v34, %s3874_s26 }
 0x106   : > { %737 = vrot.lane.b32.xlu1 %v4220_v41, %s3874_s26  ;;  %735 = vrot.lane.b32.xlu0 %v4226_v17, %s3874_s26 }
 0x107   : > { %v4640_v45 = vpop.permute.xlu2 %639 }
 0x108   : > { %8409 = vst [vmem:[#allocation106_spill] sm:$0xff] %v4640_v45  ;;  %v4642_v40 = vpop.permute.xlu1 %619  ;;  %v4644_v53 = vpop.permute.xlu0 %617 }
 0x109   : > { %8410 = vst [vmem:[#allocation107_spill] sm:$0xff] %v4642_v40 }
 0x10a   : > { %8411 = vst [vmem:[#allocation108_spill] sm:$0xff] %v4644_v53 }
 0x10d   : > { %745 = vrot.lane.b32.xlu2 %v4647_v62, %s3874_s26 }
 0x10e   : > { %743 = vrot.lane.b32.xlu1 %v4650_v57, %s3874_s26  ;;  %741 = vrot.lane.b32.xlu0 %v4251_v31, %s3874_s26 }
 0x10f   : > { %v4658_v33 = vpop.permute.xlu2 %645 }
 0x110   : > { %8412 = vst [vmem:[#allocation109_spill] sm:$0xff] %v4658_v33  ;;  %v4660_v45 = vpop.permute.xlu1 %625  ;;  %v4662_v40 = vpop.permute.xlu0 %623 }
 0x111   : > { %8413 = vst [vmem:[#allocation110_spill] sm:$0xff] %v4660_v45 }
 0x112   : > { %8414 = vst [vmem:[#allocation111_spill] sm:$0xff] %v4662_v40 }
 0x115   : > { %789 = vrot.lane.b32.xlu2 %v3960_v13, %s3875_s27 }
 0x116   : > { %787 = vrot.lane.b32.xlu1 %v3984_v22, %s3875_s27  ;;  %785 = vrot.lane.b32.xlu0 %v3971_v16, %s3875_s27 }
 0x117   : > { %v4670_v53 = vpop.permute.xlu2 %685 }
 0x118   : > { %8415 = vst [vmem:[#allocation112_spill] sm:$0xff] %v4670_v53  ;;  %v4672_v2 = vpop.permute.xlu1 %631  ;;  %v4674_v5 = vpop.permute.xlu0 %629 }
 0x119   : > { %8416 = vst [vmem:[#allocation113_spill] sm:$0xff] %v4672_v2  ;;  %v8421_v2 = vld [vmem:[#allocation12_spill] sm:$0xff] }
 0x11a   : > { %8417 = vst [vmem:[#allocation114_spill] sm:$0xff] %v4674_v5  ;;  %v8422_v5 = vld [vmem:[#allocation7_spill] sm:$0xff] }
 0x11d   : > { %795 = vrot.lane.b32.xlu2 %v4016_v35, %s3875_s27 }
 0x11e   : > { %793 = vrot.lane.b32.xlu1 %v4019_v36, %s3875_s27  ;;  %791 = vrot.lane.b32.xlu0 %v3981_v21, %s3875_s27 }
 0x11f   : > { %v4682_v33 = vpop.permute.xlu2 %691 }
 0x120   : > { %8418 = vst [vmem:[#allocation115_spill] sm:$0xff] %v4682_v33  ;;  %v4684_v22 = vpop.permute.xlu1 %637  ;;  %v4686_v16 = vpop.permute.xlu0 %635  ;;  %v8426_v33 = vld [vmem:[#allocation14_spill] sm:$0xff] }
 0x121   : > { %8419 = vst [vmem:[#allocation116_spill] sm:$0xff] %v4684_v22  ;;  %v8427_v22 = vld [vmem:[#allocation15_spill] sm:$0xff] }
 0x122   : > { %8420 = vst [vmem:[#allocation117_spill] sm:$0xff] %v4686_v16  ;;  %v8428_v16 = vld [vmem:[#allocation10_spill] sm:$0xff] }
 0x125   : > { %801 = vrot.lane.b32.xlu2 %v4047_v46, %s3875_s27 }
 0x126   : > { %799 = vrot.lane.b32.xlu1 %v8421_v2, %s3875_s27  ;;  %797 = vrot.lane.b32.xlu0 %v8422_v5, %s3875_s27 }
 0x127   : > { %v4694_v45 = vpop.permute.xlu2 %697 }
 0x128   : > { %8423 = vst [vmem:[#allocation118_spill] sm:$0xff] %v4694_v45  ;;  %v4696_v40 = vpop.permute.xlu1 %643  ;;  %v4698_v29 = vpop.permute.xlu0 %641  ;;  %v8432_v45 = vld [vmem:[#allocation17_spill] sm:$0xff] }
 0x129   : > { %8424 = vst [vmem:[#allocation119_spill] sm:$0xff] %v4696_v40  ;;  %v8433_v40 = vld [vmem:[#allocation18_spill] sm:$0xff] }
 0x12a   : > { %8425 = vst [vmem:[#allocation120_spill] sm:$0xff] %v4698_v29  ;;  %v8434_v29 = vld [vmem:[#allocation13_spill] sm:$0xff] }
 0x12d   : > { %807 = vrot.lane.b32.xlu2 %v8426_v33, %s3875_s27 }
 0x12e   : > { %805 = vrot.lane.b32.xlu1 %v8427_v22, %s3875_s27  ;;  %803 = vrot.lane.b32.xlu0 %v8428_v16, %s3875_s27 }
 0x12f   : > { %v4706_v53 = vpop.permute.xlu2 %703 }
 0x130   : > { %8429 = vst [vmem:[#allocation121_spill] sm:$0xff] %v4706_v53  ;;  %v4708_v18 = vpop.permute.xlu1 %683  ;;  %v4710_v3 = vpop.permute.xlu0 %647  ;;  %v8438_v53 = vld [vmem:[#allocation20_spill] sm:$0xff] }
 0x131   : > { %8430 = vst [vmem:[#allocation122_spill] sm:$0xff] %v4708_v18  ;;  %v8440_v18 = vld [vmem:[#allocation16_spill] sm:$0xff] }
 0x132   : > { %8431 = vst [vmem:[#allocation123_spill] sm:$0xff] %v4710_v3  ;;  %v8439_v3 = vld [vmem:[#allocation21_spill] sm:$0xff] }
 0x135   : > { %813 = vrot.lane.b32.xlu2 %v8432_v45, %s3875_s27 }
 0x136   : > { %811 = vrot.lane.b32.xlu1 %v8433_v40, %s3875_s27  ;;  %809 = vrot.lane.b32.xlu0 %v8434_v29, %s3875_s27 }
 0x137   : > { %v4718_v33 = vpop.permute.xlu2 %709 }
 0x138   : > { %8435 = vst [vmem:[#allocation124_spill] sm:$0xff] %v4718_v33  ;;  %v4720_v46 = vpop.permute.xlu1 %689  ;;  %v4722_v16 = vpop.permute.xlu0 %687  ;;  %v8444_v33 = vld [vmem:[#allocation23_spill] sm:$0xff] }
 0x139   : > { %8436 = vst [vmem:[#allocation125_spill] sm:$0xff] %v4720_v46  ;;  %v8445_v46 = vld [vmem:[#allocation24_spill] sm:$0xff] }
 0x13a   : > { %8437 = vst [vmem:[#allocation126_spill] sm:$0xff] %v4722_v16  ;;  %v8446_v16 = vld [vmem:[#allocation19_spill] sm:$0xff] }
 0x13d   : > { %819 = vrot.lane.b32.xlu2 %v8438_v53, %s3875_s27 }
 0x13e   : > { %817 = vrot.lane.b32.xlu1 %v8439_v3, %s3875_s27  ;;  %815 = vrot.lane.b32.xlu0 %v8440_v18, %s3875_s27 }
 0x13f   : > { %v4730_v45 = vpop.permute.xlu2 %715 }
 0x140   : > { %8441 = vst [vmem:[#allocation127_spill] sm:$0xff] %v4730_v45  ;;  %v4732_v40 = vpop.permute.xlu1 %695  ;;  %v4734_v29 = vpop.permute.xlu0 %693  ;;  %v8450_v45 = vld [vmem:[#allocation26_spill] sm:$0xff] }
 0x141   : > { %8442 = vst [vmem:[#allocation128_spill] sm:$0xff] %v4732_v40  ;;  %v8451_v40 = vld [vmem:[#allocation27_spill] sm:$0xff] }
 0x142   : > { %8443 = vst [vmem:[#allocation129_spill] sm:$0xff] %v4734_v29  ;;  %v8452_v29 = vld [vmem:[#allocation22_spill] sm:$0xff] }
 0x145   : > { %825 = vrot.lane.b32.xlu2 %v8444_v33, %s3875_s27 }
 0x146   : > { %823 = vrot.lane.b32.xlu1 %v8445_v46, %s3875_s27  ;;  %821 = vrot.lane.b32.xlu0 %v8446_v16, %s3875_s27 }
 0x147   : > { %v4742_v53 = vpop.permute.xlu2 %721 }
 0x148   : > { %8447 = vst [vmem:[#allocation130_spill] sm:$0xff] %v4742_v53  ;;  %v4744_v3 = vpop.permute.xlu1 %701  ;;  %v4746_v18 = vpop.permute.xlu0 %699  ;;  %v8456_v53 = vld [vmem:[#allocation29_spill] sm:$0xff] }
 0x149   : > { %8448 = vst [vmem:[#allocation131_spill] sm:$0xff] %v4744_v3  ;;  %v8457_v3 = vld [vmem:[#allocation25_spill] sm:$0xff] }
 0x14a   : > { %8449 = vst [vmem:[#allocation132_spill] sm:$0xff] %v4746_v18 }
 0x14d   : > { %831 = vrot.lane.b32.xlu2 %v8450_v45, %s3875_s27 }
 0x14e   : > { %829 = vrot.lane.b32.xlu1 %v8451_v40, %s3875_s27  ;;  %827 = vrot.lane.b32.xlu0 %v8452_v29, %s3875_s27 }
 0x14f   : > { %v4754_v33 = vpop.permute.xlu2 %727 }
 0x150   : > { %8453 = vst [vmem:[#allocation133_spill] sm:$0xff] %v4754_v33  ;;  %v4756_v46 = vpop.permute.xlu1 %707  ;;  %v4758_v16 = vpop.permute.xlu0 %705  ;;  %v4773_v33 = vld [vmem:[%s3930_s23 + $0x190] sm:$0x3] }
 0x151   : > { %8454 = vst [vmem:[#allocation134_spill] sm:$0xff] %v4756_v46  ;;  %v8461_v46 = vld [vmem:[#allocation32_spill] sm:$0xff] }
 0x152   : > { %8455 = vst [vmem:[#allocation135_spill] sm:$0xff] %v4758_v16  ;;  %v8462_v16 = vld [vmem:[#allocation28_spill] sm:$0xff] }
 0x155   : > { %837 = vrot.lane.b32.xlu2 %v8456_v53, %s3875_s27 }
 0x156   : > { %835 = vrot.lane.b32.xlu1 %v4248_v58, %s3875_s27  ;;  %833 = vrot.lane.b32.xlu0 %v8457_v3, %s3875_s27  ;;  %v781_v3 = vrot.slane %v4647_v62, 1 }
 0x157   : > { %v4766_v18 = vpop.permute.xlu2 %733 }
 0x158   : > { %8458 = vst [vmem:[#allocation136_spill] sm:$0xff] %v4766_v18  ;;  %v4768_v45 = vpop.permute.xlu1 %713  ;;  %v4770_v29 = vpop.permute.xlu0 %711  ;;  %v783_v18 = vrot.slane %v4773_v33, 1 }
 0x159   : > { %8459 = vst [vmem:[#allocation137_spill] sm:$0xff] %v4768_v45  ;;  %v780_v45 = vrot.slane %v4650_v57, 1 }
 0x15a   : > { %8460 = vst [vmem:[#allocation138_spill] sm:$0xff] %v4770_v29 }
 0x15d   : > { %843 = vrot.lane.b32.xlu2 %v4272_v60, %s3875_s27  ;;  %v4791_v60 = vsel %vm327_vm0, %v781_v3, %v783_v18 }
 0x15e   : > { %841 = vrot.lane.b32.xlu1 %v8461_v46, %s3875_s27  ;;  %839 = vrot.lane.b32.xlu0 %v8462_v16, %s3875_s27  ;;  %8466 = vst [vmem:[#allocation142_spill] sm:$0xff] %v4791_v60  ;;  %v4794_v46 = vsel %vm327_vm0, %v780_v45, %v781_v3 }
 0x15f   : > { %v4781_v53 = vpop.permute.xlu2 %739  ;;  %8467 = vst [vmem:[#allocation143_spill] sm:$0xff] %v4794_v46 }
 0x160   : > { %8463 = vst [vmem:[#allocation139_spill] sm:$0xff] %v4781_v53  ;;  %v4786_v29 = vpop.permute.xlu1 %719  ;;  %v4788_v58 = vpop.permute.xlu0 %717 }
 0x161   : > { %8464 = vst [vmem:[#allocation140_spill] sm:$0xff] %v4786_v29 }
 0x162   : > { %8465 = vst [vmem:[#allocation141_spill] sm:$0xff] %v4788_v58 }
 0x165   : > { %886 = vrot.lane.b32.xlu2 %v4290_v10, %s3876_s28  ;;  %v8471_v10 = vld [vmem:[#allocation33_spill] sm:$0xff] }
 0x166   : > { %847 = vrot.lane.b32.xlu1 %v4791_v60, %s3875_s27  ;;  %845 = vrot.lane.b32.xlu0 %v4794_v46, %s3875_s27 }
 0x167   : > { %v4802_v53 = vpop.permute.xlu2 %745 }
 0x168   : > { %8468 = vst [vmem:[#allocation144_spill] sm:$0xff] %v4802_v53  ;;  %v4804_v29 = vpop.permute.xlu1 %725  ;;  %v4806_v58 = vpop.permute.xlu0 %723  ;;  %v8475_v53 = vld [vmem:[#allocation40_spill] sm:$0xff] }
 0x169   : > { %8469 = vst [vmem:[#allocation145_spill] sm:$0xff] %v4804_v29  ;;  %v8476_v29 = vld [vmem:[#allocation35_spill] sm:$0xff] }
 0x16a   : > { %8470 = vst [vmem:[#allocation146_spill] sm:$0xff] %v4806_v58 }
 0x16d   : > { %892 = vrot.lane.b32.xlu2 %v4309_v9, %s3876_s28 }
 0x16e   : > { %890 = vrot.lane.b32.xlu1 %v4312_v47, %s3876_s28  ;;  %888 = vrot.lane.b32.xlu0 %v8471_v10, %s3876_s28 }
 0x16f   : > { %v4814_v18 = vpop.permute.xlu2 %789 }
 0x170   : > { %8472 = vst [vmem:[#allocation33_spill] sm:$0xff] %v4814_v18  ;;  %v4816_v3 = vpop.permute.xlu1 %731  ;;  %v4818_v45 = vpop.permute.xlu0 %729  ;;  %v8480_v18 = vld [vmem:[#allocation43_spill] sm:$0xff] }
 0x171   : > { %8473 = vst [vmem:[#allocation147_spill] sm:$0xff] %v4816_v3  ;;  %v8481_v3 = vld [vmem:[#allocation44_spill] sm:$0xff] }
 0x172   : > { %8474 = vst [vmem:[#allocation148_spill] sm:$0xff] %v4818_v45  ;;  %v8482_v45 = vld [vmem:[#allocation38_spill] sm:$0xff] }
 0x175   : > { %898 = vrot.lane.b32.xlu2 %v4330_v44, %s3876_s28 }
 0x176   : > { %896 = vrot.lane.b32.xlu1 %v8475_v53, %s3876_s28  ;;  %894 = vrot.lane.b32.xlu0 %v8476_v29, %s3876_s28 }
 0x177   : > { %v4826_v58 = vpop.permute.xlu2 %795 }
 0x178   : > { %8477 = vst [vmem:[#allocation149_spill] sm:$0xff] %v4826_v58  ;;  %v4828_v9 = vpop.permute.xlu1 %737  ;;  %v4830_v10 = vpop.permute.xlu0 %735 }
 0x179   : > { %8478 = vst [vmem:[#allocation150_spill] sm:$0xff] %v4828_v9  ;;  %v8486_v9 = vld [vmem:[#allocation42_spill] sm:$0xff] }
 0x17a   : > { %8479 = vst [vmem:[#allocation151_spill] sm:$0xff] %v4830_v10 }
 0x17d   : > { %904 = vrot.lane.b32.xlu2 %v8480_v18, %s3876_s28 }
 0x17e   : > { %902 = vrot.lane.b32.xlu1 %v8481_v3, %s3876_s28  ;;  %900 = vrot.lane.b32.xlu0 %v8482_v45, %s3876_s28 }
 0x17f   : > { %v4838_v44 = vpop.permute.xlu2 %801 }
 0x180   : > { %8483 = vst [vmem:[#allocation44_spill] sm:$0xff] %v4838_v44  ;;  %v4840_v53 = vpop.permute.xlu1 %743  ;;  %v4842_v29 = vpop.permute.xlu0 %741 }
 0x181   : > { %8484 = vst [vmem:[#allocation38_spill] sm:$0xff] %v4840_v53  ;;  %v8490_v53 = vld [vmem:[#allocation55_spill] sm:$0xff] }
 0x182   : > { %8485 = vst [vmem:[#allocation152_spill] sm:$0xff] %v4842_v29  ;;  %v8491_v29 = vld [vmem:[#allocation48_spill] sm:$0xff] }
 0x185   : > { %910 = vrot.lane.b32.xlu2 %v4377_v59, %s3876_s28 }
 0x186   : > { %908 = vrot.lane.b32.xlu1 %v4380_v4, %s3876_s28  ;;  %906 = vrot.lane.b32.xlu0 %v8486_v9, %s3876_s28 }
 0x187   : > { %v4850_v10 = vpop.permute.xlu2 %807 }
 0x188   : > { %8487 = vst [vmem:[#allocation153_spill] sm:$0xff] %v4850_v10  ;;  %v4852_v58 = vpop.permute.xlu1 %787  ;;  %v4854_v18 = vpop.permute.xlu0 %785  ;;  %v8495_v10 = vld [vmem:[#allocation53_spill] sm:$0xff] }
 0x189   : > { %8488 = vst [vmem:[#allocation154_spill] sm:$0xff] %v4852_v58 }
 0x18a   : > { %8489 = vst [vmem:[#allocation155_spill] sm:$0xff] %v4854_v18 }
 0x18d   : > { %916 = vrot.lane.b32.xlu2 %v4403_v32, %s3876_s28 }
 0x18e   : > { %914 = vrot.lane.b32.xlu1 %v8490_v53, %s3876_s28  ;;  %912 = vrot.lane.b32.xlu0 %v8491_v29, %s3876_s28 }
 0x18f   : > { %v4862_v44 = vpop.permute.xlu2 %813 }
 0x190   : > { %8492 = vst [vmem:[#allocation55_spill] sm:$0xff] %v4862_v44  ;;  %v4864_v59 = vpop.permute.xlu1 %793  ;;  %v4866_v9 = vpop.permute.xlu0 %791  ;;  %v8499_v44 = vld [vmem:[#allocation66_spill] sm:$0xff] }
 0x191   : > { %8493 = vst [vmem:[#allocation48_spill] sm:$0xff] %v4864_v59  ;;  %v8500_v59 = vld [vmem:[#allocation59_spill] sm:$0xff] }
 0x192   : > { %8494 = vst [vmem:[#allocation156_spill] sm:$0xff] %v4866_v9 }
 0x195   : > { %922 = vrot.lane.b32.xlu2 %v4428_v7, %s3876_s28 }
 0x196   : > { %920 = vrot.lane.b32.xlu1 %v4431_v8, %s3876_s28  ;;  %918 = vrot.lane.b32.xlu0 %v8495_v10, %s3876_s28 }
 0x197   : > { %v4874_v58 = vpop.permute.xlu2 %819 }
 0x198   : > { %8496 = vst [vmem:[#allocation157_spill] sm:$0xff] %v4874_v58  ;;  %v4876_v18 = vpop.permute.xlu1 %799  ;;  %v4878_v32 = vpop.permute.xlu0 %797 }
 0x199   : > { %8497 = vst [vmem:[#allocation158_spill] sm:$0xff] %v4876_v18  ;;  %v8504_v18 = vld [vmem:[#allocation64_spill] sm:$0xff] }
 0x19a   : > { %8498 = vst [vmem:[#allocation159_spill] sm:$0xff] %v4878_v32 }
 0x19d   : > { %928 = vrot.lane.b32.xlu2 %v4454_v27, %s3876_s28 }
 0x19e   : > { %926 = vrot.lane.b32.xlu1 %v8499_v44, %s3876_s28  ;;  %924 = vrot.lane.b32.xlu0 %v8500_v59, %s3876_s28 }
 0x19f   : > { %v4886_v9 = vpop.permute.xlu2 %825 }
 0x1a0   : > { %8501 = vst [vmem:[#allocation66_spill] sm:$0xff] %v4886_v9  ;;  %v4888_v7 = vpop.permute.xlu1 %805  ;;  %v4890_v10 = vpop.permute.xlu0 %803  ;;  %v8508_v9 = vld [vmem:[#allocation70_spill] sm:$0xff] }
 0x1a1   : > { %8502 = vst [vmem:[#allocation59_spill] sm:$0xff] %v4888_v7  ;;  %v881_v7 = vrot.slane %v4650_v57, 2 }
 0x1a2   : > { %8503 = vst [vmem:[#allocation160_spill] sm:$0xff] %v4890_v10  ;;  %v882_v10 = vrot.slane %v4647_v62, 2 }
 0x1a5   : > { %934 = vrot.lane.b32.xlu2 %v4479_v12, %s3876_s28 }
 0x1a6   : > { %932 = vrot.lane.b32.xlu1 %v4482_v14, %s3876_s28  ;;  %930 = vrot.lane.b32.xlu0 %v8504_v18, %s3876_s28 }
 0x1a7   : > { %v4898_v32 = vpop.permute.xlu2 %831 }
 0x1a8   : > { %8505 = vst [vmem:[#allocation64_spill] sm:$0xff] %v4898_v32  ;;  %v4900_v58 = vpop.permute.xlu1 %811  ;;  %v4902_v27 = vpop.permute.xlu0 %809 }
 0x1a9   : > { %8506 = vst [vmem:[#allocation161_spill] sm:$0xff] %v4900_v58 }
 0x1aa   : > { %8507 = vst [vmem:[#allocation162_spill] sm:$0xff] %v4902_v27  ;;  %v4919_v27 = vsel %vm504_vm1, %v881_v7, %v882_v10 }
 0x1ad   : > { %940 = vrot.lane.b32.xlu2 %v4505_v38, %s3876_s28 }
 0x1ae   : > { %938 = vrot.lane.b32.xlu1 %v4508_v51, %s3876_s28  ;;  %936 = vrot.lane.b32.xlu0 %v8508_v9, %s3876_s28 }
 0x1af   : > { %v4912_v12 = vpop.permute.xlu2 %837 }
 0x1b0   : > { %8509 = vst [vmem:[#allocation163_spill] sm:$0xff] %v4912_v12  ;;  %v4914_v32 = vpop.permute.xlu1 %817  ;;  %v4916_v58 = vpop.permute.xlu0 %815  ;;  %v884_v12 = vrot.slane %v4773_v33, 2 }
 0x1b1   : > { %8510 = vst [vmem:[#allocation164_spill] sm:$0xff] %v4914_v32 }
 0x1b2   : > { %8511 = vst [vmem:[#allocation165_spill] sm:$0xff] %v4916_v58  ;;  %v4935_v7 = vsel %vm504_vm1, %v882_v10, %v884_v12  ;;  %v5058_v10 = vld [vmem:[%s3930_s23 + $0x1a0] sm:$0xff] }
 0x1b5   : > { %946 = vrot.lane.b32.xlu2 %v4919_v27, %s3876_s28 }
 0x1b6   : > { %944 = vrot.lane.b32.xlu1 %v4524_v55, %s3876_s28  ;;  %942 = vrot.lane.b32.xlu0 %v4502_v15, %s3876_s28 }
 0x1b7   : > { %v4927_v38 = vpop.permute.xlu2 %843 }
 0x1b8   : > { %8512 = vst [vmem:[#allocation166_spill] sm:$0xff] %v4927_v38  ;;  %v4930_v9 = vpop.permute.xlu1 %823  ;;  %v4932_v32 = vpop.permute.xlu0 %821 }
 0x1bd   : > { %986 = vrot.lane.b32.xlu2 %v3936_v1, %s3877_s29 }
 0x1be   : > { %984 = vrot.lane.b32.xlu1 %v3933_v0, %s3877_s29  ;;  %948 = vrot.lane.b32.xlu0 %v4935_v7, %s3876_s28  ;;  %s3743_s28 = sshll.u32 %s9176_s19, 8 }
 0x1bf   : > { %v4943_v38 = vpop.permute.xlu2 %886 }
 0x1c0   : > { %v4945_v33 = vpop.permute.xlu1 %829  ;;  %v4947_v58 = vpop.permute.xlu0 %827 }
 0x1c5   : > { %992 = vrot.lane.b32.xlu2 %v3988_v24, %s3877_s29 }
 0x1c6   : > { %990 = vrot.lane.b32.xlu1 %v3994_v26, %s3877_s29  ;;  %988 = vrot.lane.b32.xlu0 %v4000_v28, %s3877_s29 }
 0x1c7   : > { %v4955_v1 = vpop.permute.xlu2 %892 }
 0x1c8   : > { %v4957_v0 = vpop.permute.xlu1 %835  ;;  %v4959_v12 = vpop.permute.xlu0 %833 }
 0x1c9   : > { %8513 = vst [vmem:[#allocation167_spill] sm:$0xff] %v4957_v0 }
 0x1ca   : > { %8514 = vst [vmem:[#allocation168_spill] sm:$0xff] %v4959_v12  ;;  %v8550_v12 = vld [vmem:[#allocation30_spill] sm:$0xff] }
 0x1cd   : > { %998 = vrot.lane.b32.xlu2 %v4022_v37, %s3877_s29 }
 0x1ce   : > { %996 = vrot.lane.b32.xlu1 %v4028_v39, %s3877_s29  ;;  %994 = vrot.lane.b32.xlu0 %v3991_v25, %s3877_s29 }
 0x1cf   : > { %v4967_v24 = vpop.permute.xlu2 %898 }
 0x1d0   : > { %v4969_v26 = vpop.permute.xlu1 %841  ;;  %v4971_v28 = vpop.permute.xlu0 %839 }
 0x1d1   : > { %8515 = vst [vmem:[#allocation169_spill] sm:$0xff] %v4969_v26 }
 0x1d2   : > { %8516 = vst [vmem:[#allocation170_spill] sm:$0xff] %v4971_v28  ;;  %v8537_v28 = vld [vmem:[#allocation13_spill] sm:$0xff] }
 0x1d5   : > { %1004 = vrot.lane.b32.xlu2 %v4053_v48, %s3877_s29 }
 0x1d6   : > { %1002 = vrot.lane.b32.xlu1 %v4059_v50, %s3877_s29  ;;  %1000 = vrot.lane.b32.xlu0 %v4065_v52, %s3877_s29 }
 0x1d7   : > { %v4979_v37 = vpop.permute.xlu2 %904 }
 0x1d8   : > { %v4981_v39 = vpop.permute.xlu1 %847  ;;  %v4983_v25 = vpop.permute.xlu0 %845 }
 0x1d9   : > { %8517 = vst [vmem:[#allocation171_spill] sm:$0xff] %v4981_v39  ;;  %v5061_v39 = vld [vmem:[%s3930_s23 + $0x198] sm:$0xff] }
 0x1da   : > { %8518 = vst [vmem:[#allocation172_spill] sm:$0xff] %v4983_v25  ;;  %v1081_v0 = vrot.slane %v5061_v39, 1 }
 0x1dd   : > { %1010 = vrot.lane.b32.xlu2 %v4088_v61, %s3877_s29 }
 0x1de   : > { %1008 = vrot.lane.b32.xlu1 %v4094_v63, %s3877_s29  ;;  %1006 = vrot.lane.b32.xlu0 %v4056_v49, %s3877_s29 }
 0x1df   : > { %v4991_v48 = vpop.permute.xlu2 %910 }
 0x1e0   : > { %8519 = vst [vmem:[#allocation173_spill] sm:$0xff] %v4991_v48  ;;  %v4993_v50 = vpop.permute.xlu1 %890  ;;  %v4995_v52 = vpop.permute.xlu0 %888  ;;  %v8556_v48 = vld [vmem:[#allocation32_spill] sm:$0xff] }
 0x1e5   : > { %1016 = vrot.lane.b32.xlu2 %v4119_v19, %s3877_s29 }
 0x1e6   : > { %1014 = vrot.lane.b32.xlu1 %v4125_v23, %s3877_s29  ;;  %1012 = vrot.lane.b32.xlu0 %v4131_v30, %s3877_s29 }
 0x1e7   : > { %v5003_v61 = vpop.permute.xlu2 %916 }
 0x1e8   : > { %8520 = vst [vmem:[#allocation174_spill] sm:$0xff] %v5003_v61  ;;  %v5005_v63 = vpop.permute.xlu1 %896  ;;  %v5007_v49 = vpop.permute.xlu0 %894  ;;  %v8540_v61 = vld [vmem:[#allocation21_spill] sm:$0xff] }
 0x1ed   : > { %1022 = vrot.lane.b32.xlu2 %v4154_v54, %s3877_s29 }
 0x1ee   : > { %1020 = vrot.lane.b32.xlu1 %v4160_v56, %s3877_s29  ;;  %1018 = vrot.lane.b32.xlu0 %v4122_v20, %s3877_s29 }
 0x1ef   : > { %v5015_v19 = vpop.permute.xlu2 %922 }
 0x1f0   : > { %v5017_v23 = vpop.permute.xlu1 %902  ;;  %v5019_v30 = vpop.permute.xlu0 %900 }
 0x1f5   : > { %1028 = vrot.lane.b32.xlu2 %v4185_v42, %s3877_s29 }
 0x1f6   : > { %1026 = vrot.lane.b32.xlu1 %v4191_v11, %s3877_s29  ;;  %1024 = vrot.lane.b32.xlu0 %v4197_v6, %s3877_s29 }
 0x1f7   : > { %v5027_v54 = vpop.permute.xlu2 %928 }
 0x1f8   : > { %v5029_v20 = vpop.permute.xlu1 %908  ;;  %v5031_v56 = vpop.permute.xlu0 %906 }
 0x1f9   : > { %8521 = vst [vmem:[#allocation175_spill] sm:$0xff] %v5029_v20 }
 0x1fd   : > { %1034 = vrot.lane.b32.xlu2 %v4220_v41, %s3877_s29 }
 0x1fe   : > { %1032 = vrot.lane.b32.xlu1 %v4226_v17, %s3877_s29  ;;  %1030 = vrot.lane.b32.xlu0 %v4188_v43, %s3877_s29 }
 0x1ff   : > { %v5039_v11 = vpop.permute.xlu2 %934 }
 0x200   : > { %8522 = vst [vmem:[#allocation176_spill] sm:$0xff] %v5039_v11  ;;  %v5041_v42 = vpop.permute.xlu1 %914  ;;  %v5043_v6 = vpop.permute.xlu0 %912 }
 0x201   : > { %8523 = vst [vmem:[#allocation177_spill] sm:$0xff] %v5041_v42 }
 0x202   : > { %8524 = vst [vmem:[#allocation178_spill] sm:$0xff] %v5043_v6 }
 0x205   : > { %1040 = vrot.lane.b32.xlu2 %v4650_v57, %s3877_s29 }
 0x206   : > { %1038 = vrot.lane.b32.xlu1 %v4251_v31, %s3877_s29  ;;  %1036 = vrot.lane.b32.xlu0 %v4257_v34, %s3877_s29 }
 0x207   : > { %v5051_v41 = vpop.permute.xlu2 %940 }
 0x208   : > { %8525 = vst [vmem:[#allocation179_spill] sm:$0xff] %v5051_v41  ;;  %v5053_v17 = vpop.permute.xlu1 %920  ;;  %v5055_v43 = vpop.permute.xlu0 %918  ;;  %v8536_v41 = vld [vmem:[#allocation18_spill] sm:$0xff] }
 0x209   : > { %8526 = vst [vmem:[#allocation180_spill] sm:$0xff] %v5055_v43 }
 0x20d   : > { %1046 = vrot.lane.b32.xlu2 %v5058_v10, %s3877_s29 }
 0x20e   : > { %1044 = vrot.lane.b32.xlu1 %v5061_v39, %s3877_s29  ;;  %1042 = vrot.lane.b32.xlu0 %v4647_v62, %s3877_s29 }
 0x20f   : > { %v5069_v34 = vpop.permute.xlu2 %946 }
 0x210   : > { %8527 = vst [vmem:[#allocation181_spill] sm:$0xff] %v5069_v34  ;;  %v5071_v31 = vpop.permute.xlu1 %926  ;;  %v5073_v57 = vpop.permute.xlu0 %924  ;;  %v8532_v34 = vld [vmem:[#allocation10_spill] sm:$0xff] }
 0x215   : > { %1090 = vrot.lane.b32.xlu2 %v4019_v36, %s3878_s30 }
 0x216   : > { %1088 = vrot.lane.b32.xlu1 %v3981_v21, %s3878_s30  ;;  %1086 = vrot.lane.b32.xlu0 %v3960_v13, %s3878_s30 }
 0x217   : > { %v5081_v25 = vpop.permute.xlu2 %986 }
 0x218   : > { %v5083_v26 = vpop.permute.xlu1 %932  ;;  %v5085_v62 = vpop.permute.xlu0 %930 }
 0x219   : > { %8528 = vst [vmem:[#allocation182_spill] sm:$0xff] %v5083_v26 }
 0x21a   : > { %8529 = vst [vmem:[#allocation183_spill] sm:$0xff] %v5085_v62 }
 0x21d   : > { %1096 = vrot.lane.b32.xlu2 %v8421_v2, %s3878_s30  ;;  %v8533_v2 = vld [vmem:[#allocation11_spill] sm:$0xff] }
 0x21e   : > { %1094 = vrot.lane.b32.xlu1 %v8422_v5, %s3878_s30  ;;  %1092 = vrot.lane.b32.xlu0 %v4016_v35, %s3878_s30 }
 0x21f   : > { %v5093_v36 = vpop.permute.xlu2 %992 }
 0x220   : > { %v5095_v21 = vpop.permute.xlu1 %938  ;;  %v5097_v13 = vpop.permute.xlu0 %936 }
 0x221   : > { %8530 = vst [vmem:[#allocation184_spill] sm:$0xff] %v5095_v21 }
 0x222   : > { %8531 = vst [vmem:[#allocation185_spill] sm:$0xff] %v5097_v13  ;;  %v8544_v13 = vld [vmem:[#allocation24_spill] sm:$0xff] }
 0x225   : > { %1102 = vrot.lane.b32.xlu2 %v8427_v22, %s3878_s30  ;;  %v8538_v22 = vld [vmem:[#allocation14_spill] sm:$0xff] }
 0x226   : > { %1100 = vrot.lane.b32.xlu1 %v8532_v34, %s3878_s30  ;;  %1098 = vrot.lane.b32.xlu0 %v8533_v2, %s3878_s30 }
 0x227   : > { %v5105_v43 = vpop.permute.xlu2 %998 }
 0x228   : > { %v5107_v5 = vpop.permute.xlu1 %944  ;;  %v5109_v35 = vpop.permute.xlu0 %942 }
 0x229   : > { %8534 = vst [vmem:[#allocation186_spill] sm:$0xff] %v5107_v5  ;;  %v8541_v5 = vld [vmem:[#allocation16_spill] sm:$0xff] }
 0x22a   : > { %8535 = vst [vmem:[#allocation187_spill] sm:$0xff] %v5109_v35 }
 0x22d   : > { %1108 = vrot.lane.b32.xlu2 %v8536_v41, %s3878_s30  ;;  %v8542_v41 = vld [vmem:[#allocation17_spill] sm:$0xff] }
 0x22e   : > { %1106 = vrot.lane.b32.xlu1 %v8537_v28, %s3878_s30  ;;  %1104 = vrot.lane.b32.xlu0 %v8538_v22, %s3878_s30 }
 0x22f   : > { %v5117_v21 = vpop.permute.xlu2 %1004 }
 0x230   : > { %v5119_v34 = vpop.permute.xlu1 %984  ;;  %v5121_v2 = vpop.permute.xlu0 %948 }
 0x231   : > { %8539 = vst [vmem:[#allocation188_spill] sm:$0xff] %v5121_v2  ;;  %v8545_v2 = vld [vmem:[#allocation19_spill] sm:$0xff] }
 0x235   : > { %1114 = vrot.lane.b32.xlu2 %v8540_v61, %s3878_s30  ;;  %v8546_v61 = vld [vmem:[#allocation20_spill] sm:$0xff] }
 0x236   : > { %1112 = vrot.lane.b32.xlu1 %v8541_v5, %s3878_s30  ;;  %1110 = vrot.lane.b32.xlu0 %v8542_v41, %s3878_s30 }
 0x237   : > { %v5129_v35 = vpop.permute.xlu2 %1010 }
 0x238   : > { %8543 = vst [vmem:[#allocation189_spill] sm:$0xff] %v5129_v35  ;;  %v5131_v28 = vpop.permute.xlu1 %990  ;;  %v5133_v22 = vpop.permute.xlu0 %988  ;;  %v1082_v35 = vrot.slane %v5058_v10, 1 }
 0x23d   : > { %1120 = vrot.lane.b32.xlu2 %v8544_v13, %s3878_s30  ;;  %v1083_v13 = vsel %vm327_vm0, %v1081_v0, %v1082_v35  ;;  %v8552_v0 = vld [vmem:[#allocation26_spill] sm:$0xff] }
 0x23e   : > { %1118 = vrot.lane.b32.xlu1 %v8545_v2, %s3878_s30  ;;  %1116 = vrot.lane.b32.xlu0 %v8546_v61, %s3878_s30  ;;  %v8548_v2 = vld [vmem:[#allocation22_spill] sm:$0xff]  ;;  %v8549_v61 = vld [vmem:[#allocation23_spill] sm:$0xff] }
 0x23f   : > { %v5141_v42 = vpop.permute.xlu2 %1016 }
 0x240   : > { %8547 = vst [vmem:[#allocation190_spill] sm:$0xff] %v5141_v42  ;;  %v5143_v5 = vpop.permute.xlu1 %996  ;;  %v5145_v41 = vpop.permute.xlu0 %994 }
 0x245   : > { %1126 = vrot.lane.b32.xlu2 %v8451_v40, %s3878_s30  ;;  %v8551_v40 = vld [vmem:[#allocation25_spill] sm:$0xff] }
 0x246   : > { %1124 = vrot.lane.b32.xlu1 %v8548_v2, %s3878_s30  ;;  %1122 = vrot.lane.b32.xlu0 %v8549_v61, %s3878_s30 }
 0x247   : > { %v5156_v42 = vpop.permute.xlu2 %1022 }
 0x248   : > { %v5158_v6 = vpop.permute.xlu1 %1002  ;;  %v5160_v11 = vpop.permute.xlu0 %1000 }
 0x24d   : > { %1132 = vrot.lane.b32.xlu2 %v8550_v12, %s3878_s30  ;;  %v8557_v12 = vld [vmem:[#allocation29_spill] sm:$0xff] }
 0x24e   : > { %1130 = vrot.lane.b32.xlu1 %v8551_v40, %s3878_s30  ;;  %1128 = vrot.lane.b32.xlu0 %v8552_v0, %s3878_s30 }
 0x24f   : > { %v5168_v2 = vpop.permute.xlu2 %1028 }
 0x250   : > { %8553 = vst [vmem:[#allocation191_spill] sm:$0xff] %v5168_v2  ;;  %v5170_v26 = vpop.permute.xlu1 %1008  ;;  %v5172_v61 = vpop.permute.xlu0 %1006  ;;  %v5187_v2 = vld [vmem:[%s3930_s23 + $0x1a8] sm:$0x3] }
 0x251   : > { %8554 = vst [vmem:[#allocation192_spill] sm:$0xff] %v5170_v26  ;;  %v8565_v26 = vld [vmem:[#allocation35_spill] sm:$0xff] }
 0x252   : > { %8555 = vst [vmem:[#allocation193_spill] sm:$0xff] %v5172_v61 }
 0x255   : > { %1138 = vrot.lane.b32.xlu2 %v8556_v48, %s3878_s30  ;;  %v8561_v48 = vld [vmem:[#allocation31_spill] sm:$0xff] }
 0x256   : > { %1136 = vrot.lane.b32.xlu1 %v8462_v16, %s3878_s30  ;;  %1134 = vrot.lane.b32.xlu0 %v8557_v12, %s3878_s30  ;;  %v1084_v12 = vrot.slane %v5187_v2, 1 }
 0x257   : > { %v5180_v62 = vpop.permute.xlu2 %1034 }
 0x258   : > { %8558 = vst [vmem:[#allocation194_spill] sm:$0xff] %v5180_v62  ;;  %v5182_v40 = vpop.permute.xlu1 %1014  ;;  %v5184_v0 = vpop.permute.xlu0 %1012 }
 0x259   : > { %8559 = vst [vmem:[#allocation195_spill] sm:$0xff] %v5182_v40 }
 0x25a   : > { %8560 = vst [vmem:[#allocation196_spill] sm:$0xff] %v5184_v0  ;;  %v1085_v0 = vsel %vm327_vm0, %v1082_v35, %v1084_v12  ;;  %v8566_v35 = vld [vmem:[#allocation36_spill] sm:$0xff] }
 0x25d   : > { %1144 = vrot.lane.b32.xlu2 %v4791_v60, %s3878_s30 }
 0x25e   : > { %1142 = vrot.lane.b32.xlu1 %v4794_v46, %s3878_s30  ;;  %1140 = vrot.lane.b32.xlu0 %v8561_v48, %s3878_s30 }
 0x25f   : > { %v5195_v16 = vpop.permute.xlu2 %1040 }
 0x260   : > { %8562 = vst [vmem:[#allocation197_spill] sm:$0xff] %v5195_v16  ;;  %v5198_v62 = vpop.permute.xlu1 %1020  ;;  %v5200_v40 = vpop.permute.xlu0 %1018  ;;  %v8564_v16 = vld [vmem:[#allocation40_spill] sm:$0xff] }
 0x265   : > { %1187 = vrot.lane.b32.xlu2 %v4312_v47, %s3879_s6 }
 0x266   : > { %1148 = vrot.lane.b32.xlu1 %v1085_v0, %s3878_s30  ;;  %1146 = vrot.lane.b32.xlu0 %v1083_v13, %s3878_s30 }
 0x267   : > { %v5207_v60 = vpop.permute.xlu2 %1046 }
 0x268   : > { %8563 = vst [vmem:[#allocation198_spill] sm:$0xff] %v5207_v60  ;;  %v5209_v46 = vpop.permute.xlu1 %1026  ;;  %v5211_v48 = vpop.permute.xlu0 %1024  ;;  %v8572_v60 = vld [vmem:[#allocation42_spill] sm:$0xff] }
 0x26d   : > { %1193 = vrot.lane.b32.xlu2 %v8564_v16, %s3879_s6  ;;  %v8569_v16 = vld [vmem:[#allocation39_spill] sm:$0xff] }
 0x26e   : > { %1191 = vrot.lane.b32.xlu1 %v8565_v26, %s3879_s6  ;;  %1189 = vrot.lane.b32.xlu0 %v8566_v35, %s3879_s6 }
 0x26f   : > { %v5219_v47 = vpop.permute.xlu2 %1090 }
 0x270   : > { %v5221_v12 = vpop.permute.xlu1 %1032  ;;  %v5223_v13 = vpop.permute.xlu0 %1030 }
 0x271   : > { %8567 = vst [vmem:[#allocation40_spill] sm:$0xff] %v5221_v12 }
 0x272   : > { %8568 = vst [vmem:[#allocation35_spill] sm:$0xff] %v5223_v13  ;;  %v1183_v13 = vrot.slane %v5058_v10, 2  ;;  %v8582_v10 = vld [vmem:[#allocation65_spill] sm:$0xff] }
 0x275   : > { %1199 = vrot.lane.b32.xlu2 %v8481_v3, %s3879_s6  ;;  %v8573_v3 = vld [vmem:[#allocation43_spill] sm:$0xff] }
 0x276   : > { %1197 = vrot.lane.b32.xlu1 %v8482_v45, %s3879_s6  ;;  %1195 = vrot.lane.b32.xlu0 %v8569_v16, %s3879_s6 }
 0x277   : > { %v5231_v0 = vpop.permute.xlu2 %1096 }
 0x278   : > { %v5233_v26 = vpop.permute.xlu1 %1038  ;;  %v5235_v35 = vpop.permute.xlu0 %1036 }
 0x279   : > { %8570 = vst [vmem:[#allocation36_spill] sm:$0xff] %v5233_v26 }
 0x27a   : > { %8571 = vst [vmem:[#allocation39_spill] sm:$0xff] %v5235_v35  ;;  %v1182_v35 = vrot.slane %v5061_v39, 2  ;;  %v1551_v39 = vld [vmem:[%s8119_s1 + $0x20] sm:$0xf] }
 0x27b   : > { %3675 = vmatpush.msk.msra.mxu0 %vm1653_vm2, %v1551_v39  ;;  %3744 = vmatpush.msk.msra.mxu3 %vm1653_vm2, %v1551_v39 }
 0x27d   : > { %1205 = vrot.lane.b32.xlu2 %v4380_v4, %s3879_s6  ;;  %v8576_v4 = vld [vmem:[#allocation49_spill] sm:$0xff] }
 0x27e   : > { %1203 = vrot.lane.b32.xlu1 %v8572_v60, %s3879_s6  ;;  %1201 = vrot.lane.b32.xlu0 %v8573_v3, %s3879_s6 }
 0x27f   : > { %v5243_v12 = vpop.permute.xlu2 %1102 }
 0x280   : > { %v5245_v45 = vpop.permute.xlu1 %1044  ;;  %v5247_v16 = vpop.permute.xlu0 %1042 }
 0x281   : > { %8574 = vst [vmem:[#allocation42_spill] sm:$0xff] %v5245_v45  ;;  %v8578_v45 = vld [vmem:[#allocation53_spill] sm:$0xff] }
 0x282   : > { %8575 = vst [vmem:[#allocation43_spill] sm:$0xff] %v5247_v16 }
 0x285   : > { %1211 = vrot.lane.b32.xlu2 %v8490_v53, %s3879_s6  ;;  %v8579_v53 = vld [vmem:[#allocation54_spill] sm:$0xff] }
 0x286   : > { %1209 = vrot.lane.b32.xlu1 %v8491_v29, %s3879_s6  ;;  %1207 = vrot.lane.b32.xlu0 %v8576_v4, %s3879_s6 }
 0x287   : > { %v5255_v26 = vpop.permute.xlu2 %1108 }
 0x288   : > { %8577 = vst [vmem:[#allocation49_spill] sm:$0xff] %v5255_v26  ;;  %v5257_v60 = vpop.permute.xlu1 %1088  ;;  %v5259_v3 = vpop.permute.xlu0 %1086 }
 0x28d   : > { %1217 = vrot.lane.b32.xlu2 %v4431_v8, %s3879_s6  ;;  %v1184_v8 = vsel %vm504_vm1, %v1182_v35, %v1183_v13  ;;  %v1548_v35 = vld [vmem:[%s8119_s1 + $0x8] sm:$0xff] }
 0x28e   : > { %1215 = vrot.lane.b32.xlu1 %v8578_v45, %s3879_s6  ;;  %1213 = vrot.lane.b32.xlu0 %v8579_v53, %s3879_s6  ;;  %v8581_v45 = vld [vmem:[#allocation60_spill] sm:$0xff] }
 0x28f   : > { %v5267_v16 = vpop.permute.xlu2 %1114 }
 0x290   : > { %8580 = vst [vmem:[#allocation53_spill] sm:$0xff] %v5267_v16  ;;  %v5269_v29 = vpop.permute.xlu1 %1094  ;;  %v5271_v4 = vpop.permute.xlu0 %1092 }
 0x295   : > { %1223 = vrot.lane.b32.xlu2 %v8499_v44, %s3879_s6  ;;  %v1549_v44 = vld [vmem:[%s8119_s1 + $0x10] sm:$0xff] }
 0x296   : > { %1221 = vrot.lane.b32.xlu1 %v8500_v59, %s3879_s6  ;;  %1219 = vrot.lane.b32.xlu0 %v8581_v45, %s3879_s6  ;;  %v1550_v59 = vld [vmem:[%s8119_s1 + $0x18] sm:$0xff] }
 0x297   : > { %v5282_v53 = vpop.permute.xlu2 %1120  ;;  %1669 = vmatpush.msra.mxu0 %v1550_v59  ;;  %3745 = vmatpush.msra.mxu3 %v1550_v59 }
 0x298   : > { %v5284_v16 = vpop.permute.xlu1 %1100  ;;  %v5286_v26 = vpop.permute.xlu0 %1098 }
 0x299   : > { %1670 = vmatpush.msra.mxu0 %v1549_v44  ;;  %3746 = vmatpush.msra.mxu3 %v1549_v44 }
 0x29b   : > { %1671 = vmatpush.msra.mxu0 %v1548_v35  ;;  %3747 = vmatpush.msra.mxu3 %v1548_v35 }
 0x29d   : > { %1229 = vrot.lane.b32.xlu2 %v4482_v14, %s3879_s6  ;;  %v1547_v14 = vld [vmem:[%s8119_s1] sm:$0xff] }
 0x29e   : > { %1227 = vrot.lane.b32.xlu1 %v8504_v18, %s3879_s6  ;;  %1225 = vrot.lane.b32.xlu0 %v8582_v10, %s3879_s6  ;;  %v8583_v18 = vld [vmem:[#allocation70_spill] sm:$0xff]  ;;  %v8584_v10 = vld [vmem:[#allocation71_spill] sm:$0xff] }
 0x29f   : > { %v5308_v45 = vpop.permute.xlu2 %1126  ;;  %1672 = vmatpush.msra.mxu0 %v1547_v14  ;;  %3748 = vmatpush.msra.mxu3 %v1547_v14 }
 0x2a0   : > { %v5310_v39 = vpop.permute.xlu1 %1106  ;;  %v5312_v59 = vpop.permute.xlu0 %1104 }
 0x2a5   : > { %1235 = vrot.lane.b32.xlu2 %v4508_v51, %s3879_s6  ;;  %v8588_v51 = vld [vmem:[#allocation75_spill] sm:$0xff] }
 0x2a6   : > { %1233 = vrot.lane.b32.xlu1 %v8583_v18, %s3879_s6  ;;  %1231 = vrot.lane.b32.xlu0 %v8584_v10, %s3879_s6 }
 0x2a7   : > { %v5323_v44 = vpop.permute.xlu2 %1132 }
 0x2a8   : > { %8585 = vst [vmem:[#allocation54_spill] sm:$0xff] %v5323_v44  ;;  %v5325_v61 = vpop.permute.xlu1 %1112  ;;  %v5327_v20 = vpop.permute.xlu0 %1110 }
 0x2a9   : > { %8586 = vst [vmem:[#allocation60_spill] sm:$0xff] %v5325_v61 }
 0x2aa   : > { %8587 = vst [vmem:[#allocation65_spill] sm:$0xff] %v5327_v20 }
 0x2ad   : > { %1241 = vrot.lane.b32.xlu2 %v4524_v55, %s3879_s6  ;;  %v1185_v55 = vrot.slane %v5187_v2, 2  ;;  %v8596_v2 = vld [vmem:[#allocation155_spill] sm:$0xff] }
 0x2ae   : > { %1239 = vrot.lane.b32.xlu1 %v4502_v15, %s3879_s6  ;;  %1237 = vrot.lane.b32.xlu0 %v8588_v51, %s3879_s6 }
 0x2af   : > { %v5335_v35 = vpop.permute.xlu2 %1138 }
 0x2b0   : > { %8589 = vst [vmem:[#allocation70_spill] sm:$0xff] %v5335_v35  ;;  %v5337_v14 = vpop.permute.xlu1 %1118  ;;  %v5339_v18 = vpop.permute.xlu0 %1116  ;;  %v8594_v35 = vld [vmem:[#allocation79_spill] sm:$0xff] }
 0x2b1   : > { %8590 = vst [vmem:[#allocation71_spill] sm:$0xff] %v5337_v14  ;;  %v3794_v14 = vld [vmem:[%s3930_s23] sm:$0xff] }
 0x2b2   : > { %8591 = vst [vmem:[#allocation75_spill] sm:$0xff] %v5339_v18  ;;  %v8593_v18 = vld [vmem:[#allocation47_spill] sm:$0xff] }
 0x2b5   : > { %1247 = vrot.lane.b32.xlu2 %v1184_v8, %s3879_s6  ;;  %v1284_v8 = vsel %vm1283_vm3, %v3794_v14, %v8593_v18 }
 0x2b6   : > { %1245 = vrot.lane.b32.xlu1 %v4935_v7, %s3879_s6  ;;  %1243 = vrot.lane.b32.xlu0 %v4919_v27, %s3879_s6  ;;  %v1317_v61 = vsel %vm1316_vm4, %v1284_v8, %v8594_v35  ;;  %v8595_v7 = vld [vmem:[#allocation122_spill] sm:$0xff] }
 0x2b7   : > { %v5346_v15 = vpop.permute.xlu2 %1144  ;;  %v1350_v27 = vsel %vm1349_vm5, %v1317_v61, %v8595_v7  ;;  %v3795_v8 = vld [vmem:[%s3930_s23 + $0x8] sm:$0xff]  ;;  %v8603_v7 = vld [vmem:[#allocation52_spill] sm:$0xff] }
 0x2b8   : > { %8592 = vst [vmem:[#allocation199_spill] sm:$0xff] %v5346_v15  ;;  %v5349_v10 = vpop.permute.xlu1 %1124  ;;  %v5351_v51 = vpop.permute.xlu0 %1122  ;;  %v1186_v15 = vsel %vm504_vm1, %v1183_v13, %v1185_v55  ;;  %v1383_v20 = vsel %vm1382_vm7, %v1350_v27, %v8596_v2  ;;  %v1285_v27 = vsel %vm1283_vm3, %v3795_v8, %v8603_v7  ;;  %v8604_v2 = vld [vmem:[#allocation93_spill] sm:$0xff] }
 0x2b9   : > { %v1416_v44 = vsel %vm1415_vm6, %v1383_v20, %v4943_v38 }
 0x2ba   : > { %v1449_v14 = vsel %vm1448_vm8, %v1416_v44, %v5119_v34 }
 0x2bb   : > { %v1482_v61 = vsel %vm1481_vm10, %v1449_v14, %v5259_v3  ;;  %v1318_v14 = vsel %vm1316_vm4, %v1285_v27, %v8604_v2  ;;  %v3796_v2 = vld [vmem:[%s3930_s23 + $0x18] sm:$0xff] }
 0x2be   : > { %1249 = vrot.lane.b32.xlu0 %v1186_v15, %s3879_s6 }
 0x2bf   : > { %v1188_v13 = vpop.permute.xlu2 %1187 }
 0x2c0   : > { %v5370_v35 = vpop.permute.xlu1 %1130  ;;  %v5372_v18 = vpop.permute.xlu0 %1128  ;;  %v1515_v38 = vsel %vm1514_vm9, %v1482_v61, %v1188_v13  ;;  %v8605_v13 = vld [vmem:[#allocation112_spill] sm:$0xff] }
 0x2c1   : > { %3676 = vmatmul.msk.f32.vlgmr.msra.gmra.mxu0 %vm1556_vm11, %v1515_v38  ;;  %v1351_v38 = vsel %vm1349_vm5, %v1318_v14, %v8605_v13 }
 0x2c7   : > { %v1194_v61 = vpop.permute.xlu2 %1193 }
 0x2c8   : > { %v5376_v20 = vpop.permute.xlu1 %1136  ;;  %v5378_v34 = vpop.permute.xlu0 %1134 }
 0x2c9   : > { %8597 = vst [vmem:[#allocation47_spill] sm:$0xff] %v5376_v20  ;;  %v8606_v20 = vld [vmem:[#allocation154_spill] sm:$0xff] }
 0x2ca   : > { %8598 = vst [vmem:[#allocation79_spill] sm:$0xff] %v5378_v34  ;;  %v8607_v34 = vld [vmem:[#allocation46_spill] sm:$0xff] }
 0x2cb   : > { %v1286_v14 = vsel %vm1283_vm3, %v3796_v2, %v8607_v34  ;;  %v3797_v2 = vld [vmem:[%s3930_s23 + $0x20] sm:$0xff] }
 0x2d0   : > { %v5380_v44 = vpop.permute.xlu1 %1142  ;;  %v5382_v15 = vpop.permute.xlu0 %1140 }
 0x2d1   : > { %8599 = vst [vmem:[#allocation122_spill] sm:$0xff] %v5380_v44  ;;  %v1384_v44 = vsel %vm1382_vm7, %v1351_v38, %v8606_v20  ;;  %v8608_v20 = vld [vmem:[#allocation92_spill] sm:$0xff] }
 0x2d2   : > { %8600 = vst [vmem:[#allocation155_spill] sm:$0xff] %v5382_v15  ;;  %v1417_v15 = vsel %vm1415_vm6, %v1384_v44, %v4995_v52  ;;  %v1319_v52 = vsel %vm1316_vm4, %v1286_v14, %v8608_v20  ;;  %v8609_v44 = vld [vmem:[#allocation126_spill] sm:$0xff]  ;;  %v8611_v14 = vld [vmem:[#allocation51_spill] sm:$0xff] }
 0x2d3   : > { %v1287_v20 = vsel %vm1283_vm3, %v3797_v2, %v8611_v14  ;;  %v3798_v2 = vld [vmem:[%s3930_s23 + $0x30] sm:$0xff]  ;;  %v8615_v14 = vld [vmem:[#allocation34_spill] sm:$0xff] }
 0x2d8   : > { %v5384_v55 = vpop.permute.xlu1 %1148  ;;  %v5386_v3 = vpop.permute.xlu0 %1146 }
 0x2d9   : > { %8601 = vst [vmem:[#allocation200_spill] sm:$0xff] %v5384_v55  ;;  %v1450_v55 = vsel %vm1448_vm8, %v1417_v15, %v5081_v25  ;;  %v1352_v25 = vsel %vm1349_vm5, %v1319_v52, %v8609_v44  ;;  %v8610_v15 = vld [vmem:[#allocation33_spill] sm:$0xff]  ;;  %v8612_v52 = vld [vmem:[#allocation82_spill] sm:$0xff] }
 0x2da   : > { %8602 = vst [vmem:[#allocation201_spill] sm:$0xff] %v5386_v3  ;;  %v1483_v3 = vsel %vm1481_vm10, %v1450_v55, %v5257_v60  ;;  %v1385_v60 = vsel %vm1382_vm7, %v1352_v25, %v8610_v15  ;;  %v5414_v55 = vpop.permute.xlu2 %1199  ;;  %v8613_v44 = vld [vmem:[#allocation125_spill] sm:$0xff]  ;;  %v8614_v25 = vld [vmem:[#allocation156_spill] sm:$0xff] }
 0x2e0   : > { %v1192_v8 = vpop.permute.xlu1 %1191  ;;  %v1190_v7 = vpop.permute.xlu0 %1189 }
 0x2e1   : > { %v1516_v27 = vsel %vm1514_vm9, %v1483_v3, %v1190_v7  ;;  %v1418_v3 = vsel %vm1415_vm6, %v1385_v60, %v4993_v50  ;;  %v1320_v50 = vsel %vm1316_vm4, %v1287_v20, %v8612_v52  ;;  %v1288_v20 = vsel %vm1283_vm3, %v3798_v2, %v8615_v14  ;;  %v8617_v52 = vld [vmem:[#allocation115_spill] sm:$0xff] }
 0x2e2   : > { %3677 = vmatmul.msk.f32.gmra.mxu0 %vm1556_vm11, %v1516_v27  ;;  %v1451_v13 = vsel %vm1448_vm8, %v1418_v3, %v5133_v22  ;;  %v1353_v22 = vsel %vm1349_vm5, %v1320_v50, %v8613_v44  ;;  %v5437_v60 = vpop.permute.xlu2 %1205 }
 0x2e3   : > { %v1484_v34 = vsel %vm1481_vm10, %v1451_v13, %v5219_v47  ;;  %v1386_v47 = vsel %vm1382_vm7, %v1353_v22, %v8614_v25 }
 0x2e4   : > { %v1517_v27 = vsel %vm1514_vm9, %v1484_v34, %v1192_v8  ;;  %v1419_v15 = vsel %vm1415_vm6, %v1386_v47, %v4955_v1  ;;  %v8616_v1 = vld [vmem:[#allocation96_spill] sm:$0xff] }
 0x2e5   : > { %v1452_v8 = vsel %vm1448_vm8, %v1419_v15, %v5131_v28  ;;  %v1321_v28 = vsel %vm1316_vm4, %v1288_v20, %v8616_v1  ;;  %v8622_v1 = vld [vmem:[#allocation149_spill] sm:$0xff] }
 0x2e6   : > { %v1485_v3 = vsel %vm1481_vm10, %v1452_v8, %v5271_v4  ;;  %v1354_v50 = vsel %vm1349_vm5, %v1321_v28, %v8617_v52  ;;  %v8618_v4 = vld [vmem:[#allocation48_spill] sm:$0xff] }
 0x2e7   : > { %v1387_v44 = vsel %vm1382_vm7, %v1354_v50, %v8618_v4 }
 0x2e8   : > { %v1198_v38 = vpop.permute.xlu1 %1197  ;;  %v1196_v7 = vpop.permute.xlu0 %1195  ;;  %v1420_v22 = vsel %vm1415_vm6, %v1387_v44, %v5007_v49 }
 0x2ea   : > { %3678 = vmatmul.msk.f32.gmra.mxu0 %vm1556_vm11, %v1517_v27  ;;  %v1518_v27 = vsel %vm1514_vm9, %v1485_v3, %v1194_v61  ;;  %v1453_v61 = vsel %vm1448_vm8, %v1420_v22, %v5093_v36  ;;  %v3799_v3 = vld [vmem:[%s3930_s23 + $0x38] sm:$0xff]  ;;  %v5470_v14 = vpop.permute.xlu2 %1211  ;;  %v8620_v36 = vld [vmem:[#allocation95_spill] sm:$0xff]  ;;  %v3800_v22 = vld [vmem:[%s3930_s23 + $0xc8] sm:$0xff] }
 0x2eb   : > { %v1486_v25 = vsel %vm1481_vm10, %v1453_v61, %v5269_v29  ;;  %v8621_v29 = vld [vmem:[#allocation129_spill] sm:$0xff]  ;;  %v8623_v61 = vld [vmem:[#allocation56_spill] sm:$0xff] }
 0x2ec   : > { %v1519_v8 = vsel %vm1514_vm9, %v1486_v25, %v1196_v7  ;;  %v1301_v25 = vsel %vm1283_vm3, %v3800_v22, %v8623_v61 }
 0x2f0   : > { %v5441_v13 = vpop.permute.xlu1 %1203  ;;  %v5443_v34 = vpop.permute.xlu0 %1201 }
 0x2f2   : > { %3679 = vmatmul.msk.f32.gmra.mxu0 %vm1556_vm11, %v1518_v27  ;;  %v8619_v27 = vld [vmem:[#allocation37_spill] sm:$0xff] }
 0x2f3   : > { %v1289_v2 = vsel %vm1283_vm3, %v3799_v3, %v8619_v27  ;;  %v8624_v3 = vld [vmem:[#allocation58_spill] sm:$0xff] }
 0x2f4   : > { %v1322_v49 = vsel %vm1316_vm4, %v1289_v2, %v8620_v36 }
 0x2f5   : > { %v1355_v20 = vsel %vm1349_vm5, %v1322_v49, %v8621_v29  ;;  %v8628_v29 = vld [vmem:[#allocation141_spill] sm:$0xff] }
 0x2f6   : > { %v1388_v28 = vsel %vm1382_vm7, %v1355_v20, %v8622_v1  ;;  %v5505_v1 = vpop.permute.xlu2 %1217 }
 0x2f7   : > { %v1421_v7 = vsel %vm1415_vm6, %v1388_v28, %v5005_v63  ;;  %v8625_v63 = vld [vmem:[#allocation85_spill] sm:$0xff] }
 0x2f8   : > { %v5462_v47 = vpop.permute.xlu1 %1209  ;;  %v5464_v15 = vpop.permute.xlu0 %1207  ;;  %v1454_v52 = vsel %vm1448_vm8, %v1421_v7, %v5145_v41  ;;  %v8629_v28 = vld [vmem:[#allocation157_spill] sm:$0xff] }
 0x2f9   : > { %v1487_v50 = vsel %vm1481_vm10, %v1454_v52, %v5231_v0  ;;  %v8626_v0 = vld [vmem:[#allocation107_spill] sm:$0xff] }
 0x2fa   : > { %3680 = vmatmul.msk.f32.gmra.mxu0 %vm1556_vm11, %v1519_v8  ;;  %v1520_v44 = vsel %vm1514_vm9, %v1487_v50, %v1198_v38  ;;  %v3801_v8 = vld [vmem:[%s3930_s23 + $0x48] sm:$0xff]  ;;  %v1334_v36 = vsel %vm1316_vm4, %v1301_v25, %v8626_v0  ;;  %v8627_v38 = vld [vmem:[#allocation128_spill] sm:$0xff]  ;;  %v8630_v52 = vld [vmem:[#allocation159_spill] sm:$0xff] }
 0x2fb   : > { %v1290_v27 = vsel %vm1283_vm3, %v3801_v8, %v8624_v3  ;;  %v1367_v20 = vsel %vm1349_vm5, %v1334_v36, %v8628_v29  ;;  %v8632_v36 = vld [vmem:[#allocation78_spill] sm:$0xff] }
 0x2fc   : > { %v1323_v41 = vsel %vm1316_vm4, %v1290_v27, %v8625_v63  ;;  %v1400_v7 = vsel %vm1382_vm7, %v1367_v20, %v8629_v28  ;;  %v8636_v20 = vld [vmem:[#allocation140_spill] sm:$0xff] }
 0x2fd   : > { %v1356_v49 = vsel %vm1349_vm5, %v1323_v41, %v8627_v38  ;;  %v1433_v22 = vsel %vm1415_vm6, %v1400_v7, %v5053_v17  ;;  %v3802_v41 = vld [vmem:[%s3930_s23 + $0x50] sm:$0xff]  ;;  %v8631_v17 = vld [vmem:[#allocation57_spill] sm:$0xff] }
 0x2fe   : > { %v1389_v50 = vsel %vm1382_vm7, %v1356_v49, %v8630_v52  ;;  %v1466_v25 = vsel %vm1448_vm8, %v1433_v22, %v5200_v40  ;;  %v1291_v0 = vsel %vm1283_vm3, %v3802_v41, %v8631_v17  ;;  %v8634_v38 = vld [vmem:[#allocation99_spill] sm:$0xff]  ;;  %v8635_v49 = vld [vmem:[#allocation118_spill] sm:$0xff]  ;;  %v3805_v17 = vld [vmem:[%s3930_s23 + $0xe0] sm:$0xff] }
 0x2ff   : > { %v1499_v8 = vsel %vm1481_vm10, %v1466_v25, %v5282_v53  ;;  %v8633_v53 = vld [vmem:[#allocation97_spill] sm:$0xff]  ;;  %v8637_v52 = vld [vmem:[#allocation158_spill] sm:$0xff]  ;;  %v1224_v25 = vpop.permute.xlu2 %1223 }
 0x300   : > { %v5485_v4 = vpop.permute.xlu1 %1215  ;;  %v5494_v2 = vpop.permute.xlu0 %1213 }
 0x302   : > { %3681 = vmatmul.msk.f32.gmra.mxu0 %vm1556_vm11, %v1520_v44  ;;  %v1422_v44 = vsel %vm1415_vm6, %v1389_v50, %v4967_v24 }
 0x303   : > { %v1455_v61 = vsel %vm1448_vm8, %v1422_v44, %v5143_v5  ;;  %v3803_v5 = vld [vmem:[%s3930_s23 + $0xd8] sm:$0xff] }
 0x304   : > { %v1488_v3 = vsel %vm1481_vm10, %v1455_v61, %v5286_v26  ;;  %v1302_v40 = vsel %vm1283_vm3, %v3803_v5, %v8632_v36  ;;  %v8642_v5 = vld [vmem:[#allocation130_spill] sm:$0xff] }
 0x305   : > { %v1521_v63 = vsel %vm1514_vm9, %v1488_v3, %v5414_v55  ;;  %v1335_v26 = vsel %vm1316_vm4, %v1302_v40, %v8633_v53  ;;  %v1324_v55 = vsel %vm1316_vm4, %v1291_v0, %v8634_v38  ;;  %v8643_v40 = vld [vmem:[#allocation132_spill] sm:$0xff] }
 0x306   : > { %v1357_v29 = vsel %vm1349_vm5, %v1324_v55, %v8635_v49  ;;  %v1368_v28 = vsel %vm1349_vm5, %v1335_v26, %v8636_v20  ;;  %v8644_v26 = vld [vmem:[#allocation44_spill] sm:$0xff] }
 0x307   : > { %v1390_v50 = vsel %vm1382_vm7, %v1357_v29, %v8637_v52  ;;  %v1401_v44 = vsel %vm1382_vm7, %v1368_v28, %v4932_v32 }
 0x308   : > { %v1222_v27 = vpop.permute.xlu1 %1221  ;;  %v5542_v7 = vpop.permute.xlu0 %1219  ;;  %v1434_v22 = vsel %vm1415_vm6, %v1401_v44, %v5015_v19  ;;  %v1423_v61 = vsel %vm1415_vm6, %v1390_v50, %v5019_v30  ;;  %v8638_v30 = vld [vmem:[#allocation41_spill] sm:$0xff] }
 0x309   : > { %v1532_v24 = vsel %vm1514_vm9, %v1499_v8, %v1222_v27  ;;  %v1456_v8 = vsel %vm1448_vm8, %v1423_v61, %v5105_v43  ;;  %v1467_v3 = vsel %vm1448_vm8, %v1434_v22, %v5198_v62  ;;  %v8639_v43 = vld [vmem:[#allocation77_spill] sm:$0xff]  ;;  %v8640_v62 = vld [vmem:[#allocation98_spill] sm:$0xff]  ;;  %v3806_v22 = vld [vmem:[%s3930_s23 + $0xf0] sm:$0xff] }
 0x30a   : > { %3682 = vmatmul.msk.f32.gmra.mxu0 %vm1556_vm11, %v1521_v63  ;;  %3693 = vmatmul.msk.f32.vlgmr.msra.gmra.mxu3 %vm1556_vm11, %v1532_v24  ;;  %v1489_v27 = vsel %vm1481_vm10, %v1456_v8, %v5284_v16  ;;  %v1500_v63 = vsel %vm1481_vm10, %v1467_v3, %v5351_v51  ;;  %v3804_v24 = vld [vmem:[%s3930_s23 + $0x60] sm:$0xff]  ;;  %v1303_v0 = vsel %vm1283_vm3, %v3805_v17, %v8639_v43  ;;  %v8641_v51 = vld [vmem:[#allocation111_spill] sm:$0xff] }
 0x30b   : > { %v1522_v32 = vsel %vm1514_vm9, %v1489_v27, %v5443_v34  ;;  %v1533_v19 = vsel %vm1514_vm9, %v1500_v63, %v1224_v25  ;;  %v1292_v41 = vsel %vm1283_vm3, %v3804_v24, %v8638_v30  ;;  %v1336_v34 = vsel %vm1316_vm4, %v1303_v0, %v8641_v51  ;;  %v3807_v25 = vld [vmem:[%s3930_s23 + $0x68] sm:$0xff]  ;;  %v8649_v3 = vld [vmem:[#allocation131_spill] sm:$0xff]  ;;  %v8652_v30 = vld [vmem:[#allocation160_spill] sm:$0xff] }
 0x30c   : > { %v1325_v16 = vsel %vm1316_vm4, %v1292_v41, %v8640_v62  ;;  %v1369_v36 = vsel %vm1349_vm5, %v1336_v34, %v8642_v5  ;;  %v8650_v63 = vld [vmem:[#allocation146_spill] sm:$0xff] }
 0x30d   : > { %v1358_v53 = vsel %vm1349_vm5, %v1325_v16, %v8643_v40  ;;  %v1402_v55 = vsel %vm1382_vm7, %v1369_v36, %v4930_v9  ;;  %v3808_v36 = vld [vmem:[%s3930_s23 + $0x78] sm:$0xff] }
 0x30e   : > { %v1391_v38 = vsel %vm1382_vm7, %v1358_v53, %v8644_v26  ;;  %v1435_v29 = vsel %vm1415_vm6, %v1402_v55, %v5073_v57  ;;  %v8645_v57 = vld [vmem:[#allocation61_spill] sm:$0xff]  ;;  %v3809_v53 = vld [vmem:[%s3930_s23 + $0xf8] sm:$0xff] }
 0x30f   : > { %v1424_v49 = vsel %vm1415_vm6, %v1391_v38, %v5017_v23  ;;  %v1468_v28 = vsel %vm1448_vm8, %v1435_v29, %v5156_v42  ;;  %v1304_v61 = vsel %vm1283_vm3, %v3806_v22, %v8645_v57  ;;  %v8646_v42 = vld [vmem:[#allocation63_spill] sm:$0xff]  ;;  %v8657_v38 = vld [vmem:[#allocation121_spill] sm:$0xff] }
 0x310   : > { %v1226_v20 = vpop.permute.xlu0 %1225  ;;  %v1457_v52 = vsel %vm1448_vm8, %v1424_v49, %v5160_v11  ;;  %v1501_v44 = vsel %vm1481_vm10, %v1468_v28, %v5349_v10  ;;  %v1293_v8 = vsel %vm1283_vm3, %v3807_v25, %v8646_v42  ;;  %v8647_v11 = vld [vmem:[#allocation88_spill] sm:$0xff]  ;;  %v8648_v10 = vld [vmem:[#allocation110_spill] sm:$0xff]  ;;  %v1228_v0 = vpop.permute.xlu1 %1227  ;;  %v8658_v49 = vld [vmem:[#allocation145_spill] sm:$0xff] }
 0x311   : > { %v1490_v50 = vsel %vm1481_vm10, %v1457_v52, %v5243_v12  ;;  %v1534_v23 = vsel %vm1514_vm9, %v1501_v44, %v1226_v20  ;;  %v1326_v12 = vsel %vm1316_vm4, %v1293_v8, %v8647_v11  ;;  %v3880_v20 = vmov 0.0   ;;  %v8659_v28 = vld [vmem:[#allocation59_spill] sm:$0xff]  ;;  %v3811_v42 = vld [vmem:[%s3930_s23 + $0x108] sm:$0xff] }
 0x312   : > { %3683 = vmatmul.msk.f32.gmra.mxu0 %vm1556_vm11, %v1522_v32  ;;  %3694 = vmatmul.msk.f32.gmra.mxu3 %vm1556_vm11, %v1533_v19  ;;  %v1523_v9 = vsel %vm1514_vm9, %v1490_v50, %v5441_v13  ;;  %v1337_v13 = vsel %vm1316_vm4, %v1304_v61, %v8648_v10  ;;  %v1359_v27 = vsel %vm1349_vm5, %v1326_v12, %v8649_v3  ;;  %v8651_v19 = vld [vmem:[#allocation66_spill] sm:$0xff]  ;;  %v8660_v61 = vld [vmem:[#allocation45_spill] sm:$0xff]  ;;  %v8665_v3 = vld [vmem:[#allocation135_spill] sm:$0xff] }
 0x313   : > { %v1370_v32 = vsel %vm1349_vm5, %v1337_v13, %v8650_v63  ;;  %v1392_v41 = vsel %vm1382_vm7, %v1359_v27, %v8652_v30  ;;  %1802 = vst.msk [vmem:[#allocation2] sm:$0xff] %vm1316_vm4, %v3880_v20  ;;  %v8663_v11 = vld [vmem:[#allocation114_spill] sm:$0xff]  ;;  %v8664_v10 = vld [vmem:[#allocation133_spill] sm:$0xff] }
 0x314   : > { %v1403_v24 = vsel %vm1382_vm7, %v1370_v32, %v8651_v19  ;;  %v1425_v17 = vsel %vm1415_vm6, %v1392_v41, %v4979_v37  ;;  %1803 = vst.msk [vmem:[#allocation2 + $0x8] sm:$0xff] %vm1316_vm4, %v3880_v20  ;;  %v8666_v63 = vld [vmem:[#allocation153_spill] sm:$0xff]  ;;  %v8668_v41 = vld [vmem:[#allocation183_spill] sm:$0xff] }
 0x315   : > { %v1436_v43 = vsel %vm1415_vm6, %v1403_v24, %v5071_v31  ;;  %v1458_v62 = vsel %vm1448_vm8, %v1425_v17, %v5158_v6  ;;  %v8653_v31 = vld [vmem:[#allocation62_spill] sm:$0xff]  ;;  %v8654_v6 = vld [vmem:[#allocation81_spill] sm:$0xff]  ;;  %1807 = vst.msk [vmem:[#allocation2 + $0x198] sm:$0xff] %vm1316_vm4, %v3880_v20  ;;  %v8667_v24 = vld [vmem:[#allocation175_spill] sm:$0xff] }
 0x316   : > { %v1469_v16 = vsel %vm1448_vm8, %v1436_v43, %v5211_v48  ;;  %v1491_v34 = vsel %vm1481_vm10, %v1458_v62, %v5312_v59  ;;  %v1294_v40 = vsel %vm1283_vm3, %v3808_v36, %v8653_v31  ;;  %v1305_v26 = vsel %vm1283_vm3, %v3809_v53, %v8654_v6  ;;  %v8655_v48 = vld [vmem:[#allocation100_spill] sm:$0xff]  ;;  %v8656_v59 = vld [vmem:[#allocation102_spill] sm:$0xff]  ;;  %1808 = vst.msk [vmem:[#allocation2 + $0x1a0] sm:$0xff] %vm1316_vm4, %v3880_v20  ;;  %v3812_v31 = vld [vmem:[%s3930_s23 + $0x110] sm:$0xff] }
 0x317   : > { %v1502_v51 = vsel %vm1481_vm10, %v1469_v16, %v5308_v45  ;;  %v1524_v5 = vsel %vm1514_vm9, %v1491_v34, %v5437_v60  ;;  %v1338_v45 = vsel %vm1316_vm4, %v1305_v26, %v8655_v48  ;;  %v1327_v60 = vsel %vm1316_vm4, %v1294_v40, %v8656_v59  ;;  %1828 = vst.msk [vmem:[#allocation2 + $0x29] sm:$0x1] %vm1811_vm12, %v3880_v20  ;;  %v8670_v16 = vld [vmem:[#allocation193_spill] sm:$0xff]  ;;  %v8672_v40 = vld [vmem:[#allocation67_spill] sm:$0xff] }
 0x318   : > { %v1535_v37 = vsel %vm1514_vm9, %v1502_v51, %v1228_v0  ;;  %v1360_v55 = vsel %vm1349_vm5, %v1327_v60, %v8657_v38  ;;  %v1371_v29 = vsel %vm1349_vm5, %v1338_v45, %v8658_v49  ;;  %1812 = vst.msk [vmem:[#allocation2 + $0x18] sm:$0x1] %vm1811_vm12, %v3880_v20  ;;  %v1232_v43 = vpop.permute.xlu0 %1231  ;;  %v8669_v0 = vld [vmem:[#allocation191_spill] sm:$0xff]  ;;  %v8671_v51 = vld [vmem:[#allocation49_spill] sm:$0xff]  ;;  %v1307_v53 = vsel %vm1283_vm3, %v3812_v31, %v8672_v40  ;;  %v8676_v60 = vld [vmem:[#allocation134_spill] sm:$0xff] }
 0x319   : > { %v1393_v52 = vsel %vm1382_vm7, %v1360_v55, %v8659_v28  ;;  %v1404_v50 = vsel %vm1382_vm7, %v1371_v29, %v4947_v58  ;;  %1813 = vst.msk [vmem:[#allocation2 + $0x30] sm:$0x1] %vm1811_vm12, %v3880_v20  ;;  %v3813_v6 = vld [vmem:[%s3930_s23 + $0x90] sm:$0xff]  ;;  %v8673_v26 = vld [vmem:[#allocation69_spill] sm:$0xff]  ;;  %v8677_v55 = vld [vmem:[#allocation148_spill] sm:$0xff] }
 0x31a   : > { %3684 = vmatmul.msk.f32.gmra.mxu0 %vm1556_vm11, %v1523_v9  ;;  %3695 = vmatmul.msk.f32.gmra.mxu3 %vm1556_vm11, %v1534_v23  ;;  %v1437_v44 = vsel %vm1415_vm6, %v1404_v50, %v5027_v54  ;;  %v1426_v9 = vsel %vm1415_vm6, %v1393_v52, %v5031_v56  ;;  %v1230_v23 = vpop.permute.xlu2 %1229  ;;  %1814 = vst.msk [vmem:[#allocation2 + $0x48] sm:$0x1] %vm1811_vm12, %v3880_v20  ;;  %v8675_v45 = vld [vmem:[#allocation113_spill] sm:$0xff]  ;;  %v8678_v29 = vld [vmem:[#allocation64_spill] sm:$0xff]  ;;  %v8679_v52 = vld [vmem:[#allocation162_spill] sm:$0xff] }
 0x31b   : > { %v1459_v22 = vsel %vm1448_vm8, %v1426_v9, %v5117_v21  ;;  %v1470_v58 = vsel %vm1448_vm8, %v1437_v44, %v5209_v46  ;;  %v3810_v46 = vld [vmem:[%s3930_s23 + $0x80] sm:$0xff]  ;;  %1815 = vst.msk [vmem:[#allocation2 + $0x60] sm:$0x1] %vm1811_vm12, %v3880_v20  ;;  %v1296_v48 = vsel %vm1283_vm3, %v3813_v6, %v8673_v26  ;;  %v1340_v59 = vsel %vm1316_vm4, %v1307_v53, %v8675_v45  ;;  %v8697_v40 = vld [vmem:[#allocation40_spill] sm:$0xff] }
 0x31c   : > { %v1492_v54 = vsel %vm1481_vm10, %v1459_v22, %v5310_v39  ;;  %v1503_v56 = vsel %vm1481_vm10, %v1470_v58, %v5372_v18  ;;  %v1295_v25 = vsel %vm1283_vm3, %v3810_v46, %v8660_v61  ;;  %v8661_v39 = vld [vmem:[#allocation80_spill] sm:$0xff]  ;;  %v8662_v18 = vld [vmem:[#allocation101_spill] sm:$0xff]  ;;  %1816 = vst.msk [vmem:[#allocation2 + $0x78] sm:$0x1] %vm1811_vm12, %v3880_v20  ;;  %v1373_v49 = vsel %vm1349_vm5, %v1340_v59, %v8677_v55  ;;  %v1234_v58 = vpop.permute.xlu1 %1233  ;;  %v8684_v46 = vld [vmem:[#allocation54_spill] sm:$0xff] }
 0x31d   : > { %v1525_v57 = vsel %vm1514_vm9, %v1492_v54, %v5464_v15  ;;  %v1536_v21 = vsel %vm1514_vm9, %v1503_v56, %v1230_v23  ;;  %v1306_v8 = vsel %vm1283_vm3, %v3811_v42, %v8661_v39  ;;  %v1328_v15 = vsel %vm1316_vm4, %v1295_v25, %v8662_v18  ;;  %1817 = vst.msk [vmem:[#allocation2 + $0x90] sm:$0x1] %vm1811_vm12, %v3880_v20  ;;  %v8680_v44 = vld [vmem:[#allocation173_spill] sm:$0xff]  ;;  %v8681_v23 = vld [vmem:[#allocation182_spill] sm:$0xff]  ;;  %v8682_v54 = vld [vmem:[#allocation192_spill] sm:$0xff] }
 0x31e   : > { %v1339_v12 = vsel %vm1316_vm4, %v1306_v8, %v8663_v11  ;;  %v1361_v27 = vsel %vm1349_vm5, %v1328_v15, %v8665_v3  ;;  %1818 = vst.msk [vmem:[#allocation2 + $0xa8] sm:$0x1] %vm1811_vm12, %v3880_v20  ;;  %v1406_v28 = vsel %vm1382_vm7, %v1373_v49, %v8678_v29  ;;  %v8685_v25 = vld [vmem:[#allocation65_spill] sm:$0xff]  ;;  %v3814_v18 = vld [vmem:[%s3930_s23 + $0x98] sm:$0xff]  ;;  %v8700_v55 = vld [vmem:[#allocation50_spill] sm:$0xff] }
 0x31f   : > { %v1372_v13 = vsel %vm1349_vm5, %v1339_v12, %v8664_v10  ;;  %v1394_v32 = vsel %vm1382_vm7, %v1361_v27, %v8666_v63  ;;  %1819 = vst.msk [vmem:[#allocation2 + $0xc0] sm:$0x1] %vm1811_vm12, %v3880_v20  ;;  %v1439_v22 = vsel %vm1415_vm6, %v1406_v28, %v8681_v23  ;;  %v8686_v15 = vld [vmem:[#allocation68_spill] sm:$0xff]  ;;  %v3815_v12 = vld [vmem:[%s3930_s23 + $0x120] sm:$0xff]  ;;  %v3817_v29 = vld [vmem:[%s3930_s23 + $0x128] sm:$0xff] }
 0x320   : > { %v1405_v19 = vsel %vm1382_vm7, %v1372_v13, %v4945_v33  ;;  %v1427_v30 = vsel %vm1415_vm6, %v1394_v32, %v8667_v24  ;;  %1820 = vst.msk [vmem:[#allocation2 + $0xd8] sm:$0x1] %vm1811_vm12, %v3880_v20  ;;  %v1297_v11 = vsel %vm1283_vm3, %v3814_v18, %v8686_v15  ;;  %v8687_v10 = vld [vmem:[#allocation84_spill] sm:$0xff]  ;;  %v8689_v27 = vld [vmem:[#allocation105_spill] sm:$0xff]  ;;  %v8701_v28 = vld [vmem:[#allocation83_spill] sm:$0xff] }
 0x321   : > { %v1438_v17 = vsel %vm1415_vm6, %v1405_v19, %v8668_v41  ;;  %v1460_v33 = vsel %vm1448_vm8, %v1427_v30, %v8670_v16  ;;  %1821 = vst.msk [vmem:[#allocation2 + $0xf0] sm:$0x1] %vm1811_vm12, %v3880_v20  ;;  %v1308_v13 = vsel %vm1283_vm3, %v3815_v12, %v8687_v10  ;;  %v1330_v63 = vsel %vm1316_vm4, %v1297_v11, %v8689_v27  ;;  %v5799_v32 = vld [vmem:[%s8120_s2] ss:$0 sm:$0xff]  ;;  %v8690_v19 = vld [vmem:[#allocation124_spill] sm:$0xff]  ;;  %v8691_v30 = vld [vmem:[#allocation147_spill] sm:$0xff]  ;;  %v1238_v12 = vpop.permute.xlu0 %1237 }
 0x322   : > { %3685 = vmatmul.msk.f32.gmra.mxu0 %vm1556_vm11, %v1524_v5  ;;  %3696 = vmatmul.msk.f32.gmra.mxu3 %vm1556_vm11, %v1535_v37  ;;  %v1471_v62 = vsel %vm1448_vm8, %v1438_v17, %v8669_v0  ;;  %v1493_v34 = vsel %vm1481_vm10, %v1460_v33, %v8671_v51  ;;  %1822 = vst.msk [vmem:[#allocation2 + $0x108] sm:$0x1] %vm1811_vm12, %v3880_v20  ;;  %v8692_v17 = vld [vmem:[#allocation161_spill] sm:$0xff]  ;;  %v8693_v0 = vld [vmem:[#allocation168_spill] sm:$0xff]  ;;  %v8695_v51 = vld [vmem:[#allocation178_spill] sm:$0xff] }
 0x323   : > { %v1504_v5 = vsel %vm1481_vm10, %v1471_v62, %v5370_v35  ;;  %v1526_v37 = vsel %vm1514_vm9, %v1493_v34, %v5462_v47  ;;  %v8674_v35 = vld [vmem:[#allocation91_spill] sm:$0xff]  ;;  %1823 = vst.msk [vmem:[#allocation2 + $0x120] sm:$0x1] %vm1811_vm12, %v3880_v20  ;;  %v1363_v24 = vsel %vm1349_vm5, %v1330_v63, %v8690_v19  ;;  %v8694_v16 = vld [vmem:[#allocation176_spill] sm:$0xff]  ;;  %v5854_v23 = vld [vmem:[#allocation2] sm:$0xff] }
 0x324   : > { %v1537_v36 = vsel %vm1514_vm9, %v1504_v5, %v1232_v43  ;;  %v1329_v47 = vsel %vm1316_vm4, %v1296_v48, %v8674_v35  ;;  %1824 = vst.msk [vmem:[#allocation2 + $0x138] sm:$0x1] %vm1811_vm12, %v3880_v20  ;;  %v1396_v43 = vsel %vm1382_vm7, %v1363_v24, %v8692_v17  ;;  %v1236_v5 = vpop.permute.xlu2 %1235  ;;  %v8698_v26 = vld [vmem:[#allocation60_spill] sm:$0xff]  ;;  %v8699_v35 = vld [vmem:[#allocation79_spill] sm:$0xff]  ;;  %v8709_v15 = vld [vmem:[#allocation185_spill] sm:$0xff] }
 0x325   : > { %v1362_v38 = vsel %vm1349_vm5, %v1329_v47, %v8676_v60  ;;  %1825 = vst.msk [vmem:[#allocation2 + $0x150] sm:$0x1] %vm1811_vm12, %v3880_v20  ;;  %v1429_v34 = vsel %vm1415_vm6, %v1396_v43, %v8695_v51  ;;  %v8712_v63 = vld [vmem:[#allocation53_spill] sm:$0xff]  ;;  %v8713_v24 = vld [vmem:[#allocation47_spill] sm:$0xff]  ;;  %v3818_v43 = vld [vmem:[%s3930_s23 + $0x138] sm:$0xff] }
 0x326   : > { %v1395_v50 = vsel %vm1382_vm7, %v1362_v38, %v8679_v52  ;;  %1826 = vst.msk [vmem:[#allocation2 + $0x168] sm:$0x1] %vm1811_vm12, %v3880_v20  ;;  %v3816_v38 = vld [vmem:[%s3930_s23 + $0xa8] sm:$0xff]  ;;  %v1309_v52 = vsel %vm1283_vm3, %v3817_v29, %v8701_v28  ;;  %v8725_v29 = vld [vmem:[#allocation39_spill] sm:$0xff] }
 0x327   : > { %v1428_v9 = vsel %vm1415_vm6, %v1395_v50, %v8680_v44  ;;  %1827 = vst.msk [vmem:[#allocation2 + $0x180] sm:$0x1] %vm1811_vm12, %v3880_v20  ;;  %v1298_v49 = vsel %vm1283_vm3, %v3816_v38, %v8700_v55  ;;  %v8703_v44 = vld [vmem:[#allocation117_spill] sm:$0xff]  ;;  %v1240_v38 = vpop.permute.xlu1 %1239  ;;  %v8724_v55 = vld [vmem:[#allocation195_spill] sm:$0xff] }
 0x328   : > { %v1461_v56 = vsel %vm1448_vm8, %v1428_v9, %v8682_v54  ;;  %1829 = vst.msk [vmem:[#allocation2 + $0x41] sm:$0x1] %vm1811_vm12, %v3880_v20  ;;  %v1342_v9 = vsel %vm1316_vm4, %v1309_v52, %v8703_v44  ;;  %v8726_v52 = vld [vmem:[#allocation70_spill] sm:$0xff] }
 0x329   : > { %v1494_v42 = vsel %vm1481_vm10, %v1461_v56, %v8685_v25  ;;  %1830 = vst.msk [vmem:[#allocation2 + $0x59] sm:$0x1] %vm1811_vm12, %v3880_v20  ;;  %v8705_v56 = vld [vmem:[#allocation138_spill] sm:$0xff] }
 0x32a   : > { %3686 = vmatmul.msk.f32.gmra.mxu0 %vm1556_vm11, %v1525_v57  ;;  %3697 = vmatmul.msk.f32.gmra.mxu3 %vm1556_vm11, %v1536_v21  ;;  %v8683_v57 = vld [vmem:[#allocation35_spill] sm:$0xff]  ;;  %v1527_v39 = vsel %vm1514_vm9, %v1494_v42, %v5470_v14  ;;  %1831 = vst.msk [vmem:[#allocation2 + $0x71] sm:$0x1] %vm1811_vm12, %v3880_v20 }
 0x32b   : > { %v1472_v21 = vsel %vm1448_vm8, %v1439_v22, %v8683_v57  ;;  %v8688_v14 = vld [vmem:[#allocation103_spill] sm:$0xff]  ;;  %1832 = vst.msk [vmem:[#allocation2 + $0x89] sm:$0x1] %vm1811_vm12, %v3880_v20  ;;  %v5856_v22 = vld [vmem:[#allocation2 + $0x8] sm:$0xff] }
 0x32c   : > { %v1505_v61 = vsel %vm1481_vm10, %v1472_v21, %v8684_v46  ;;  %v1341_v3 = vsel %vm1316_vm4, %v1308_v13, %v8688_v14  ;;  %1833 = vst.msk [vmem:[#allocation2 + $0xa1] sm:$0x1] %vm1811_vm12, %v3880_v20  ;;  %v1978_v21 = vrot.slane %v5854_v23, 1  ;;  %v1979_v46 = vrot.slane %v5856_v22, 1  ;;  %v8707_v42 = vld [vmem:[#allocation167_spill] sm:$0xff]  ;;  %v8710_v13 = vld [vmem:[#allocation194_spill] sm:$0xff] }
 0x32d   : > { %v1538_v8 = vsel %vm1514_vm9, %v1505_v61, %v1234_v58  ;;  %v1374_v41 = vsel %vm1349_vm5, %v1341_v3, %v8691_v30  ;;  %1834 = vst.msk [vmem:[#allocation2 + $0xb9] sm:$0x1] %vm1811_vm12, %v3880_v20  ;;  %v8704_v58 = vld [vmem:[#allocation136_spill] sm:$0xff]  ;;  %v8706_v61 = vld [vmem:[#allocation55_spill] sm:$0xff] }
 0x32e   : > { %v1407_v62 = vsel %vm1382_vm7, %v1374_v41, %v8693_v0  ;;  %1835 = vst.msk [vmem:[#allocation2 + $0xd1] sm:$0x1] %vm1811_vm12, %v3880_v20  ;;  %v1375_v54 = vsel %vm1349_vm5, %v1342_v9, %v8704_v58  ;;  %v1980_v10 = vsel %vm327_vm0, %v1978_v21, %v1979_v46  ;;  %v8711_v3 = vld [vmem:[#allocation196_spill] sm:$0xff]  ;;  %v3820_v58 = vld [vmem:[%s3930_s23 + $0xc0] sm:$0xff]  ;;  %v8729_v21 = vld [vmem:[#allocation87_spill] sm:$0xff] }
 0x32f   : > { %v1440_v33 = vsel %vm1415_vm6, %v1407_v62, %v8694_v16  ;;  %1836 = vst.msk [vmem:[#allocation2 + $0xe9] sm:$0x1] %vm1811_vm12, %v3880_v20  ;;  %2058 = vrot.lane.b32.xlu1 %v1980_v10, %s3873_s25  ;;  %v8714_v0 = vld [vmem:[#allocation72_spill] sm:$0xff]  ;;  %v3819_v16 = vld [vmem:[%s3930_s23 + $0xb0] sm:$0xff] }
 0x330   : > { %v1473_v53 = vsel %vm1448_vm8, %v1440_v33, %v8697_v40  ;;  %1837 = vst.msk [vmem:[#allocation2 + $0x101] sm:$0x1] %vm1811_vm12, %v3880_v20  ;;  %v1310_v62 = vsel %vm1283_vm3, %v3818_v43, %v8714_v0  ;;  %v8715_v33 = vld [vmem:[#allocation74_spill] sm:$0xff]  ;;  %v8719_v40 = vld [vmem:[#allocation151_spill] sm:$0xff] }
 0x331   : > { %v1506_v47 = vsel %vm1481_vm10, %v1473_v53, %v8699_v35  ;;  %1838 = vst.msk [vmem:[#allocation2 + $0x119] sm:$0x1] %vm1811_vm12, %v3880_v20  ;;  %v1299_v51 = vsel %vm1283_vm3, %v3819_v16, %v8715_v33  ;;  %v8738_v43 = vld [vmem:[#allocation190_spill] sm:$0xff]  ;;  %v8740_v33 = vld [vmem:[#allocation71_spill] sm:$0xff] }
 0x332   : > { %3687 = vmatmul.msk.f32.gmra.mxu0 %vm1556_vm11, %v1526_v37  ;;  %3698 = vmatmul.msk.f32.gmra.mxu3 %vm1556_vm11, %v1537_v36  ;;  %v8696_v36 = vld [vmem:[#allocation189_spill] sm:$0xff]  ;;  %v1539_v60 = vsel %vm1514_vm9, %v1506_v47, %v1236_v5  ;;  %1839 = vst.msk [vmem:[#allocation2 + $0x131] sm:$0x1] %vm1811_vm12, %v3880_v20  ;;  %v8722_v47 = vld [vmem:[#allocation174_spill] sm:$0xff] }
 0x333   : > { %v1462_v31 = vsel %vm1448_vm8, %v1429_v34, %v8696_v36  ;;  %1840 = vst.msk [vmem:[#allocation2 + $0x149] sm:$0x1] %vm1811_vm12, %v3880_v20  ;;  %v8716_v34 = vld [vmem:[#allocation94_spill] sm:$0xff]  ;;  %v8718_v36 = vld [vmem:[#allocation137_spill] sm:$0xff] }
 0x334   : > { %v1495_v48 = vsel %vm1481_vm10, %v1462_v31, %v8698_v26  ;;  %1841 = vst.msk [vmem:[#allocation2 + $0x161] sm:$0x1] %vm1811_vm12, %v3880_v20  ;;  %v1332_v5 = vsel %vm1316_vm4, %v1299_v51, %v8716_v34  ;;  %v8741_v34 = vld [vmem:[#allocation155_spill] sm:$0xff] }
 0x335   : > { %v1528_v59 = vsel %vm1514_vm9, %v1495_v48, %v5494_v2  ;;  %v8702_v2 = vld [vmem:[#allocation104_spill] sm:$0xff]  ;;  %1842 = vst.msk [vmem:[#allocation2 + $0x179] sm:$0x1] %vm1811_vm12, %v3880_v20  ;;  %v1365_v31 = vsel %vm1349_vm5, %v1332_v5, %v8718_v36  ;;  %v8721_v48 = vld [vmem:[#allocation165_spill] sm:$0xff]  ;;  %v8742_v36 = vld [vmem:[#allocation86_spill] sm:$0xff] }
 0x336   : > { %v1331_v50 = vsel %vm1316_vm4, %v1298_v49, %v8702_v2  ;;  %1843 = vst.msk [vmem:[#allocation2 + $0x191] sm:$0x1] %vm1811_vm12, %v3880_v20  ;;  %v1398_v35 = vsel %vm1382_vm7, %v1365_v31, %v8721_v48  ;;  %v8745_v48 = vld [vmem:[#allocation169_spill] sm:$0xff] }
 0x337   : > { %v1364_v57 = vsel %vm1349_vm5, %v1331_v50, %v8705_v56  ;;  %1805 = vst.msk [vmem:[#allocation2 + $0x10] sm:$0x3] %vm1804_vm13, %v3880_v20  ;;  %v8727_v50 = vld [vmem:[#allocation75_spill] sm:$0xff] }
 0x338   : > { %v1397_v25 = vsel %vm1382_vm7, %v1364_v57, %v8706_v61  ;;  %1809 = vst.msk [vmem:[#allocation2 + $0x1a8] sm:$0x3] %vm1804_vm13, %v3880_v20  ;;  %v3821_v57 = vld [vmem:[%s3930_s23 + $0x140] sm:$0xff] }
 0x339   : > { %v1311_v61 = vsel %vm1283_vm3, %v3821_v57, %v8729_v21  ;;  %v8753_v21 = vld [vmem:[#allocation186_spill] sm:$0xff] }
 0x33a   : > { %3688 = vmatmul.msk.f32.gmra.mxu0 %vm1556_vm11, %v1527_v39  ;;  %3699 = vmatmul.msk.f32.gmra.mxu3 %vm1556_vm11, %v1538_v8  ;;  %v1408_v39 = vsel %vm1382_vm7, %v1375_v54, %v8707_v42  ;;  %v8708_v8 = vld [vmem:[#allocation177_spill] sm:$0xff] }
 0x33b   : > { %v1430_v18 = vsel %vm1415_vm6, %v1397_v25, %v8708_v8  ;;  %v1441_v11 = vsel %vm1415_vm6, %v1408_v39, %v8709_v15  ;;  %v8728_v54 = vld [vmem:[#allocation73_spill] sm:$0xff]  ;;  %v8730_v25 = vld [vmem:[#allocation106_spill] sm:$0xff]  ;;  %v8731_v39 = vld [vmem:[#allocation108_spill] sm:$0xff] }
 0x33c   : > { %v1474_v14 = vsel %vm1448_vm8, %v1441_v11, %v8710_v13  ;;  %v1463_v27 = vsel %vm1448_vm8, %v1430_v18, %v8711_v3  ;;  %v1300_v56 = vsel %vm1283_vm3, %v3820_v58, %v8728_v54  ;;  %v1344_v42 = vsel %vm1316_vm4, %v1311_v61, %v8730_v25  ;;  %v8732_v18 = vld [vmem:[#allocation127_spill] sm:$0xff]  ;;  %v8733_v11 = vld [vmem:[#allocation150_spill] sm:$0xff]  ;;  %v8734_v13 = vld [vmem:[#allocation164_spill] sm:$0xff]  ;;  %v1246_v25 = vpop.permute.xlu1 %1245 }
 0x33d   : > { %v1496_v19 = vsel %vm1481_vm10, %v1463_v27, %v8712_v63  ;;  %v1507_v30 = vsel %vm1481_vm10, %v1474_v14, %v8713_v24  ;;  %v8735_v3 = vld [vmem:[#allocation170_spill] sm:$0xff]  ;;  %v8736_v63 = vld [vmem:[#allocation179_spill] sm:$0xff]  ;;  %v8737_v24 = vld [vmem:[#allocation180_spill] sm:$0xff] }
 0x33e   : > { %v1674_v37 = vpop.f32.mrf.mxu0  ;;  %v1529_v41 = vsel %vm1514_vm9, %v1496_v19, %v5485_v4  ;;  %v1540_v17 = vsel %vm1514_vm9, %v1507_v30, %v1238_v12  ;;  %v5944_v8 = vld [vmem:[#allocation2 + $0x10] sm:$0x3]  ;;  %v1377_v12 = vsel %vm1349_vm5, %v1344_v42, %v8733_v11  ;;  %v8751_v58 = vld [vmem:[#allocation152_spill] sm:$0xff] }
 0x33f   : > { %v1675_v6 = vadd.f32 %v5799_v32, %v1674_v37  ;;  %v8717_v37 = vld [vmem:[#allocation116_spill] sm:$0xff]  ;;  %v1981_v10 = vrot.slane %v5944_v8, 1  ;;  %v1410_v27 = vsel %vm1382_vm7, %v1377_v12, %v8735_v3  ;;  %v8754_v42 = vld [vmem:[#allocation43_spill] sm:$0xff] }
 0x340   : > { %v1343_v4 = vsel %vm1316_vm4, %v1310_v62, %v8717_v37  ;;  %v1443_v19 = vsel %vm1415_vm6, %v1410_v27, %v8736_v63  ;;  %v8739_v62 = vld [vmem:[#allocation36_spill] sm:$0xff]  ;;  %v8757_v63 = vld [vmem:[#allocation109_spill] sm:$0xff] }
 0x341   : > { %v1770_v45 = vmax.f32 %v1675_v6, 0.0  ;;  %v1376_v53 = vsel %vm1349_vm5, %v1343_v4, %v8719_v40  ;;  %v8720_v6 = vld [vmem:[#allocation163_spill] sm:$0xff]  ;;  %v1476_v16 = vsel %vm1448_vm8, %v1443_v19, %v8739_v62  ;;  %v8743_v40 = vld [vmem:[#allocation120_spill] sm:$0xff] }
 0x342   : > { %3689 = vmatmul.msk.f32.gmra.mxu0 %vm1556_vm11, %v1528_v59  ;;  %3700 = vmatmul.msk.f32.gmra.mxu3 %vm1556_vm11, %v1539_v60  ;;  %v1409_v26 = vsel %vm1382_vm7, %v1376_v53, %v8720_v6  ;;  %v8723_v59 = vld [vmem:[#allocation184_spill] sm:$0xff]  ;;  %v1509_v5 = vsel %vm1481_vm10, %v1476_v16, %v8741_v34  ;;  %v3822_v4 = vld [vmem:[%s3930_s23 + $0x150] sm:$0xff] }
 0x343   : > { %1844 = vst.msk [vmem:[#allocation2 + $0x19] sm:$0xff] %vm1316_vm4, %v1770_v45  ;;  %v1431_v45 = vsel %vm1415_vm6, %v1398_v35, %v8722_v47  ;;  %v1442_v60 = vsel %vm1415_vm6, %v1409_v26, %v8723_v59  ;;  %v1312_v31 = vsel %vm1283_vm3, %v3822_v4, %v8742_v36  ;;  %v8744_v6 = vld [vmem:[#allocation139_spill] sm:$0xff]  ;;  %v8747_v59 = vld [vmem:[#allocation197_spill] sm:$0xff]  ;;  %v8759_v16 = vld [vmem:[#allocation172_spill] sm:$0xff] }
 0x344   : > { %v1464_v49 = vsel %vm1448_vm8, %v1431_v45, %v8724_v55  ;;  %v1475_v28 = vsel %vm1448_vm8, %v1442_v60, %v8725_v29  ;;  %v1345_v53 = vsel %vm1316_vm4, %v1312_v31, %v8743_v40  ;;  %v8746_v35 = vld [vmem:[#allocation187_spill] sm:$0xff]  ;;  %v1244_v45 = vpop.permute.xlu0 %1243  ;;  %v8748_v55 = vld [vmem:[#allocation122_spill] sm:$0xff]  ;;  %v8762_v40 = vld [vmem:[#allocation201_spill] sm:$0xff] }
 0x345   : > { %v1508_v2 = vsel %vm1481_vm10, %v1475_v28, %v8726_v52  ;;  %v1497_v44 = vsel %vm1481_vm10, %v1464_v49, %v8727_v50  ;;  %v1378_v26 = vsel %vm1349_vm5, %v1345_v53, %v8744_v6  ;;  %v3823_v52 = vld [vmem:[%s3930_s23 + $0x158] sm:$0xff]  ;;  %v8761_v4 = vld [vmem:[#allocation42_spill] sm:$0xff] }
 0x346   : > { %v1530_v20 = vsel %vm1514_vm9, %v1497_v44, %v5505_v1  ;;  %v1541_v9 = vsel %vm1514_vm9, %v1508_v2, %v1240_v38  ;;  %v1333_v1 = vsel %vm1316_vm4, %v1300_v56, %v8731_v39  ;;  %v8749_v2 = vld [vmem:[#allocation76_spill] sm:$0xff]  ;;  %v8752_v56 = vld [vmem:[#allocation166_spill] sm:$0xff] }
 0x347   : > { %v1366_v15 = vsel %vm1349_vm5, %v1333_v1, %v8732_v18  ;;  %v1313_v50 = vsel %vm1283_vm3, %v3823_v52, %v8749_v2  ;;  %v8755_v18 = vld [vmem:[#allocation199_spill] sm:$0xff]  ;;  %v8768_v2 = vld [vmem:[#allocation198_spill] sm:$0xff] }
 0x348   : > { %v1399_v14 = vsel %vm1382_vm7, %v1366_v15, %v8734_v13  ;;  %v3824_v13 = vld [vmem:[%s3930_s23 + $0x168] sm:$0xff] }
 0x349   : > { %v1432_v30 = vsel %vm1415_vm6, %v1399_v14, %v8737_v24  ;;  %v8756_v14 = vld [vmem:[#allocation90_spill] sm:$0xff] }
 0x34a   : > { %3690 = vmatmul.msk.f32.gmra.mxu0 %vm1556_vm11, %v1529_v41  ;;  %3701 = vmatmul.msk.f32.gmra.mxu3 %vm1556_vm11, %v1540_v17  ;;  %v1242_v41 = vpop.permute.xlu2 %1241  ;;  %v1982_v17 = vsel %vm327_vm0, %v1979_v46, %v1981_v10  ;;  %v1465_v0 = vsel %vm1448_vm8, %v1432_v30, %v8738_v43  ;;  %v6010_v10 = vld [vmem:[#allocation2 + $0x18] sm:$0xff]  ;;  %v1314_v3 = vsel %vm1283_vm3, %v3824_v13, %v8756_v14 }
 0x34b   : > { %2060 = vrot.lane.b32.xlu2 %v1982_v17, %s3873_s25  ;;  %v1498_v51 = vsel %vm1481_vm10, %v1465_v0, %v8740_v33  ;;  %v1542_v46 = vsel %vm1514_vm9, %v1509_v5, %v1242_v41  ;;  %v1347_v19 = vsel %vm1316_vm4, %v1314_v3, %v8757_v63  ;;  %v8758_v41 = vld [vmem:[#allocation38_spill] sm:$0xff]  ;;  %v1983_v62 = vrot.slane %v6010_v10, 1 }
 0x34c   : > { %v1531_v37 = vsel %vm1514_vm9, %v1498_v51, %v5542_v7  ;;  %v1411_v7 = vsel %vm1382_vm7, %v1378_v26, %v8745_v48  ;;  %v1380_v17 = vsel %vm1349_vm5, %v1347_v19, %v8758_v41  ;;  %v8760_v51 = vld [vmem:[#allocation181_spill] sm:$0xff]  ;;  %v3825_v48 = vld [vmem:[%s3930_s23 + $0x170] sm:$0xff]  ;;  %v1250_v52 = vpop.permute.xlu0 %1249  ;;  %s3883_s23 = smov 64  }
 0x34d   : > { %v1444_v47 = vsel %vm1415_vm6, %v1411_v7, %v8746_v35  ;;  %v1413_v33 = vsel %vm1382_vm7, %v1380_v17, %v8759_v16  ;;  %v8763_v7 = vld [vmem:[#allocation89_spill] sm:$0xff] }
 0x34e   : > { %v1477_v60 = vsel %vm1448_vm8, %v1444_v47, %v8747_v59  ;;  %v1446_v34 = vsel %vm1415_vm6, %v1413_v33, %v8760_v51  ;;  %v1315_v35 = vsel %vm1283_vm3, %v3825_v48, %v8763_v7  ;;  %vm3255_vm3 = vcmask 523264  }
 0x34f   : > { %v1510_v49 = vsel %vm1481_vm10, %v1477_v60, %v8748_v55  ;;  %v1479_v36 = vsel %vm1448_vm8, %v1446_v34, %v8761_v4  ;;  %v8765_v60 = vld [vmem:[#allocation144_spill] sm:$0xff]  ;;  %v8766_v55 = vld [vmem:[#allocation171_spill] sm:$0xff] }
 0x350   : > { %v1543_v28 = vsel %vm1514_vm9, %v1510_v49, %v1244_v45  ;;  %v1512_v53 = vsel %vm1481_vm10, %v1479_v36, %v8762_v40  ;;  %v8764_v45 = vld [vmem:[#allocation123_spill] sm:$0xff] }
 0x351   : > { %v1348_v59 = vsel %vm1316_vm4, %v1315_v35, %v8764_v45 }
 0x352   : > { %3691 = vmatmul.msk.f32.gmra.mxu0 %vm1556_vm11, %v1530_v20  ;;  %3702 = vmatmul.msk.f32.gmra.mxu3 %vm1556_vm11, %v1541_v9  ;;  %v8750_v20 = vld [vmem:[#allocation119_spill] sm:$0xff]  ;;  %v1248_v5 = vpop.permute.xlu2 %1247 }
 0x353   : > { %v1346_v9 = vsel %vm1316_vm4, %v1313_v50, %v8750_v20  ;;  %v1545_v26 = vsel %vm1514_vm9, %v1512_v53, %v1248_v5  ;;  %v8769_v20 = vld [vmem:[#allocation200_spill] sm:$0xff] }
 0x354   : > { %v1379_v54 = vsel %vm1349_vm5, %v1346_v9, %v8751_v58 }
 0x355   : > { %v1412_v57 = vsel %vm1382_vm7, %v1379_v54, %v8752_v56 }
 0x356   : > { %v1445_v61 = vsel %vm1415_vm6, %v1412_v57, %v8753_v21 }
 0x357   : > { %v1478_v39 = vsel %vm1448_vm8, %v1445_v61, %v8754_v42 }
 0x358   : > { %v1511_v15 = vsel %vm1481_vm10, %v1478_v39, %v8755_v18 }
 0x359   : > { %v1544_v12 = vsel %vm1514_vm9, %v1511_v15, %v1246_v25 }
 0x35a   : > { %3692 = vmatmul.msk.f32.gmra.mxu0 %vm1556_vm11, %v1531_v37  ;;  %3703 = vmatmul.msk.f32.gmra.mxu3 %vm1556_vm11, %v1542_v46 }
 0x35f   : > { %v1677_v38 = vpop.f32.mrf.mxu0 }
 0x360   : > { %v1678_v29 = vadd.f32 %v5799_v32, %v1677_v38  ;;  %v1381_v38 = vsel %vm1349_vm5, %v1348_v59, %v8765_v60  ;;  %vm3288_vm5 = vcmask 588800  }
 0x361   : > { %v1414_v49 = vsel %vm1382_vm7, %v1381_v38, %v8766_v55 }
 0x362   : > { %v1771_v44 = vmax.f32 %v1678_v29, 0.0  ;;  %3704 = vmatmul.msk.f32.gmra.mxu3 %vm1556_vm11, %v1543_v28  ;;  %v8767_v29 = vld [vmem:[#allocation188_spill] sm:$0xff] }
 0x363   : > { %v1447_v28 = vsel %vm1415_vm6, %v1414_v49, %v8767_v29  ;;  %vm3335_vm6 = vcmask 621568  }
 0x364   : > { %1845 = vst.msk [vmem:[#allocation2 + $0x21] sm:$0xff] %vm1316_vm4, %v1771_v44  ;;  %v1480_v50 = vsel %vm1448_vm8, %v1447_v28, %v8768_v2 }
 0x365   : > { %v1513_v9 = vsel %vm1481_vm10, %v1480_v50, %v8769_v20 }
 0x366   : > { %v1546_v54 = vsel %vm1514_vm9, %v1513_v9, %v1250_v52 }
 0x367   : > { %v1680_v1 = vpop.f32.mrf.mxu0 }
 0x368   : > { %v1681_v11 = vadd.f32 %v5799_v32, %v1680_v1 }
 0x36a   : > { %v1772_v27 = vmax.f32 %v1681_v11, 0.0  ;;  %3705 = vmatmul.msk.f32.gmra.mxu3 %vm1556_vm11, %v1544_v12 }
 0x36b   : > { %v6018_v24 = vld [vmem:[#allocation2 + $0x20] sm:$0xff]  ;;  %v6020_v30 = vld [vmem:[#allocation2 + $0x28] sm:$0x3] }
 0x36c   : > { %1846 = vst.msk [vmem:[#allocation2 + $0x31] sm:$0xff] %vm1316_vm4, %v1772_v27  ;;  %v1984_v43 = vrot.slane %v6018_v24, 1  ;;  %v1986_v0 = vrot.slane %v6020_v30, 1 }
 0x36e   : > { %v6033_v37 = vsel %vm327_vm0, %v1984_v43, %v1986_v0  ;;  %v6036_v46 = vsel %vm327_vm0, %v1983_v62, %v1984_v43 }
 0x36f   : > { %v1683_v31 = vpop.f32.mrf.mxu0  ;;  %2064 = vrot.lane.b32.xlu1 %v6033_v37, %s3873_s25  ;;  %2062 = vrot.lane.b32.xlu0 %v6036_v46, %s3873_s25 }
 0x370   : > { %v1684_v6 = vadd.f32 %v5799_v32, %v1683_v31 }
 0x372   : > { %v1773_v47 = vmax.f32 %v1684_v6, 0.0  ;;  %3706 = vmatmul.msk.f32.gmra.mxu3 %vm1556_vm11, %v1545_v26 }
 0x373   : > { %v6067_v56 = vld [vmem:[#allocation2 + $0x30] sm:$0xff] }
 0x374   : > { %1847 = vst.msk [vmem:[#allocation2 + $0x39] sm:$0xff] %vm1316_vm4, %v1773_v47  ;;  %v1988_v25 = vrot.slane %v6067_v56, 1 }
 0x377   : > { %v1686_v44 = vpop.f32.mrf.mxu0 }
 0x378   : > { %v1687_v58 = vadd.f32 %v5799_v32, %v1686_v44 }
 0x37a   : > { %v1774_v57 = vmax.f32 %v1687_v58, 0.0  ;;  %3707 = vmatmul.msk.f32.gmra.mxu3 %vm1556_vm11, %v1546_v54 }
 0x37b   : > { %v6070_v21 = vld [vmem:[#allocation2 + $0x38] sm:$0xff]  ;;  %v6072_v61 = vld [vmem:[#allocation2 + $0x40] sm:$0x3] }
 0x37c   : > { %1848 = vst.msk [vmem:[#allocation2 + $0x49] sm:$0xff] %vm1316_vm4, %v1774_v57  ;;  %v1989_v42 = vrot.slane %v6070_v21, 1  ;;  %v1991_v39 = vrot.slane %v6072_v61, 1 }
 0x37e   : > { %v6079_v1 = vsel %vm327_vm0, %v1988_v25, %v1989_v42  ;;  %v6082_v18 = vsel %vm327_vm0, %v1989_v42, %v1991_v39 }
 0x37f   : > { %2066 = vrot.lane.b32.xlu2 %v6079_v1, %s3873_s25  ;;  %2068 = vrot.lane.b32.xlu0 %v6082_v18, %s3873_s25  ;;  %v1689_v15 = vpop.f32.mrf.mxu0 }
 0x380   : > { %v1690_v11 = vadd.f32 %v5799_v32, %v1689_v15 }
 0x382   : > { %v1775_v12 = vmax.f32 %v1690_v11, 0.0 }
 0x383   : > { %v6091_v3 = vld [vmem:[#allocation2 + $0x48] sm:$0xff] }
 0x384   : > { %1849 = vst.msk [vmem:[#allocation2 + $0x51] sm:$0xff] %vm1316_vm4, %v1775_v12  ;;  %v1993_v43 = vrot.slane %v6091_v3, 1 }
 0x387   : > { %v1692_v13 = vpop.f32.mrf.mxu0 }
 0x388   : > { %v1693_v14 = vadd.f32 %v5799_v32, %v1692_v13 }
 0x38a   : > { %v1776_v27 = vmax.f32 %v1693_v14, 0.0 }
 0x38b   : > { %v6093_v63 = vld [vmem:[#allocation2 + $0x50] sm:$0xff]  ;;  %v6095_v19 = vld [vmem:[#allocation2 + $0x58] sm:$0x3] }
 0x38c   : > { %1850 = vst.msk [vmem:[#allocation2 + $0x61] sm:$0xff] %vm1316_vm4, %v1776_v27  ;;  %v1994_v41 = vrot.slane %v6093_v63, 1  ;;  %v1996_v17 = vrot.slane %v6095_v19, 1 }
 0x38d   : > { %v1725_v0 = vpop.f32.mrf.mxu3 }
 0x38e   : > { %v1726_v62 = vadd.f32 %v5799_v32, %v1725_v0  ;;  %v6103_v16 = vsel %vm327_vm0, %v1994_v41, %v1996_v17  ;;  %v6106_v33 = vsel %vm327_vm0, %v1993_v43, %v1994_v41 }
 0x38f   : > { %2072 = vrot.lane.b32.xlu2 %v6103_v16, %s3873_s25  ;;  %2070 = vrot.lane.b32.xlu1 %v6106_v33, %s3873_s25  ;;  %v1695_v51 = vpop.f32.mrf.mxu0 }
 0x390   : > { %v1787_v34 = vmax.f32 %v1726_v62, 0.0  ;;  %v1696_v5 = vadd.f32 %v5799_v32, %v1695_v51 }
 0x392   : > { %1861 = vst.msk [vmem:[#allocation2 + $0xe1] sm:$0xff] %vm1316_vm4, %v1787_v34  ;;  %v1777_v4 = vmax.f32 %v1696_v5, 0.0 }
 0x393   : > { %v6117_v26 = vld [vmem:[#allocation2 + $0x60] sm:$0xff] }
 0x394   : > { %1851 = vst.msk [vmem:[#allocation2 + $0x69] sm:$0xff] %vm1316_vm4, %v1777_v4  ;;  %v1998_v59 = vrot.slane %v6117_v26, 1 }
 0x395   : > { %v1728_v36 = vpop.f32.mrf.mxu3 }
 0x396   : > { %v1729_v31 = vadd.f32 %v5799_v32, %v1728_v36 }
 0x397   : > { %v1698_v40 = vpop.f32.mrf.mxu0 }
 0x398   : > { %v1788_v53 = vmax.f32 %v1729_v31, 0.0  ;;  %v1699_v6 = vadd.f32 %v5799_v32, %v1698_v40 }
 0x39a   : > { %1862 = vst.msk [vmem:[#allocation2 + $0xf1] sm:$0xff] %vm1316_vm4, %v1788_v53  ;;  %v1778_v48 = vmax.f32 %v1699_v6, 0.0 }
 0x39b   : > { %v6120_v7 = vld [vmem:[#allocation2 + $0x68] sm:$0xff]  ;;  %v6122_v35 = vld [vmem:[#allocation2 + $0x70] sm:$0x3] }
 0x39c   : > { %1852 = vst.msk [vmem:[#allocation2 + $0x79] sm:$0xff] %vm1316_vm4, %v1778_v48  ;;  %v1999_v47 = vrot.slane %v6120_v7, 1  ;;  %v2001_v45 = vrot.slane %v6122_v35, 1 }
 0x39d   : > { %v1731_v60 = vpop.f32.mrf.mxu3 }
 0x39e   : > { %v1732_v38 = vadd.f32 %v5799_v32, %v1731_v60  ;;  %v6130_v55 = vsel %vm327_vm0, %v1999_v47, %v2001_v45  ;;  %v6133_v49 = vsel %vm327_vm0, %v1998_v59, %v1999_v47 }
 0x39f   : > { %8770 = vst [vmem:[#allocation52_spill] sm:$0xff] %v6130_v55  ;;  %v1701_v29 = vpop.f32.mrf.mxu0  ;;  %2076 = vrot.lane.b32.xlu1 %v6130_v55, %s3873_s25  ;;  %2074 = vrot.lane.b32.xlu0 %v6133_v49, %s3873_s25 }
 0x3a0   : > { %8771 = vst [vmem:[#allocation93_spill] sm:$0xff] %v6133_v49  ;;  %v1789_v28 = vmax.f32 %v1732_v38, 0.0  ;;  %v1702_v52 = vadd.f32 %v5799_v32, %v1701_v29 }
 0x3a2   : > { %1863 = vst.msk [vmem:[#allocation2 + $0xf9] sm:$0xff] %vm1316_vm4, %v1789_v28  ;;  %v1779_v2 = vmax.f32 %v1702_v52, 0.0 }
 0x3a3   : > { %v6144_v54 = vld [vmem:[#allocation2 + $0x78] sm:$0xff] }
 0x3a4   : > { %1853 = vst.msk [vmem:[#allocation2 + $0x81] sm:$0xff] %vm1316_vm4, %v1779_v2  ;;  %v2003_v39 = vrot.slane %v6144_v54, 1 }
 0x3a5   : > { %v1734_v50 = vpop.f32.mrf.mxu3 }
 0x3a6   : > { %v1735_v44 = vadd.f32 %v5799_v32, %v1734_v50 }
 0x3a7   : > { %v1704_v20 = vpop.f32.mrf.mxu0 }
 0x3a8   : > { %v1790_v9 = vmax.f32 %v1735_v44, 0.0  ;;  %v1705_v58 = vadd.f32 %v5799_v32, %v1704_v20 }
 0x3aa   : > { %1864 = vst.msk [vmem:[#allocation2 + $0x109] sm:$0xff] %vm1316_vm4, %v1790_v9  ;;  %v1780_v57 = vmax.f32 %v1705_v58, 0.0 }
 0x3ab   : > { %v6147_v25 = vld [vmem:[#allocation2 + $0x80] sm:$0xff]  ;;  %v6149_v42 = vld [vmem:[#allocation2 + $0x88] sm:$0x3] }
 0x3ac   : > { %1854 = vst.msk [vmem:[#allocation2 + $0x91] sm:$0xff] %vm1316_vm4, %v1780_v57  ;;  %v2004_v15 = vrot.slane %v6147_v25, 1  ;;  %v2006_v11 = vrot.slane %v6149_v42, 1 }
 0x3ad   : > { %v1737_v12 = vpop.f32.mrf.mxu3 }
 0x3ae   : > { %v1738_v13 = vadd.f32 %v5799_v32, %v1737_v12  ;;  %v6157_v14 = vsel %vm327_vm0, %v2003_v39, %v2004_v15  ;;  %v6160_v27 = vsel %vm327_vm0, %v2004_v15, %v2006_v11 }
 0x3af   : > { %8772 = vst [vmem:[#allocation112_spill] sm:$0xff] %v6157_v14  ;;  %2078 = vrot.lane.b32.xlu2 %v6157_v14, %s3873_s25  ;;  %2080 = vrot.lane.b32.xlu0 %v6160_v27, %s3873_s25  ;;  %v1707_v41 = vpop.f32.mrf.mxu0 }
 0x3b0   : > { %8773 = vst [vmem:[#allocation154_spill] sm:$0xff] %v6160_v27  ;;  %v1791_v17 = vmax.f32 %v1738_v13, 0.0  ;;  %v1708_v43 = vadd.f32 %v5799_v32, %v1707_v41 }
 0x3b2   : > { %1865 = vst.msk [vmem:[#allocation2 + $0x111] sm:$0xff] %vm1316_vm4, %v1791_v17  ;;  %v1781_v0 = vmax.f32 %v1708_v43, 0.0 }
 0x3b3   : > { %v6171_v36 = vld [vmem:[#allocation2 + $0x90] sm:$0xff] }
 0x3b4   : > { %1855 = vst.msk [vmem:[#allocation2 + $0x99] sm:$0xff] %vm1316_vm4, %v1781_v0  ;;  %v2008_v47 = vrot.slane %v6171_v36, 1 }
 0x3b5   : > { %v1740_v62 = vpop.f32.mrf.mxu3 }
 0x3b6   : > { %v1741_v51 = vadd.f32 %v5799_v32, %v1740_v62 }
 0x3b7   : > { %v1710_v34 = vpop.f32.mrf.mxu0 }
 0x3b8   : > { %v1792_v5 = vmax.f32 %v1741_v51, 0.0  ;;  %v1711_v4 = vadd.f32 %v5799_v32, %v1710_v34 }
 0x3ba   : > { %1866 = vst.msk [vmem:[#allocation2 + $0x121] sm:$0xff] %vm1316_vm4, %v1792_v5  ;;  %v1782_v31 = vmax.f32 %v1711_v4, 0.0 }
 0x3bb   : > { %v6174_v40 = vld [vmem:[#allocation2 + $0x98] sm:$0xff]  ;;  %v6176_v53 = vld [vmem:[#allocation2 + $0xa0] sm:$0x3] }
 0x3bc   : > { %1856 = vst.msk [vmem:[#allocation2 + $0xa9] sm:$0xff] %vm1316_vm4, %v1782_v31  ;;  %v2009_v6 = vrot.slane %v6174_v40, 1  ;;  %v2011_v48 = vrot.slane %v6176_v53, 1 }
 0x3bd   : > { %v1743_v45 = vpop.f32.mrf.mxu3 }
 0x3be   : > { %v1744_v59 = vadd.f32 %v5799_v32, %v1743_v45  ;;  %v6184_v60 = vsel %vm327_vm0, %v2009_v6, %v2011_v48  ;;  %v6187_v38 = vsel %vm327_vm0, %v2008_v47, %v2009_v6 }
 0x3bf   : > { %8774 = vst [vmem:[#allocation46_spill] sm:$0xff] %v6184_v60  ;;  %2084 = vrot.lane.b32.xlu2 %v6184_v60, %s3873_s25  ;;  %2082 = vrot.lane.b32.xlu1 %v6187_v38, %s3873_s25  ;;  %v1713_v29 = vpop.f32.mrf.mxu0 }
 0x3c0   : > { %8775 = vst [vmem:[#allocation92_spill] sm:$0xff] %v6187_v38  ;;  %v1793_v28 = vmax.f32 %v1744_v59, 0.0  ;;  %v1714_v52 = vadd.f32 %v5799_v32, %v1713_v29 }
 0x3c2   : > { %1867 = vst.msk [vmem:[#allocation2 + $0x129] sm:$0xff] %vm1316_vm4, %v1793_v28  ;;  %v1783_v2 = vmax.f32 %v1714_v52, 0.0 }
 0x3c3   : > { %v6198_v57 = vld [vmem:[#allocation2 + $0xa8] sm:$0xff] }
 0x3c4   : > { %1857 = vst.msk [vmem:[#allocation2 + $0xb1] sm:$0xff] %vm1316_vm4, %v1783_v2  ;;  %v2013_v41 = vrot.slane %v6198_v57, 1 }
 0x3c5   : > { %v1746_v50 = vpop.f32.mrf.mxu3 }
 0x3c6   : > { %v1747_v44 = vadd.f32 %v5799_v32, %v1746_v50 }
 0x3c7   : > { %v1716_v20 = vpop.f32.mrf.mxu0 }
 0x3c8   : > { %v1794_v9 = vmax.f32 %v1747_v44, 0.0  ;;  %v1717_v58 = vadd.f32 %v5799_v32, %v1716_v20 }
 0x3ca   : > { %1868 = vst.msk [vmem:[#allocation2 + $0x139] sm:$0xff] %vm1316_vm4, %v1794_v9  ;;  %v1784_v39 = vmax.f32 %v1717_v58, 0.0 }
 0x3cb   : > { %v6201_v15 = vld [vmem:[#allocation2 + $0xb0] sm:$0xff]  ;;  %v6203_v11 = vld [vmem:[#allocation2 + $0xb8] sm:$0x3] }
 0x3cc   : > { %1858 = vst.msk [vmem:[#allocation2 + $0xc1] sm:$0xff] %vm1316_vm4, %v1784_v39  ;;  %v2014_v12 = vrot.slane %v6201_v15, 1  ;;  %v2016_v13 = vrot.slane %v6203_v11, 1 }
 0x3cd   : > { %v1749_v17 = vpop.f32.mrf.mxu3 }
 0x3ce   : > { %v1750_v43 = vadd.f32 %v5799_v32, %v1749_v17  ;;  %v6211_v0 = vsel %vm327_vm0, %v2014_v12, %v2016_v13  ;;  %v6214_v62 = vsel %vm327_vm0, %v2013_v41, %v2014_v12  ;;  %v6247_v13 = vld [vmem:[#allocation2 + $0xf8] sm:$0xff]  ;;  %v6249_v41 = vld [vmem:[#allocation2 + $0xe8] sm:$0x3]  ;;  %v6252_v17 = vld [vmem:[#allocation2 + $0xf0] sm:$0xff] }
 0x3cf   : > { %8776 = vst [vmem:[#allocation126_spill] sm:$0xff] %v6211_v0  ;;  %v1719_v51 = vpop.f32.mrf.mxu0  ;;  %2088 = vrot.lane.b32.xlu1 %v6211_v0, %s3873_s25  ;;  %2086 = vrot.lane.b32.xlu0 %v6214_v62, %s3873_s25 }
 0x3d0   : > { %8777 = vst [vmem:[#allocation33_spill] sm:$0xff] %v6214_v62  ;;  %v1795_v34 = vmax.f32 %v1750_v43, 0.0  ;;  %v1720_v5 = vadd.f32 %v5799_v32, %v1719_v51 }
 0x3d2   : > { %1869 = vst.msk [vmem:[#allocation2 + $0x141] sm:$0xff] %vm1316_vm4, %v1795_v34  ;;  %v1785_v4 = vmax.f32 %v1720_v5, 0.0  ;;  %v2029_v34 = vrot.slane %v6247_v13, 1 }
 0x3d3   : > { %v6225_v59 = vld [vmem:[#allocation2 + $0xc0] sm:$0xff] }
 0x3d4   : > { %1859 = vst.msk [vmem:[#allocation2 + $0xc9] sm:$0xff] %vm1316_vm4, %v1785_v4  ;;  %v2018_v2 = vrot.slane %v6225_v59, 1  ;;  %v2026_v4 = vrot.slane %v6249_v41, 1 }
 0x3d5   : > { %v1752_v31 = vpop.f32.mrf.mxu3 }
 0x3d6   : > { %v1753_v6 = vadd.f32 %v5799_v32, %v1752_v31 }
 0x3d7   : > { %v1722_v48 = vpop.f32.mrf.mxu0 }
 0x3d8   : > { %v1796_v47 = vmax.f32 %v1753_v6, 0.0  ;;  %v1723_v45 = vadd.f32 %v5799_v32, %v1722_v48  ;;  %v2028_v48 = vrot.slane %v6252_v17, 1 }
 0x3d9   : > { %v6340_v27 = vld [vmem:[#allocation2 + $0x148] sm:$0x3] }
 0x3da   : > { %1870 = vst.msk [vmem:[#allocation2 + $0x151] sm:$0xff] %vm1316_vm4, %v1796_v47  ;;  %v1786_v29 = vmax.f32 %v1723_v45, 0.0 }
 0x3db   : > { %v6228_v28 = vld [vmem:[#allocation2 + $0xc8] sm:$0xff]  ;;  %v6230_v52 = vld [vmem:[#allocation2 + $0xd0] sm:$0x3] }
 0x3dc   : > { %1860 = vst.msk [vmem:[#allocation2 + $0xd9] sm:$0xff] %vm1316_vm4, %v1786_v29  ;;  %v2019_v50 = vrot.slane %v6228_v28, 1  ;;  %v2021_v44 = vrot.slane %v6230_v52, 1 }
 0x3dd   : > { %v1755_v20 = vpop.f32.mrf.mxu3 }
 0x3de   : > { %v1756_v9 = vadd.f32 %v5799_v32, %v1755_v20  ;;  %v6238_v58 = vsel %vm327_vm0, %v2018_v2, %v2019_v50  ;;  %v6241_v39 = vsel %vm327_vm0, %v2019_v50, %v2021_v44  ;;  %v6275_v2 = vsel %vm327_vm0, %v2028_v48, %v2029_v34  ;;  %v6277_v50 = vld [vmem:[#allocation2 + $0x110] sm:$0xff]  ;;  %v6279_v44 = vld [vmem:[#allocation2 + $0x100] sm:$0x3] }
 0x3df   : > { %8778 = vst [vmem:[#allocation51_spill] sm:$0xff] %v6238_v58  ;;  %2090 = vrot.lane.b32.xlu2 %v6238_v58, %s3873_s25  ;;  %2092 = vrot.lane.b32.xlu0 %v6241_v39, %s3873_s25 }
 0x3e0   : > { %8779 = vst [vmem:[#allocation82_spill] sm:$0xff] %v6241_v39  ;;  %v1797_v12 = vmax.f32 %v1756_v9, 0.0  ;;  %v6283_v9 = vld [vmem:[#allocation2 + $0x118] sm:$0x3]  ;;  %v6306_v39 = vld [vmem:[#allocation2 + $0x128] sm:$0xff] }
 0x3e1   : > { %8782 = vst [vmem:[#allocation34_spill] sm:$0xff] %v6275_v2 }
 0x3e2   : > { %1871 = vst.msk [vmem:[#allocation2 + $0x159] sm:$0xff] %vm1316_vm4, %v1797_v12  ;;  %v6285_v12 = vld [vmem:[#allocation2 + $0x108] sm:$0xff] }
 0x3e3   : > { %v6254_v43 = vld [vmem:[#allocation2 + $0xe0] sm:$0xff]  ;;  %v6256_v51 = vld [vmem:[#allocation2 + $0xd8] sm:$0xff] }
 0x3e4   : > { %v2024_v5 = vrot.slane %v6254_v43, 1  ;;  %v2023_v31 = vrot.slane %v6256_v51, 1 }
 0x3e5   : > { %v1758_v6 = vpop.f32.mrf.mxu3 }
 0x3e6   : > { %v1759_v47 = vadd.f32 %v5799_v32, %v1758_v6  ;;  %v6265_v45 = vsel %vm327_vm0, %v2024_v5, %v2026_v4  ;;  %v6268_v29 = vsel %vm327_vm0, %v2023_v31, %v2024_v5  ;;  %v2034_v5 = vrot.slane %v6277_v50, 1 }
 0x3e7   : > { %8780 = vst [vmem:[#allocation125_spill] sm:$0xff] %v6265_v45  ;;  %2096 = vrot.lane.b32.xlu2 %v6265_v45, %s3873_s25  ;;  %2094 = vrot.lane.b32.xlu1 %v6268_v29, %s3873_s25  ;;  %v2031_v4 = vrot.slane %v6279_v44, 1  ;;  %v2036_v31 = vrot.slane %v6283_v9, 1  ;;  %v2033_v6 = vrot.slane %v6285_v12, 1 }
 0x3e8   : > { %8781 = vst [vmem:[#allocation156_spill] sm:$0xff] %v6268_v29  ;;  %v1798_v20 = vmax.f32 %v1759_v47, 0.0  ;;  %2098 = vrot.lane.b32.xlu0 %v6275_v2, %s3873_s25  ;;  %v6308_v29 = vld [vmem:[#allocation2 + $0x130] sm:$0x3] }
 0x3e9   : > { %v6294_v45 = vsel %vm327_vm0, %v2033_v6, %v2034_v5  ;;  %v6297_v2 = vsel %vm327_vm0, %v2029_v34, %v2031_v4  ;;  %v6312_v6 = vld [vmem:[#allocation2 + $0x140] sm:$0xff]  ;;  %v2039_v4 = vrot.slane %v6306_v39, 1  ;;  %v6338_v60 = vld [vmem:[#allocation2 + $0x158] sm:$0xff] }
 0x3ea   : > { %1872 = vst.msk [vmem:[#allocation2 + $0x169] sm:$0xff] %vm1316_vm4, %v1798_v20  ;;  %v6304_v20 = vsel %vm327_vm0, %v2034_v5, %v2036_v31  ;;  %v6314_v34 = vld [vmem:[#allocation2 + $0x120] sm:$0xff]  ;;  %v6319_v5 = vld [vmem:[#allocation2 + $0x138] sm:$0xff]  ;;  %v2044_v31 = vrot.slane %v6312_v6, 1 }
 0x3eb   : > { %8783 = vst [vmem:[#allocation96_spill] sm:$0xff] %v6294_v45  ;;  %v2043_v58 = vrot.slane %v6319_v5, 1 }
 0x3ec   : > { %8784 = vst [vmem:[#allocation115_spill] sm:$0xff] %v6297_v2 }
 0x3ed   : > { %v1761_v48 = vpop.f32.mrf.mxu3  ;;  %8785 = vst [vmem:[#allocation48_spill] sm:$0xff] %v6304_v20  ;;  %v6336_v0 = vsel %vm327_vm0, %v2043_v58, %v2044_v31 }
 0x3ee   : > { %v1762_v47 = vadd.f32 %v5799_v32, %v1761_v48  ;;  %8788 = vst [vmem:[#allocation129_spill] sm:$0xff] %v6336_v0 }
 0x3ef   : > { %2102 = vrot.lane.b32.xlu2 %v6294_v45, %s3873_s25  ;;  %2100 = vrot.lane.b32.xlu1 %v6297_v2, %s3873_s25  ;;  %v2041_v45 = vrot.slane %v6308_v29, 1  ;;  %v2038_v2 = vrot.slane %v6314_v34, 1 }
 0x3f0   : > { %v1799_v48 = vmax.f32 %v1762_v47, 0.0  ;;  %2104 = vrot.lane.b32.xlu0 %v6304_v20, %s3873_s25 }
 0x3f1   : > { %v6326_v62 = vsel %vm327_vm0, %v2039_v4, %v2041_v45  ;;  %v6344_v45 = vld [vmem:[#allocation2 + $0x160] sm:$0x3] }
 0x3f2   : > { %1873 = vst.msk [vmem:[#allocation2 + $0x171] sm:$0xff] %vm1316_vm4, %v1799_v48  ;;  %v6329_v48 = vsel %vm327_vm0, %v2038_v2, %v2039_v4  ;;  %v6346_v2 = vld [vmem:[#allocation2 + $0x150] sm:$0xff]  ;;  %v2049_v4 = vrot.slane %v6338_v60, 1  ;;  %v2051_v58 = vrot.slane %v6344_v45, 1 }
 0x3f3   : > { %8786 = vst [vmem:[#allocation37_spill] sm:$0xff] %v6326_v62 }
 0x3f4   : > { %8787 = vst [vmem:[#allocation95_spill] sm:$0xff] %v6329_v48 }
 0x3f5   : > { %v1764_v47 = vpop.f32.mrf.mxu3 }
 0x3f6   : > { %v1765_v20 = vadd.f32 %v5799_v32, %v1764_v47 }
 0x3f7   : > { %2108 = vrot.lane.b32.xlu2 %v6326_v62, %s3873_s25  ;;  %2106 = vrot.lane.b32.xlu1 %v6329_v48, %s3873_s25  ;;  %v2046_v62 = vrot.slane %v6340_v27, 1  ;;  %v2048_v48 = vrot.slane %v6346_v2, 1 }
 0x3f8   : > { %v1800_v47 = vmax.f32 %v1765_v20, 0.0  ;;  %2110 = vrot.lane.b32.xlu0 %v6336_v0, %s3873_s25 }
 0x3f9   : > { %v6355_v14 = vsel %vm327_vm0, %v2048_v48, %v2049_v4  ;;  %v6358_v0 = vsel %vm327_vm0, %v2044_v31, %v2046_v62  ;;  %v6367_v49 = vld [vmem:[#allocation2 + $0x170] sm:$0xff]  ;;  %v6369_v55 = vld [vmem:[#allocation2 + $0x178] sm:$0x3]  ;;  %v2155_v62 = vrot.slane %v5856_v22, 2  ;;  %v6375_v31 = vld [vmem:[#allocation2 + $0x168] sm:$0xff]  ;;  %v2160_v22 = vrot.slane %v6018_v24, 2 }
 0x3fa   : > { %1874 = vst.msk [vmem:[#allocation2 + $0x181] sm:$0xff] %vm1316_vm4, %v1800_v47  ;;  %v6365_v47 = vsel %vm327_vm0, %v2049_v4, %v2051_v58  ;;  %v2054_v48 = vrot.slane %v6367_v49, 1  ;;  %v2056_v4 = vrot.slane %v6369_v55, 1  ;;  %v2053_v58 = vrot.slane %v6375_v31, 1 }
 0x3fb   : > { %8789 = vst [vmem:[#allocation149_spill] sm:$0xff] %v6355_v14 }
 0x3fc   : > { %8790 = vst [vmem:[#allocation56_spill] sm:$0xff] %v6358_v0 }
 0x3fd   : > { %v1767_v38 = vpop.f32.mrf.mxu3  ;;  %8791 = vst [vmem:[#allocation58_spill] sm:$0xff] %v6365_v47 }
 0x3fe   : > { %v1768_v20 = vadd.f32 %v5799_v32, %v1767_v38  ;;  %v2154_v38 = vrot.slane %v5854_v23, 2  ;;  %v2157_v23 = vrot.slane %v5944_v8, 2  ;;  %v2165_v8 = vrot.slane %v6070_v21, 2 }
 0x3ff   : > { %2114 = vrot.lane.b32.xlu2 %v6355_v14, %s3873_s25  ;;  %2112 = vrot.lane.b32.xlu1 %v6358_v0, %s3873_s25 }
 0x400   : > { %v1801_v32 = vmax.f32 %v1768_v20, 0.0  ;;  %2116 = vrot.lane.b32.xlu0 %v6365_v47, %s3873_s25  ;;  %v2156_v14 = vsel %vm504_vm1, %v2154_v38, %v2155_v62  ;;  %v6383_v20 = vsel %vm327_vm0, %v2054_v48, %v2056_v4  ;;  %v6386_v47 = vsel %vm327_vm0, %v2053_v58, %v2054_v48  ;;  %v6401_v58 = vpop.permute.xlu2 %2060 }
 0x401   : > { %8792 = vst [vmem:[#allocation85_spill] sm:$0xff] %v6383_v20  ;;  %v2159_v38 = vrot.slane %v6010_v10, 2  ;;  %v2158_v4 = vsel %vm504_vm1, %v2155_v62, %v2157_v23  ;;  %v2164_v62 = vrot.slane %v6067_v56, 2  ;;  %v2169_v23 = vrot.slane %v6091_v3, 2 }
 0x402   : > { %1875 = vst.msk [vmem:[#allocation2 + $0x189] sm:$0xff] %vm1316_vm4, %v1801_v32  ;;  %v2162_v32 = vrot.slane %v6020_v30, 2  ;;  %v2167_v30 = vrot.slane %v6072_v61, 2 }
 0x403   : > { %8793 = vst [vmem:[#allocation107_spill] sm:$0xff] %v6386_v47  ;;  %v6399_v48 = vsel %vm504_vm1, %v2159_v38, %v2160_v22 }
 0x404   : > { %8794 = vst [vmem:[#allocation128_spill] sm:$0xff] %v6401_v58 }
 0x407   : > { %2120 = vrot.lane.b32.xlu2 %v6383_v20, %s3873_s25  ;;  %2118 = vrot.lane.b32.xlu1 %v6386_v47, %s3873_s25  ;;  %v6404_v20 = vsel %vm504_vm1, %v2160_v22, %v2162_v32  ;;  %v6417_v22 = vsel %vm504_vm1, %v2165_v8, %v2167_v30  ;;  %v6420_v32 = vsel %vm504_vm1, %v2164_v62, %v2165_v8  ;;  %v2172_v30 = vrot.slane %v6095_v19, 2  ;;  %s3885_s25 = smov 72  }
 0x408   : > { %2234 = vrot.lane.b32.xlu0 %v2156_v14, %s3875_s27  ;;  %v2170_v14 = vrot.slane %v6093_v63, 2  ;;  %8795 = vst [vmem:[#allocation141_spill] sm:$0xff] %v6417_v22  ;;  %v6431_v61 = vpop.permute.xlu2 %2066  ;;  %v2177_v8 = vrot.slane %v6122_v35, 2  ;;  %v2174_v62 = vrot.slane %v6117_v26, 2  ;;  %v2180_v35 = vrot.slane %v6147_v25, 2 }
 0x409   : > { %8796 = vst [vmem:[#allocation157_spill] sm:$0xff] %v6431_v61 }
 0x40a   : > { %v6423_v38 = vsel %vm504_vm1, %v2169_v23, %v2170_v14  ;;  %v6441_v58 = vsel %vm504_vm1, %v2170_v14, %v2172_v30  ;;  %v2185_v14 = vrot.slane %v6174_v40, 2  ;;  %v2184_v30 = vrot.slane %v6171_v36, 2 }
 0x40f   : > { %2238 = vrot.lane.b32.xlu2 %v6399_v48, %s3875_s27  ;;  %2236 = vrot.lane.b32.xlu1 %v2158_v4, %s3875_s27  ;;  %v2175_v4 = vrot.slane %v6120_v7, 2 }
 0x410   : > { %2240 = vrot.lane.b32.xlu0 %v6404_v20, %s3875_s27  ;;  %v6452_v19 = vpop.permute.xlu2 %2072 }
 0x411   : > { %v6438_v23 = vsel %vm504_vm1, %v2174_v62, %v2175_v4  ;;  %8799 = vst [vmem:[#allocation78_spill] sm:$0xff] %v6452_v19  ;;  %v2182_v62 = vrot.slane %v6149_v42, 2  ;;  %v6468_v19 = vsel %vm504_vm1, %v2184_v30, %v2185_v14  ;;  %v6476_v42 = vpop.permute.xlu0 %2062  ;;  %v2189_v30 = vrot.slane %v6198_v57, 2 }
 0x412   : > { %8797 = vst [vmem:[#allocation159_spill] sm:$0xff] %v6438_v23 }
 0x413   : > { %v6462_v61 = vsel %vm504_vm1, %v2180_v35, %v2182_v62  ;;  %8803 = vst [vmem:[#allocation140_spill] sm:$0xff] %v6468_v19  ;;  %v2190_v62 = vrot.slane %v6201_v15, 2 }
 0x414   : > { %8801 = vst [vmem:[#allocation99_spill] sm:$0xff] %v6462_v61 }
 0x415   : > { %8804 = vst [vmem:[#allocation158_spill] sm:$0xff] %v6476_v42 }
 0x417   : > { %2244 = vrot.lane.b32.xlu2 %v6417_v22, %s3875_s27  ;;  %2242 = vrot.lane.b32.xlu1 %v6420_v32, %s3875_s27  ;;  %v6444_v22 = vsel %vm504_vm1, %v2175_v4, %v2177_v8  ;;  %v2179_v4 = vrot.slane %v6144_v54, 2  ;;  %v6459_v8 = vpop.permute.xlu1 %2058 }
 0x418   : > { %2246 = vrot.lane.b32.xlu0 %v6423_v38, %s3875_s27  ;;  %8798 = vst [vmem:[#allocation57_spill] sm:$0xff] %v6444_v22 }
 0x419   : > { %8800 = vst [vmem:[#allocation97_spill] sm:$0xff] %v6459_v8  ;;  %v6478_v8 = vpop.permute.xlu2 %2078 }
 0x41a   : > { %8805 = vst [vmem:[#allocation41_spill] sm:$0xff] %v6478_v8  ;;  %v2194_v8 = vrot.slane %v6225_v59, 2 }
 0x41f   : > { %2250 = vrot.lane.b32.xlu2 %v6438_v23, %s3875_s27  ;;  %2248 = vrot.lane.b32.xlu1 %v6441_v58, %s3875_s27  ;;  %v6465_v23 = vsel %vm504_vm1, %v2179_v4, %v2180_v35  ;;  %v2187_v35 = vrot.slane %v6176_v53, 2  ;;  %v2192_v4 = vrot.slane %v6203_v11, 2  ;;  %v6497_v53 = vpop.permute.xlu1 %2064  ;;  %v6501_v11 = vpop.permute.xlu0 %2068 }
 0x420   : > { %2252 = vrot.lane.b32.xlu0 %v6444_v22, %s3875_s27  ;;  %8802 = vst [vmem:[#allocation118_spill] sm:$0xff] %v6465_v23 }
 0x421   : > { %v6488_v22 = vsel %vm504_vm1, %v2185_v14, %v2187_v35  ;;  %8809 = vst [vmem:[#allocation130_spill] sm:$0xff] %v6497_v53  ;;  %v2195_v14 = vrot.slane %v6228_v28, 2  ;;  %v2199_v35 = vrot.slane %v6256_v51, 2 }
 0x422   : > { %8807 = vst [vmem:[#allocation98_spill] sm:$0xff] %v6488_v22 }
 0x423   : > { %8810 = vst [vmem:[#allocation132_spill] sm:$0xff] %v6501_v11  ;;  %v6514_v53 = vsel %vm504_vm1, %v2194_v8, %v2195_v14  ;;  %v2205_v8 = vrot.slane %v6247_v13, 2 }
 0x424   : > { %8813 = vst [vmem:[#allocation63_spill] sm:$0xff] %v6514_v53 }
 0x427   : > { %2256 = vrot.lane.b32.xlu2 %v6462_v61, %s3875_s27  ;;  %2254 = vrot.lane.b32.xlu1 %v6465_v23, %s3875_s27  ;;  %v6485_v61 = vsel %vm504_vm1, %v2189_v30, %v2190_v62  ;;  %v6503_v30 = vpop.permute.xlu2 %2084 }
 0x428   : > { %2258 = vrot.lane.b32.xlu0 %v6468_v19, %s3875_s27  ;;  %8806 = vst [vmem:[#allocation77_spill] sm:$0xff] %v6485_v61  ;;  %v6491_v19 = vsel %vm504_vm1, %v2190_v62, %v2192_v4  ;;  %v2197_v62 = vrot.slane %v6230_v52, 2  ;;  %v2200_v4 = vrot.slane %v6254_v43, 2  ;;  %v6523_v52 = vpop.permute.xlu1 %2070 }
 0x429   : > { %8808 = vst [vmem:[#allocation111_spill] sm:$0xff] %v6491_v19 }
 0x42a   : > { %8811 = vst [vmem:[#allocation44_spill] sm:$0xff] %v6503_v30  ;;  %v6511_v42 = vsel %vm504_vm1, %v2195_v14, %v2197_v62  ;;  %v6517_v11 = vsel %vm504_vm1, %v2199_v35, %v2200_v4  ;;  %v6527_v30 = vpop.permute.xlu0 %2074  ;;  %v2207_v14 = vrot.slane %v6279_v44, 2  ;;  %v2204_v35 = vrot.slane %v6252_v17, 2 }
 0x42b   : > { %8812 = vst [vmem:[#allocation61_spill] sm:$0xff] %v6511_v42 }
 0x42c   : > { %8814 = vst [vmem:[#allocation88_spill] sm:$0xff] %v6517_v11 }
 0x42d   : > { %8815 = vst [vmem:[#allocation110_spill] sm:$0xff] %v6523_v52 }
 0x42e   : > { %8816 = vst [vmem:[#allocation131_spill] sm:$0xff] %v6527_v30  ;;  %v2214_v30 = vrot.slane %v6314_v34, 2 }
 0x42f   : > { %2262 = vrot.lane.b32.xlu2 %v6485_v61, %s3875_s27  ;;  %2260 = vrot.lane.b32.xlu1 %v6488_v22, %s3875_s27 }
 0x430   : > { %2264 = vrot.lane.b32.xlu0 %v6491_v19, %s3875_s27  ;;  %v6536_v19 = vsel %vm504_vm1, %v2204_v35, %v2205_v8  ;;  %v6548_v44 = vpop.permute.xlu1 %2076 }
 0x431   : > { %8819 = vst [vmem:[#allocation160_spill] sm:$0xff] %v6548_v44 }
 0x437   : > { %2268 = vrot.lane.b32.xlu2 %v6511_v42, %s3875_s27  ;;  %2266 = vrot.lane.b32.xlu1 %v6514_v53, %s3875_s27  ;;  %v2202_v42 = vrot.slane %v6249_v41, 2  ;;  %v6552_v41 = vpop.permute.xlu0 %2080 }
 0x438   : > { %2270 = vrot.lane.b32.xlu0 %v6517_v11, %s3875_s27  ;;  %v6542_v11 = vsel %vm504_vm1, %v2205_v8, %v2207_v14  ;;  %8820 = vst [vmem:[#allocation62_spill] sm:$0xff] %v6552_v41  ;;  %v2215_v8 = vrot.slane %v6306_v39, 2  ;;  %v2209_v14 = vrot.slane %v6285_v12, 2 }
 0x439   : > { %v6529_v62 = vpop.permute.xlu2 %2090  ;;  %v6539_v52 = vsel %vm504_vm1, %v2200_v4, %v2202_v42  ;;  %8818 = vst [vmem:[#allocation66_spill] sm:$0xff] %v6542_v11  ;;  %v2210_v42 = vrot.slane %v6277_v50, 2  ;;  %v2212_v4 = vrot.slane %v6283_v9, 2  ;;  %v6574_v9 = vpop.permute.xlu1 %2082 }
 0x43a   : > { %8817 = vst [vmem:[#allocation146_spill] sm:$0xff] %v6529_v62  ;;  %v6568_v41 = vsel %vm504_vm1, %v2214_v30, %v2215_v8  ;;  %v2217_v30 = vrot.slane %v6308_v29, 2 }
 0x43b   : > { %v6562_v62 = vsel %vm504_vm1, %v2210_v42, %v2212_v4  ;;  %v6565_v44 = vsel %vm504_vm1, %v2209_v14, %v2210_v42  ;;  %8823 = vst [vmem:[#allocation102_spill] sm:$0xff] %v6568_v41  ;;  %v2220_v42 = vrot.slane %v6312_v6, 2  ;;  %v2222_v14 = vrot.slane %v6340_v27, 2 }
 0x43c   : > { %8822 = vst [vmem:[#allocation100_spill] sm:$0xff] %v6562_v62 }
 0x43d   : > { %8824 = vst [vmem:[#allocation121_spill] sm:$0xff] %v6574_v9  ;;  %v6590_v9 = vsel %vm504_vm1, %v2215_v8, %v2217_v30  ;;  %v2225_v8 = vrot.slane %v6338_v60, 2  ;;  %v2230_v30 = vrot.slane %v6367_v49, 2 }
 0x43f   : > { %2274 = vrot.lane.b32.xlu2 %v6536_v19, %s3875_s27  ;;  %2272 = vrot.lane.b32.xlu1 %v6539_v52, %s3875_s27 }
 0x440   : > { %2276 = vrot.lane.b32.xlu0 %v6542_v11, %s3875_s27 }
 0x441   : > { %v6554_v35 = vpop.permute.xlu2 %2096  ;;  %v6599_v29 = vpop.permute.xlu1 %2088 }
 0x442   : > { %8821 = vst [vmem:[#allocation81_spill] sm:$0xff] %v6554_v35  ;;  %v6578_v35 = vpop.permute.xlu0 %2086 }
 0x443   : > { %8825 = vst [vmem:[#allocation145_spill] sm:$0xff] %v6578_v35 }
 0x444   : > { %8829 = vst [vmem:[#allocation101_spill] sm:$0xff] %v6599_v29 }
 0x447   : > { %2280 = vrot.lane.b32.xlu2 %v6562_v62, %s3875_s27  ;;  %2278 = vrot.lane.b32.xlu1 %v6565_v44, %s3875_s27  ;;  %v2219_v62 = vrot.slane %v6319_v5, 2 }
 0x448   : > { %2282 = vrot.lane.b32.xlu0 %v6568_v41, %s3875_s27  ;;  %v6593_v41 = vsel %vm504_vm1, %v2220_v42, %v2222_v14  ;;  %v2224_v14 = vrot.slane %v6346_v2, 2 }
 0x449   : > { %v6580_v4 = vpop.permute.xlu2 %2102  ;;  %v6587_v11 = vsel %vm504_vm1, %v2219_v62, %v2220_v42  ;;  %8828 = vst [vmem:[#allocation80_spill] sm:$0xff] %v6593_v41  ;;  %v2227_v42 = vrot.slane %v6344_v45, 2 }
 0x44a   : > { %8826 = vst [vmem:[#allocation59_spill] sm:$0xff] %v6580_v4  ;;  %v2229_v4 = vrot.slane %v6375_v31, 2  ;;  %v6616_v29 = vsel %vm504_vm1, %v2224_v14, %v2225_v8 }
 0x44b   : > { %8827 = vst [vmem:[#allocation45_spill] sm:$0xff] %v6587_v11  ;;  %v6613_v35 = vsel %vm504_vm1, %v2225_v8, %v2227_v42  ;;  %v2232_v8 = vrot.slane %v6369_v55, 2 }
 0x44c   : > { %8832 = vst [vmem:[#allocation135_spill] sm:$0xff] %v6613_v35 }
 0x44d   : > { %8833 = vst [vmem:[#allocation153_spill] sm:$0xff] %v6616_v29  ;;  %v6635_v14 = vsel %vm504_vm1, %v2230_v30, %v2232_v8 }
 0x44e   : > { %8838 = vst [vmem:[#allocation49_spill] sm:$0xff] %v6635_v14 }
 0x44f   : > { %2286 = vrot.lane.b32.xlu2 %v6587_v11, %s3875_s27  ;;  %2284 = vrot.lane.b32.xlu1 %v6590_v9, %s3875_s27 }
 0x450   : > { %2288 = vrot.lane.b32.xlu0 %v6593_v41, %s3875_s27 }
 0x451   : > { %v6603_v27 = vpop.permute.xlu2 %2108  ;;  %v6605_v62 = vpop.permute.xlu0 %2092 }
 0x452   : > { %8830 = vst [vmem:[#allocation114_spill] sm:$0xff] %v6603_v27 }
 0x453   : > { %8831 = vst [vmem:[#allocation133_spill] sm:$0xff] %v6605_v62  ;;  %v6621_v62 = vsel %vm504_vm1, %v2229_v4, %v2230_v30 }
 0x454   : > { %8834 = vst [vmem:[#allocation175_spill] sm:$0xff] %v6621_v62 }
 0x457   : > { %2292 = vrot.lane.b32.xlu2 %v6613_v35, %s3875_s27  ;;  %2290 = vrot.lane.b32.xlu1 %v6616_v29, %s3875_s27 }
 0x458   : > { %2294 = vrot.lane.b32.xlu0 %v6621_v62, %s3875_s27 }
 0x459   : > { %v6627_v45 = vpop.permute.xlu1 %2094  ;;  %v6629_v27 = vpop.permute.xlu2 %2114 }
 0x45a   : > { %8835 = vst [vmem:[#allocation183_spill] sm:$0xff] %v6627_v45  ;;  %v6631_v42 = vpop.permute.xlu0 %2098 }
 0x45b   : > { %8836 = vst [vmem:[#allocation191_spill] sm:$0xff] %v6629_v27 }
 0x45c   : > { %8837 = vst [vmem:[#allocation193_spill] sm:$0xff] %v6631_v42 }
 0x45f   : > { %2332 = vrot.lane.b32.xlu2 %v6010_v10, %s3877_s29  ;;  %2296 = vrot.lane.b32.xlu1 %v6635_v14, %s3875_s27 }
 0x460   : > { %2334 = vrot.lane.b32.xlu0 %v6018_v24, %s3877_s29 }
 0x461   : > { %v6643_v4 = vpop.permute.xlu1 %2100  ;;  %v6645_v45 = vpop.permute.xlu2 %2120 }
 0x462   : > { %8839 = vst [vmem:[#allocation67_spill] sm:$0xff] %v6645_v45  ;;  %v6647_v27 = vpop.permute.xlu0 %2104 }
 0x463   : > { %8840 = vst [vmem:[#allocation69_spill] sm:$0xff] %v6647_v27 }
 0x467   : > { %2338 = vrot.lane.b32.xlu2 %v6070_v21, %s3877_s29  ;;  %2336 = vrot.lane.b32.xlu1 %v6067_v56, %s3877_s29 }
 0x468   : > { %2340 = vrot.lane.b32.xlu0 %v6091_v3, %s3877_s29 }
 0x469   : > { %v6655_v10 = vpop.permute.xlu1 %2106  ;;  %v6657_v55 = vpop.permute.xlu2 %2238 }
 0x46a   : > { %8841 = vst [vmem:[#allocation91_spill] sm:$0xff] %v6655_v10  ;;  %v6659_v24 = vpop.permute.xlu0 %2110 }
 0x46b   : > { %8842 = vst [vmem:[#allocation113_spill] sm:$0xff] %v6657_v55  ;;  %v6763_v55 = vld [vmem:[#allocation2 + $0x188] sm:$0xff] }
 0x46c   : > { %8843 = vst [vmem:[#allocation134_spill] sm:$0xff] %v6659_v24  ;;  %v8875_v24 = vld [vmem:[#allocation93_spill] sm:$0xff] }
 0x46f   : > { %2344 = vrot.lane.b32.xlu2 %v6117_v26, %s3877_s29  ;;  %2342 = vrot.lane.b32.xlu1 %v6093_v63, %s3877_s29 }
 0x470   : > { %2346 = vrot.lane.b32.xlu0 %v6120_v7, %s3877_s29 }
 0x471   : > { %v6667_v21 = vpop.permute.xlu1 %2112  ;;  %v6669_v56 = vpop.permute.xlu2 %2244 }
 0x472   : > { %8844 = vst [vmem:[#allocation148_spill] sm:$0xff] %v6667_v21  ;;  %v6671_v3 = vpop.permute.xlu0 %2116 }
 0x473   : > { %8845 = vst [vmem:[#allocation64_spill] sm:$0xff] %v6669_v56 }
 0x474   : > { %8846 = vst [vmem:[#allocation162_spill] sm:$0xff] %v6671_v3 }
 0x477   : > { %2350 = vrot.lane.b32.xlu2 %v6147_v25, %s3877_s29  ;;  %2348 = vrot.lane.b32.xlu1 %v6144_v54, %s3877_s29 }
 0x478   : > { %2352 = vrot.lane.b32.xlu0 %v6171_v36, %s3877_s29 }
 0x479   : > { %v6679_v26 = vpop.permute.xlu2 %2250  ;;  %v6681_v63 = vpop.permute.xlu1 %2118 }
 0x47a   : > { %8847 = vst [vmem:[#allocation173_spill] sm:$0xff] %v6679_v26  ;;  %v6683_v7 = vpop.permute.xlu0 %2234 }
 0x47b   : > { %8848 = vst [vmem:[#allocation182_spill] sm:$0xff] %v6681_v63 }
 0x47c   : > { %8849 = vst [vmem:[#allocation192_spill] sm:$0xff] %v6683_v7 }
 0x47f   : > { %2356 = vrot.lane.b32.xlu2 %v6198_v57, %s3877_s29  ;;  %2354 = vrot.lane.b32.xlu1 %v6174_v40, %s3877_s29 }
 0x480   : > { %2358 = vrot.lane.b32.xlu0 %v6201_v15, %s3877_s29 }
 0x481   : > { %v6691_v25 = vpop.permute.xlu2 %2256  ;;  %v6693_v54 = vpop.permute.xlu1 %2236 }
 0x482   : > { %8850 = vst [vmem:[#allocation35_spill] sm:$0xff] %v6691_v25  ;;  %v6695_v36 = vpop.permute.xlu0 %2240 }
 0x483   : > { %8851 = vst [vmem:[#allocation54_spill] sm:$0xff] %v6693_v54 }
 0x484   : > { %8852 = vst [vmem:[#allocation65_spill] sm:$0xff] %v6695_v36  ;;  %v6757_v36 = vld [vmem:[#allocation2 + $0x180] sm:$0xff] }
 0x487   : > { %2362 = vrot.lane.b32.xlu2 %v6228_v28, %s3877_s29  ;;  %2360 = vrot.lane.b32.xlu1 %v6225_v59, %s3877_s29 }
 0x488   : > { %2364 = vrot.lane.b32.xlu0 %v6256_v51, %s3877_s29 }
 0x489   : > { %v6703_v30 = vpop.permute.xlu2 %2262  ;;  %v6705_v40 = vpop.permute.xlu1 %2242 }
 0x48a   : > { %8853 = vst [vmem:[#allocation68_spill] sm:$0xff] %v6703_v30  ;;  %v6707_v8 = vpop.permute.xlu0 %2246 }
 0x48b   : > { %8854 = vst [vmem:[#allocation84_spill] sm:$0xff] %v6705_v40 }
 0x48c   : > { %8855 = vst [vmem:[#allocation103_spill] sm:$0xff] %v6707_v8 }
 0x48f   : > { %2368 = vrot.lane.b32.xlu2 %v6252_v17, %s3877_s29  ;;  %2366 = vrot.lane.b32.xlu1 %v6254_v43, %s3877_s29 }
 0x490   : > { %2370 = vrot.lane.b32.xlu0 %v6247_v13, %s3877_s29 }
 0x491   : > { %v6715_v45 = vpop.permute.xlu2 %2268  ;;  %v6717_v63 = vpop.permute.xlu1 %2248 }
 0x492   : > { %8856 = vst [vmem:[#allocation105_spill] sm:$0xff] %v6715_v45  ;;  %v6719_v3 = vpop.permute.xlu0 %2252 }
 0x493   : > { %8857 = vst [vmem:[#allocation124_spill] sm:$0xff] %v6717_v63 }
 0x494   : > { %8858 = vst [vmem:[#allocation147_spill] sm:$0xff] %v6719_v3 }
 0x497   : > { %2374 = vrot.lane.b32.xlu2 %v6277_v50, %s3877_s29  ;;  %2372 = vrot.lane.b32.xlu1 %v6285_v12, %s3877_s29 }
 0x498   : > { %2376 = vrot.lane.b32.xlu0 %v6314_v34, %s3877_s29 }
 0x499   : > { %v6727_v25 = vpop.permute.xlu2 %2274  ;;  %v6729_v26 = vpop.permute.xlu1 %2254 }
 0x49a   : > { %8859 = vst [vmem:[#allocation161_spill] sm:$0xff] %v6727_v25  ;;  %v6731_v8 = vpop.permute.xlu0 %2258 }
 0x49b   : > { %8860 = vst [vmem:[#allocation168_spill] sm:$0xff] %v6729_v26 }
 0x49c   : > { %8861 = vst [vmem:[#allocation176_spill] sm:$0xff] %v6731_v8 }
 0x49f   : > { %2380 = vrot.lane.b32.xlu2 %v6319_v5, %s3877_s29  ;;  %2378 = vrot.lane.b32.xlu1 %v6306_v39, %s3877_s29 }
 0x4a0   : > { %2382 = vrot.lane.b32.xlu0 %v6312_v6, %s3877_s29 }
 0x4a1   : > { %v6739_v3 = vpop.permute.xlu2 %2280  ;;  %v6741_v63 = vpop.permute.xlu1 %2260 }
 0x4a2   : > { %8862 = vst [vmem:[#allocation178_spill] sm:$0xff] %v6739_v3  ;;  %v6743_v56 = vpop.permute.xlu0 %2264  ;;  %v8876_v3 = vld [vmem:[#allocation112_spill] sm:$0xff] }
 0x4a3   : > { %8863 = vst [vmem:[#allocation189_spill] sm:$0xff] %v6743_v56 }
 0x4a7   : > { %2386 = vrot.lane.b32.xlu2 %v6338_v60, %s3877_s29  ;;  %2384 = vrot.lane.b32.xlu1 %v6346_v2, %s3877_s29 }
 0x4a8   : > { %2388 = vrot.lane.b32.xlu0 %v6375_v31, %s3877_s29 }
 0x4a9   : > { %v6751_v8 = vpop.permute.xlu2 %2286  ;;  %v6753_v26 = vpop.permute.xlu1 %2266 }
 0x4aa   : > { %8864 = vst [vmem:[#allocation40_spill] sm:$0xff] %v6751_v8  ;;  %v6755_v40 = vpop.permute.xlu0 %2270 }
 0x4ab   : > { %8865 = vst [vmem:[#allocation60_spill] sm:$0xff] %v6753_v26 }
 0x4af   : > { %2392 = vrot.lane.b32.xlu2 %v6757_v36, %s3877_s29  ;;  %2390 = vrot.lane.b32.xlu1 %v6367_v49, %s3877_s29 }
 0x4b0   : > { %2394 = vrot.lane.b32.xlu0 %v6763_v55, %s3877_s29 }
 0x4b1   : > { %v6767_v54 = vpop.permute.xlu2 %2292  ;;  %v6769_v45 = vpop.permute.xlu1 %2272 }
 0x4b2   : > { %8866 = vst [vmem:[#allocation79_spill] sm:$0xff] %v6767_v54  ;;  %v6771_v7 = vpop.permute.xlu0 %2276 }
 0x4b3   : > { %8867 = vst [vmem:[#allocation50_spill] sm:$0xff] %v6769_v45 }
 0x4b7   : > { %2436 = vrot.lane.b32.xlu2 %v6033_v37, %s3879_s6  ;;  %2434 = vrot.lane.b32.xlu1 %v6036_v46, %s3879_s6 }
 0x4b8   : > { %2438 = vrot.lane.b32.xlu0 %v6079_v1, %s3879_s6 }
 0x4b9   : > { %v6779_v26 = vpop.permute.xlu2 %2332  ;;  %v6781_v56 = vpop.permute.xlu1 %2278 }
 0x4ba   : > { %8868 = vst [vmem:[#allocation83_spill] sm:$0xff] %v6779_v26  ;;  %v6783_v8 = vpop.permute.xlu0 %2282  ;;  %v8874_v26 = vld [vmem:[#allocation52_spill] sm:$0xff] }
 0x4bb   : > { %8869 = vst [vmem:[#allocation104_spill] sm:$0xff] %v6781_v56 }
 0x4bc   : > { %8870 = vst [vmem:[#allocation117_spill] sm:$0xff] %v6783_v8 }
 0x4bf   : > { %2442 = vrot.lane.b32.xlu2 %v6106_v33, %s3879_s6  ;;  %2440 = vrot.lane.b32.xlu1 %v6082_v18, %s3879_s6 }
 0x4c0   : > { %2444 = vrot.lane.b32.xlu0 %v6103_v16, %s3879_s6 }
 0x4c1   : > { %v6791_v37 = vpop.permute.xlu2 %2338  ;;  %v6793_v46 = vpop.permute.xlu1 %2284 }
 0x4c2   : > { %8871 = vst [vmem:[#allocation136_spill] sm:$0xff] %v6791_v37  ;;  %v6795_v54 = vpop.permute.xlu0 %2288  ;;  %v8880_v37 = vld [vmem:[#allocation92_spill] sm:$0xff] }
 0x4c3   : > { %8872 = vst [vmem:[#allocation138_spill] sm:$0xff] %v6793_v46  ;;  %v8881_v46 = vld [vmem:[#allocation154_spill] sm:$0xff] }
 0x4c4   : > { %8873 = vst [vmem:[#allocation55_spill] sm:$0xff] %v6795_v54 }
 0x4c7   : > { %2448 = vrot.lane.b32.xlu2 %v8874_v26, %s3879_s6  ;;  %2446 = vrot.lane.b32.xlu1 %v8875_v24, %s3879_s6  ;;  %v8882_v26 = vld [vmem:[#allocation46_spill] sm:$0xff] }
 0x4c8   : > { %2450 = vrot.lane.b32.xlu0 %v8876_v3, %s3879_s6 }
 0x4c9   : > { %v6803_v27 = vpop.permute.xlu2 %2344  ;;  %v6805_v56 = vpop.permute.xlu1 %2290 }
 0x4ca   : > { %8877 = vst [vmem:[#allocation167_spill] sm:$0xff] %v6803_v27  ;;  %v6807_v25 = vpop.permute.xlu0 %2294  ;;  %v8886_v27 = vld [vmem:[#allocation126_spill] sm:$0xff] }
 0x4cb   : > { %8878 = vst [vmem:[#allocation177_spill] sm:$0xff] %v6805_v56 }
 0x4cc   : > { %8879 = vst [vmem:[#allocation185_spill] sm:$0xff] %v6807_v25  ;;  %v8887_v25 = vld [vmem:[#allocation33_spill] sm:$0xff] }
 0x4cf   : > { %2454 = vrot.lane.b32.xlu2 %v8880_v37, %s3879_s6  ;;  %2452 = vrot.lane.b32.xlu1 %v8881_v46, %s3879_s6  ;;  %v8888_v37 = vld [vmem:[#allocation51_spill] sm:$0xff] }
 0x4d0   : > { %2456 = vrot.lane.b32.xlu0 %v8882_v26, %s3879_s6 }
 0x4d1   : > { %v6815_v42 = vpop.permute.xlu2 %2350  ;;  %v6817_v24 = vpop.permute.xlu1 %2296 }
 0x4d2   : > { %8883 = vst [vmem:[#allocation194_spill] sm:$0xff] %v6815_v42  ;;  %v6819_v3 = vpop.permute.xlu0 %2334  ;;  %v8892_v42 = vld [vmem:[#allocation156_spill] sm:$0xff] }
 0x4d3   : > { %8884 = vst [vmem:[#allocation196_spill] sm:$0xff] %v6817_v24  ;;  %v8893_v24 = vld [vmem:[#allocation82_spill] sm:$0xff] }
 0x4d4   : > { %8885 = vst [vmem:[#allocation53_spill] sm:$0xff] %v6819_v3 }
 0x4d7   : > { %2460 = vrot.lane.b32.xlu2 %v8886_v27, %s3879_s6  ;;  %2458 = vrot.lane.b32.xlu1 %v8887_v25, %s3879_s6  ;;  %v8894_v27 = vld [vmem:[#allocation125_spill] sm:$0xff] }
 0x4d8   : > { %2462 = vrot.lane.b32.xlu0 %v8888_v37, %s3879_s6 }
 0x4d9   : > { %v6827_v56 = vpop.permute.xlu2 %2356  ;;  %v6829_v46 = vpop.permute.xlu1 %2336 }
 0x4da   : > { %8889 = vst [vmem:[#allocation47_spill] sm:$0xff] %v6827_v56  ;;  %v6831_v26 = vpop.permute.xlu0 %2340  ;;  %v8898_v56 = vld [vmem:[#allocation115_spill] sm:$0xff] }
 0x4db   : > { %8890 = vst [vmem:[#allocation72_spill] sm:$0xff] %v6829_v46 }
 0x4dc   : > { %8891 = vst [vmem:[#allocation74_spill] sm:$0xff] %v6831_v26  ;;  %v8899_v26 = vld [vmem:[#allocation34_spill] sm:$0xff] }
 0x4df   : > { %2466 = vrot.lane.b32.xlu2 %v8892_v42, %s3879_s6  ;;  %2464 = vrot.lane.b32.xlu1 %v8893_v24, %s3879_s6  ;;  %v8900_v42 = vld [vmem:[#allocation96_spill] sm:$0xff] }
 0x4e0   : > { %2468 = vrot.lane.b32.xlu0 %v8894_v27, %s3879_s6 }
 0x4e1   : > { %v6839_v3 = vpop.permute.xlu2 %2362  ;;  %v6841_v25 = vpop.permute.xlu1 %2342 }
 0x4e2   : > { %8895 = vst [vmem:[#allocation94_spill] sm:$0xff] %v6839_v3  ;;  %v6843_v37 = vpop.permute.xlu0 %2346  ;;  %v8903_v3 = vld [vmem:[#allocation95_spill] sm:$0xff] }
 0x4e3   : > { %8896 = vst [vmem:[#allocation116_spill] sm:$0xff] %v6841_v25  ;;  %v8905_v25 = vld [vmem:[#allocation37_spill] sm:$0xff] }
 0x4e4   : > { %8897 = vst [vmem:[#allocation137_spill] sm:$0xff] %v6843_v37  ;;  %v8904_v37 = vld [vmem:[#allocation48_spill] sm:$0xff] }
 0x4e7   : > { %2472 = vrot.lane.b32.xlu2 %v8898_v56, %s3879_s6  ;;  %2470 = vrot.lane.b32.xlu1 %v8899_v26, %s3879_s6 }
 0x4e8   : > { %2474 = vrot.lane.b32.xlu0 %v8900_v42, %s3879_s6 }
 0x4e9   : > { %v6851_v46 = vpop.permute.xlu2 %2368  ;;  %v6853_v24 = vpop.permute.xlu1 %2348 }
 0x4ea   : > { %8901 = vst [vmem:[#allocation151_spill] sm:$0xff] %v6853_v24  ;;  %v6855_v45 = vpop.permute.xlu0 %2352  ;;  %v8909_v24 = vld [vmem:[#allocation149_spill] sm:$0xff] }
 0x4eb   : > { %8902 = vst [vmem:[#allocation163_spill] sm:$0xff] %v6855_v45  ;;  %v8908_v45 = vld [vmem:[#allocation129_spill] sm:$0xff] }
 0x4ef   : > { %2478 = vrot.lane.b32.xlu2 %v8903_v3, %s3879_s6  ;;  %2476 = vrot.lane.b32.xlu1 %v8904_v37, %s3879_s6  ;;  %v6885_v3 = vld [vmem:[#allocation2 + $0x190] sm:$0x3] }
 0x4f0   : > { %2480 = vrot.lane.b32.xlu0 %v8905_v25, %s3879_s6 }
 0x4f1   : > { %v6863_v54 = vpop.permute.xlu2 %2374  ;;  %v6865_v21 = vpop.permute.xlu1 %2354 }
 0x4f2   : > { %8906 = vst [vmem:[#allocation165_spill] sm:$0xff] %v6865_v21  ;;  %v6867_v8 = vpop.permute.xlu0 %2358  ;;  %v8913_v21 = vld [vmem:[#allocation58_spill] sm:$0xff] }
 0x4f3   : > { %8907 = vst [vmem:[#allocation174_spill] sm:$0xff] %v6867_v8 }
 0x4f7   : > { %2484 = vrot.lane.b32.xlu2 %v6358_v0, %s3879_s6  ;;  %2482 = vrot.lane.b32.xlu1 %v8908_v45, %s3879_s6  ;;  %v8914_v0 = vld [vmem:[#allocation85_spill] sm:$0xff] }
 0x4f8   : > { %2486 = vrot.lane.b32.xlu0 %v8909_v24, %s3879_s6 }
 0x4f9   : > { %v6875_v30 = vpop.permute.xlu2 %2380  ;;  %v6877_v10 = vpop.permute.xlu1 %2360 }
 0x4fa   : > { %8910 = vst [vmem:[#allocation184_spill] sm:$0xff] %v6875_v30  ;;  %v6879_v25 = vpop.permute.xlu0 %2364  ;;  %v2430_v30 = vrot.slane %v6763_v55, 1 }
 0x4fb   : > { %8911 = vst [vmem:[#allocation195_spill] sm:$0xff] %v6877_v10 }
 0x4fc   : > { %8912 = vst [vmem:[#allocation39_spill] sm:$0xff] %v6879_v25  ;;  %v2432_v25 = vrot.slane %v6885_v3, 1 }
 0x4fe   : > { %v6899_v8 = vsel %vm327_vm0, %v2430_v30, %v2432_v25 }
 0x4ff   : > { %2490 = vrot.lane.b32.xlu2 %v6386_v47, %s3879_s6  ;;  %2488 = vrot.lane.b32.xlu1 %v8913_v21, %s3879_s6  ;;  %v2429_v47 = vrot.slane %v6757_v36, 1  ;;  %8917 = vst [vmem:[#allocation73_spill] sm:$0xff] %v6899_v8 }
 0x500   : > { %2492 = vrot.lane.b32.xlu0 %v8914_v0, %s3879_s6 }
 0x501   : > { %v6889_v45 = vpop.permute.xlu2 %2386  ;;  %v6891_v24 = vpop.permute.xlu1 %2366  ;;  %v6902_v21 = vsel %vm327_vm0, %v2429_v47, %v2430_v30  ;;  %v8922_v47 = vld [vmem:[#allocation141_spill] sm:$0xff] }
 0x502   : > { %8915 = vst [vmem:[#allocation70_spill] sm:$0xff] %v6891_v24  ;;  %v6894_v10 = vpop.permute.xlu0 %2370 }
 0x503   : > { %8916 = vst [vmem:[#allocation75_spill] sm:$0xff] %v6894_v10 }
 0x504   : > { %8918 = vst [vmem:[#allocation87_spill] sm:$0xff] %v6902_v21 }
 0x507   : > { %2496 = vrot.lane.b32.xlu2 %v6899_v8, %s3879_s6  ;;  %2494 = vrot.lane.b32.xlu1 %v6902_v21, %s3879_s6  ;;  %s7847_s6 = scalar_lea.vmem %s8123_s5, %s3743_s28 }
 0x508   : > { %2535 = vrot.lane.b32.xlu0 %v6399_v48, %s3881_s21 }
 0x509   : > { %v6910_v0 = vpop.permute.xlu2 %2392  ;;  %v6912_v24 = vpop.permute.xlu1 %2372 }
 0x50a   : > { %8919 = vst [vmem:[#allocation106_spill] sm:$0xff] %v6910_v0  ;;  %v6914_v10 = vpop.permute.xlu0 %2376  ;;  %v8926_v0 = vld [vmem:[#allocation159_spill] sm:$0xff] }
 0x50b   : > { %8920 = vst [vmem:[#allocation108_spill] sm:$0xff] %v6912_v24 }
 0x50c   : > { %8921 = vst [vmem:[#allocation127_spill] sm:$0xff] %v6914_v10 }
 0x50f   : > { %2539 = vrot.lane.b32.xlu2 %v6420_v32, %s3881_s21  ;;  %2537 = vrot.lane.b32.xlu1 %v6404_v20, %s3881_s21 }
 0x510   : > { %2541 = vrot.lane.b32.xlu0 %v8922_v47, %s3881_s21 }
 0x511   : > { %v6922_v25 = vpop.permute.xlu2 %2436  ;;  %v6924_v30 = vpop.permute.xlu1 %2378 }
 0x512   : > { %8923 = vst [vmem:[#allocation150_spill] sm:$0xff] %v6922_v25  ;;  %v6926_v48 = vpop.permute.xlu0 %2382  ;;  %v8930_v25 = vld [vmem:[#allocation57_spill] sm:$0xff] }
 0x513   : > { %8924 = vst [vmem:[#allocation164_spill] sm:$0xff] %v6924_v30 }
 0x514   : > { %8925 = vst [vmem:[#allocation170_spill] sm:$0xff] %v6926_v48  ;;  %v8931_v48 = vld [vmem:[#allocation99_spill] sm:$0xff] }
 0x517   : > { %2545 = vrot.lane.b32.xlu2 %v6441_v58, %s3881_s21  ;;  %2543 = vrot.lane.b32.xlu1 %v6423_v38, %s3881_s21 }
 0x518   : > { %2547 = vrot.lane.b32.xlu0 %v8926_v0, %s3881_s21 }
 0x519   : > { %v6934_v8 = vpop.permute.xlu2 %2442  ;;  %v6936_v20 = vpop.permute.xlu1 %2384 }
 0x51a   : > { %8927 = vst [vmem:[#allocation179_spill] sm:$0xff] %v6934_v8  ;;  %v6938_v21 = vpop.permute.xlu0 %2388  ;;  %v8935_v8 = vld [vmem:[#allocation140_spill] sm:$0xff] }
 0x51b   : > { %8928 = vst [vmem:[#allocation180_spill] sm:$0xff] %v6936_v20  ;;  %v2531_v20 = vrot.slane %v6763_v55, 2  ;;  %v2533_v55 = vrot.slane %v6885_v3, 2 }
 0x51c   : > { %8929 = vst [vmem:[#allocation190_spill] sm:$0xff] %v6938_v21 }
 0x51f   : > { %2551 = vrot.lane.b32.xlu2 %v6465_v23, %s3881_s21  ;;  %2549 = vrot.lane.b32.xlu1 %v8930_v25, %s3881_s21  ;;  %v7085_v25 = vld [vmem:[#allocation2 + $0x98] sm:$0xff] }
 0x520   : > { %2553 = vrot.lane.b32.xlu0 %v8931_v48, %s3881_s21 }
 0x521   : > { %v6946_v30 = vpop.permute.xlu2 %2448  ;;  %v6948_v10 = vpop.permute.xlu1 %2390 }
 0x522   : > { %8932 = vst [vmem:[#allocation36_spill] sm:$0xff] %v6946_v30  ;;  %v6950_v24 = vpop.permute.xlu0 %2394 }
 0x523   : > { %8933 = vst [vmem:[#allocation71_spill] sm:$0xff] %v6948_v10  ;;  %v8940_v10 = vld [vmem:[#allocation61_spill] sm:$0xff] }
 0x524   : > { %8934 = vst [vmem:[#allocation155_spill] sm:$0xff] %v6950_v24  ;;  %v8939_v24 = vld [vmem:[#allocation111_spill] sm:$0xff] }
 0x527   : > { %2557 = vrot.lane.b32.xlu2 %v6488_v22, %s3881_s21  ;;  %2555 = vrot.lane.b32.xlu1 %v8935_v8, %s3881_s21 }
 0x528   : > { %2559 = vrot.lane.b32.xlu0 %v6485_v61, %s3881_s21 }
 0x529   : > { %v6958_v23 = vpop.permute.xlu2 %2454  ;;  %v6960_v21 = vpop.permute.xlu1 %2434 }
 0x52a   : > { %8936 = vst [vmem:[#allocation86_spill] sm:$0xff] %v6958_v23  ;;  %v6962_v48 = vpop.permute.xlu0 %2438  ;;  %v8943_v23 = vld [vmem:[#allocation88_spill] sm:$0xff] }
 0x52b   : > { %8937 = vst [vmem:[#allocation120_spill] sm:$0xff] %v6960_v21 }
 0x52c   : > { %8938 = vst [vmem:[#allocation139_spill] sm:$0xff] %v6962_v48 }
 0x52f   : > { %2563 = vrot.lane.b32.xlu2 %v6514_v53, %s3881_s21  ;;  %2561 = vrot.lane.b32.xlu1 %v8939_v24, %s3881_s21 }
 0x530   : > { %2565 = vrot.lane.b32.xlu0 %v8940_v10, %s3881_s21 }
 0x531   : > { %v6970_v30 = vpop.permute.xlu2 %2460  ;;  %v6972_v22 = vpop.permute.xlu1 %2440 }
 0x532   : > { %8941 = vst [vmem:[#allocation169_spill] sm:$0xff] %v6972_v22  ;;  %v6974_v61 = vpop.permute.xlu0 %2444  ;;  %v8948_v22 = vld [vmem:[#allocation100_spill] sm:$0xff] }
 0x533   : > { %8942 = vst [vmem:[#allocation187_spill] sm:$0xff] %v6974_v61  ;;  %v8947_v61 = vld [vmem:[#allocation66_spill] sm:$0xff] }
 0x537   : > { %2569 = vrot.lane.b32.xlu2 %v6539_v52, %s3881_s21  ;;  %2567 = vrot.lane.b32.xlu1 %v8943_v23, %s3881_s21 }
 0x538   : > { %2571 = vrot.lane.b32.xlu0 %v6536_v19, %s3881_s21 }
 0x539   : > { %v6982_v53 = vpop.permute.xlu2 %2466  ;;  %v6984_v24 = vpop.permute.xlu1 %2446 }
 0x53a   : > { %8944 = vst [vmem:[#allocation197_spill] sm:$0xff] %v6982_v53  ;;  %v6986_v10 = vpop.permute.xlu0 %2450 }
 0x53b   : > { %8945 = vst [vmem:[#allocation122_spill] sm:$0xff] %v6984_v24 }
 0x53c   : > { %8946 = vst [vmem:[#allocation76_spill] sm:$0xff] %v6986_v10  ;;  %v8951_v10 = vld [vmem:[#allocation102_spill] sm:$0xff] }
 0x53f   : > { %2575 = vrot.lane.b32.xlu2 %v6565_v44, %s3881_s21  ;;  %2573 = vrot.lane.b32.xlu1 %v8947_v61, %s3881_s21 }
 0x540   : > { %2577 = vrot.lane.b32.xlu0 %v8948_v22, %s3881_s21 }
 0x541   : > { %v6994_v48 = vpop.permute.xlu2 %2472  ;;  %v6996_v23 = vpop.permute.xlu1 %2452 }
 0x542   : > { %8949 = vst [vmem:[#allocation119_spill] sm:$0xff] %v6996_v23  ;;  %v6998_v8 = vpop.permute.xlu0 %2456 }
 0x543   : > { %8950 = vst [vmem:[#allocation152_spill] sm:$0xff] %v6998_v8 }
 0x547   : > { %2581 = vrot.lane.b32.xlu2 %v6590_v9, %s3881_s21  ;;  %2579 = vrot.lane.b32.xlu1 %v8951_v10, %s3881_s21 }
 0x548   : > { %2583 = vrot.lane.b32.xlu0 %v6587_v11, %s3881_s21 }
 0x549   : > { %v7006_v24 = vpop.permute.xlu2 %2478  ;;  %v7008_v21 = vpop.permute.xlu1 %2458 }
 0x54a   : > { %8952 = vst [vmem:[#allocation166_spill] sm:$0xff] %v7008_v21  ;;  %v7010_v53 = vpop.permute.xlu0 %2462  ;;  %v2530_v21 = vrot.slane %v6757_v36, 2 }
 0x54f   : > { %2587 = vrot.lane.b32.xlu2 %v6616_v29, %s3881_s21  ;;  %2585 = vrot.lane.b32.xlu1 %v6593_v41, %s3881_s21  ;;  %v7031_v29 = vsel %vm504_vm1, %v2530_v21, %v2531_v20  ;;  %v7051_v21 = vld [vmem:[#allocation2 + $0x38] sm:$0xff] }
 0x550   : > { %2589 = vrot.lane.b32.xlu0 %v6613_v35, %s3881_s21  ;;  %8956 = vst [vmem:[#allocation90_spill] sm:$0xff] %v7031_v29 }
 0x551   : > { %v7018_v8 = vpop.permute.xlu2 %2484  ;;  %v7020_v23 = vpop.permute.xlu1 %2464  ;;  %8960 = vst [vmem:[#allocation181_spill] sm:$0xff] %v7051_v21 }
 0x552   : > { %8953 = vst [vmem:[#allocation186_spill] sm:$0xff] %v7018_v8  ;;  %v7022_v11 = vpop.permute.xlu0 %2468  ;;  %v3832_v8 = vld [vmem:[#allocation2 + $0x68] sm:$0xff] }
 0x553   : > { %8954 = vst [vmem:[#allocation43_spill] sm:$0xff] %v7020_v23  ;;  %v7043_v23 = vsel %vm504_vm1, %v2531_v20, %v2533_v55  ;;  %v7061_v55 = vld [vmem:[#allocation2 + $0x50] sm:$0xff] }
 0x554   : > { %8955 = vst [vmem:[#allocation199_spill] sm:$0xff] %v7022_v11 }
 0x555   : > { %8958 = vst [vmem:[#allocation38_spill] sm:$0xff] %v7043_v23 }
 0x556   : > { %8963 = vst [vmem:[#allocation89_spill] sm:$0xff] %v7061_v55 }
 0x557   : > { %2593 = vrot.lane.b32.xlu2 %v6635_v14, %s3881_s21  ;;  %2591 = vrot.lane.b32.xlu1 %v6621_v62, %s3881_s21  ;;  %v7045_v14 = vld [vmem:[#allocation2 + $0x30] sm:$0xff] }
 0x558   : > { %2595 = vrot.lane.b32.xlu0 %v7031_v29, %s3881_s21  ;;  %8959 = vst [vmem:[#allocation172_spill] sm:$0xff] %v7045_v14 }
 0x559   : > { %v7035_v35 = vpop.permute.xlu2 %2490  ;;  %v7037_v41 = vpop.permute.xlu1 %2470 }
 0x55a   : > { %8957 = vst [vmem:[#allocation109_spill] sm:$0xff] %v7035_v35  ;;  %v7039_v11 = vpop.permute.xlu0 %2474  ;;  %v3831_v35 = vld [vmem:[#allocation2 + $0x78] sm:$0xff] }
 0x55f   : > { %2633 = vrot.lane.b32.xlu2 %v7045_v14, %s3882_s22  ;;  %2597 = vrot.lane.b32.xlu1 %v7043_v23, %s3881_s21  ;;  %v7065_v14 = vld [vmem:[#allocation2 + $0x48] sm:$0xff]  ;;  %v3830_v23 = vld [vmem:[#allocation2 + $0x60] sm:$0xff] }
 0x560   : > { %2635 = vrot.lane.b32.xlu0 %v7051_v21, %s3882_s22  ;;  %8964 = vst [vmem:[#allocation123_spill] sm:$0xff] %v7065_v14 }
 0x561   : > { %v7055_v29 = vpop.permute.xlu1 %2476  ;;  %v7057_v3 = vpop.permute.xlu2 %2496 }
 0x562   : > { %8961 = vst [vmem:[#allocation42_spill] sm:$0xff] %v7057_v3  ;;  %v7059_v20 = vpop.permute.xlu0 %2480 }
 0x563   : > { %8962 = vst [vmem:[#allocation201_spill] sm:$0xff] %v7059_v20 }
 0x567   : > { %2639 = vrot.lane.b32.xlu2 %v7061_v55, %s3882_s22  ;;  %2637 = vrot.lane.b32.xlu1 %v7065_v14, %s3882_s22  ;;  %v3833_v55 = vld [vmem:[#allocation2 + $0x80] sm:$0xff] }
 0x568   : > { %2641 = vrot.lane.b32.xlu0 %v3830_v23, %s3882_s22 }
 0x569   : > { %v7070_v21 = vpop.permute.xlu1 %2482  ;;  %v7072_v62 = vpop.permute.xlu2 %2539 }
 0x56a   : > { %8965 = vst [vmem:[#allocation144_spill] sm:$0xff] %v7072_v62  ;;  %v7074_v3 = vpop.permute.xlu0 %2486  ;;  %v3835_v62 = vld [vmem:[#allocation2 + $0x90] sm:$0xff] }
 0x56f   : > { %2645 = vrot.lane.b32.xlu2 %v3831_v35, %s3882_s22  ;;  %2643 = vrot.lane.b32.xlu1 %v3832_v8, %s3882_s22 }
 0x570   : > { %2647 = vrot.lane.b32.xlu0 %v3833_v55, %s3882_s22 }
 0x571   : > { %v7079_v20 = vpop.permute.xlu1 %2488  ;;  %v7081_v14 = vpop.permute.xlu2 %2545 }
 0x572   : > { %v7083_v23 = vpop.permute.xlu0 %2492 }
 0x573   : > { %8966 = vst [vmem:[#allocation171_spill] sm:$0xff] %v7083_v23 }
 0x577   : > { %2651 = vrot.lane.b32.xlu2 %v7085_v25, %s3882_s22  ;;  %2649 = vrot.lane.b32.xlu1 %v3835_v62, %s3882_s22 }
 0x578   : > { %2653 = vrot.lane.b32.xlu0 %v6198_v57, %s3882_s22 }
 0x579   : > { %v7092_v35 = vpop.permute.xlu2 %2551  ;;  %v7094_v8 = vpop.permute.xlu1 %2494 }
 0x57a   : > { %8967 = vst [vmem:[#allocation188_spill] sm:$0xff] %v7092_v35  ;;  %v7096_v55 = vpop.permute.xlu0 %2535  ;;  %v8986_v35 = vld [vmem:[#allocation24_spill] sm:$0xff] }
 0x57b   : > { %8968 = vst [vmem:[#allocation198_spill] sm:$0xff] %v7094_v8 }
 0x57f   : > { %2657 = vrot.lane.b32.xlu2 %v6225_v59, %s3882_s22  ;;  %2655 = vrot.lane.b32.xlu1 %v6201_v15, %s3882_s22 }
 0x580   : > { %2659 = vrot.lane.b32.xlu0 %v6228_v28, %s3882_s22 }
 0x581   : > { %v7104_v23 = vpop.permute.xlu2 %2557  ;;  %v7106_v62 = vpop.permute.xlu1 %2537 }
 0x582   : > { %8969 = vst [vmem:[#allocation200_spill] sm:$0xff] %v7104_v23  ;;  %v7108_v57 = vpop.permute.xlu0 %2541 }
 0x587   : > { %2663 = vrot.lane.b32.xlu2 %v6254_v43, %s3882_s22  ;;  %2661 = vrot.lane.b32.xlu1 %v6256_v51, %s3882_s22 }
 0x588   : > { %2665 = vrot.lane.b32.xlu0 %v6252_v17, %s3882_s22 }
 0x589   : > { %v7116_v59 = vpop.permute.xlu2 %2563  ;;  %v7118_v15 = vpop.permute.xlu1 %2543 }
 0x58a   : > { %v7120_v28 = vpop.permute.xlu0 %2547 }
 0x58f   : > { %2669 = vrot.lane.b32.xlu2 %v6285_v12, %s3882_s22  ;;  %2667 = vrot.lane.b32.xlu1 %v6247_v13, %s3882_s22 }
 0x590   : > { %2671 = vrot.lane.b32.xlu0 %v6277_v50, %s3882_s22 }
 0x591   : > { %v7128_v43 = vpop.permute.xlu2 %2569  ;;  %v7130_v51 = vpop.permute.xlu1 %2549 }
 0x592   : > { %v7132_v17 = vpop.permute.xlu0 %2553 }
 0x593   : > { %8970 = vst [vmem:[#allocation125_spill] sm:$0xff] %v7132_v17 }
 0x597   : > { %2675 = vrot.lane.b32.xlu2 %v6306_v39, %s3882_s22  ;;  %2673 = vrot.lane.b32.xlu1 %v6314_v34, %s3882_s22 }
 0x598   : > { %2677 = vrot.lane.b32.xlu0 %v6319_v5, %s3882_s22 }
 0x599   : > { %v7140_v12 = vpop.permute.xlu2 %2575  ;;  %v7142_v13 = vpop.permute.xlu1 %2555 }
 0x59a   : > { %8971 = vst [vmem:[#allocation115_spill] sm:$0xff] %v7142_v13  ;;  %v7144_v50 = vpop.permute.xlu0 %2559 }
 0x59b   : > { %8972 = vst [vmem:[#allocation34_spill] sm:$0xff] %v7144_v50 }
 0x59f   : > { %2681 = vrot.lane.b32.xlu2 %v6346_v2, %s3882_s22  ;;  %2679 = vrot.lane.b32.xlu1 %v6312_v6, %s3882_s22 }
 0x5a0   : > { %2683 = vrot.lane.b32.xlu0 %v6338_v60, %s3882_s22 }
 0x5a1   : > { %v7152_v39 = vpop.permute.xlu2 %2581  ;;  %v7154_v34 = vpop.permute.xlu1 %2561 }
 0x5a2   : > { %v7156_v5 = vpop.permute.xlu0 %2565 }
 0x5a7   : > { %2687 = vrot.lane.b32.xlu2 %v6367_v49, %s3882_s22  ;;  %2685 = vrot.lane.b32.xlu1 %v6375_v31, %s3882_s22  ;;  %v8973_v49 = vld [vmem:[#allocation16_spill] sm:$0xff] }
 0x5a8   : > { %2689 = vrot.lane.b32.xlu0 %v6757_v36, %s3882_s22 }
 0x5a9   : > { %v7164_v2 = vpop.permute.xlu2 %2587  ;;  %v7166_v6 = vpop.permute.xlu1 %2567 }
 0x5aa   : > { %v2572_v60 = vpop.permute.xlu0 %2571 }
 0x5af   : > { %2866 = vrot.lane.b32.xlu2 %v6539_v52, %s3883_s23  ;;  %2765 = vrot.lane.b32.xlu1 %v8894_v27, %s3884_s24  ;;  %v8975_v52 = vld [vmem:[#allocation21_spill] sm:$0xff] }
 0x5b0   : > { %2962 = vrot.lane.b32.xlu0 %v8973_v49, %s3885_s25 }
 0x5b1   : > { %v7174_v31 = vpop.permute.xlu2 %2593  ;;  %v7176_v36 = vpop.permute.xlu1 %2573 }
 0x5b2   : > { %8974 = vst [vmem:[#allocation96_spill] sm:$0xff] %v7174_v31  ;;  %v7178_v8 = vpop.permute.xlu0 %2577  ;;  %v8976_v31 = vld [vmem:[#allocation4_spill] sm:$0xff] }
 0x5b7   : > { %2868 = vrot.lane.b32.xlu2 %v6536_v19, %s3883_s23  ;;  %2767 = vrot.lane.b32.xlu1 %v8899_v26, %s3884_s24 }
 0x5b8   : > { %2964 = vrot.lane.b32.xlu0 %v8975_v52, %s3885_s25 }
 0x5b9   : > { %v7186_v27 = vpop.permute.xlu2 %2633  ;;  %v7188_v50 = vpop.permute.xlu1 %2579 }
 0x5ba   : > { %v7190_v49 = vpop.permute.xlu0 %2583 }
 0x5bf   : > { %2836 = vrot.lane.b32.xlu2 %v6420_v32, %s3883_s23  ;;  %2735 = vrot.lane.b32.xlu1 %v6079_v1, %s3884_s24  ;;  %v8977_v32 = vld [vmem:[#allocation20_spill] sm:$0xff] }
 0x5c0   : > { %2769 = vrot.lane.b32.xlu0 %v8898_v56, %s3884_s24 }
 0x5c1   : > { %v7198_v19 = vpop.permute.xlu2 %2639  ;;  %v7200_v26 = vpop.permute.xlu1 %2585 }
 0x5c2   : > { %v7202_v52 = vpop.permute.xlu0 %2589 }
 0x5c7   : > { %2870 = vrot.lane.b32.xlu2 %v8947_v61, %s3883_s23  ;;  %2932 = vrot.lane.b32.xlu1 %v8976_v31, %s3885_s25 }
 0x5c8   : > { %2966 = vrot.lane.b32.xlu0 %v8977_v32, %s3885_s25 }
 0x5c9   : > { %v7210_v23 = vpop.permute.xlu2 %2645  ;;  %v7212_v1 = vpop.permute.xlu1 %2591 }
 0x5ca   : > { %v7214_v56 = vpop.permute.xlu0 %2595 }
 0x5cb   : > { %8978 = vst [vmem:[#allocation48_spill] sm:$0xff] %v7214_v56  ;;  %v8981_v56 = vld [vmem:[#allocation6_spill] sm:$0xff] }
 0x5cf   : > { %2838 = vrot.lane.b32.xlu2 %v8922_v47, %s3883_s23  ;;  %2737 = vrot.lane.b32.xlu1 %v6082_v18, %s3884_s24  ;;  %v8982_v47 = vld [vmem:[#allocation19_spill] sm:$0xff] }
 0x5d0   : > { %2771 = vrot.lane.b32.xlu0 %v8900_v42, %s3884_s24 }
 0x5d1   : > { %v7222_v61 = vpop.permute.xlu2 %2651  ;;  %v7224_v31 = vpop.permute.xlu1 %2597 }
 0x5d2   : > { %8979 = vst [vmem:[#allocation141_spill] sm:$0xff] %v7222_v61  ;;  %v7226_v32 = vpop.permute.xlu0 %2635 }
 0x5d3   : > { %8980 = vst [vmem:[#allocation159_spill] sm:$0xff] %v7224_v31  ;;  %v3836_v31 = vld [vmem:[#allocation2 + $0xd8] sm:$0xff] }
 0x5d7   : > { %2872 = vrot.lane.b32.xlu2 %v6565_v44, %s3883_s23  ;;  %2934 = vrot.lane.b32.xlu1 %v8981_v56, %s3885_s25 }
 0x5d8   : > { %2968 = vrot.lane.b32.xlu0 %v8982_v47, %s3885_s25 }
 0x5d9   : > { %v7234_v13 = vpop.permute.xlu2 %2657  ;;  %v7236_v18 = vpop.permute.xlu1 %2637 }
 0x5da   : > { %8983 = vst [vmem:[#allocation66_spill] sm:$0xff] %v7234_v13  ;;  %v7238_v42 = vpop.permute.xlu0 %2641  ;;  %v8984_v13 = vld [vmem:[#allocation183_spill] sm:$0xff] }
 0x5db   : > { %v3046_v61 = vsel %vm1316_vm4, %v3836_v31, %v8984_v13 }
 0x5dc   : > { %v3078_v17 = vsel %vm1382_vm7, %v3046_v61, %v6755_v40 }
 0x5df   : > { %2840 = vrot.lane.b32.xlu2 %v6423_v38, %s3883_s23  ;;  %2739 = vrot.lane.b32.xlu1 %v6106_v33, %s3884_s24  ;;  %v3110_v38 = vsel %vm1448_vm8, %v3078_v17, %v6851_v46  ;;  %v8985_v33 = vld [vmem:[#allocation3_spill] sm:$0xff]  ;;  %v3837_v17 = vld [vmem:[#allocation2 + $0xf8] sm:$0xff] }
 0x5e0   : > { %2773 = vrot.lane.b32.xlu0 %v8904_v37, %s3884_s24  ;;  %v3142_v37 = vsel %vm1514_vm9, %v3110_v38, %v7037_v41  ;;  %v3049_v31 = vsel %vm1316_vm4, %v3837_v17, %v6643_v4  ;;  %v8987_v41 = vld [vmem:[#allocation44_spill] sm:$0xff]  ;;  %v8988_v4 = vld [vmem:[#allocation174_spill] sm:$0xff] }
 0x5e1   : > { %v7246_v44 = vpop.permute.xlu2 %2663  ;;  %v7248_v56 = vpop.permute.xlu1 %2643  ;;  %v3175_v13 = vsel %vm3156_vm14, %v3142_v37, %v2572_v60  ;;  %v3041_v38 = vsel %vm1316_vm4, %v7085_v25, %v8987_v41 }
 0x5e2   : > { %v7250_v47 = vpop.permute.xlu0 %2647  ;;  %v3073_v60 = vsel %vm1382_vm7, %v3041_v38, %v6741_v63  ;;  %v3839_v38 = vld [vmem:[#allocation2 + $0x120] sm:$0xff] }
 0x5e3   : > { %v3105_v37 = vsel %vm1448_vm8, %v3073_v60, %v8988_v4  ;;  %v8992_v4 = vld [vmem:[#allocation68_spill] sm:$0xff] }
 0x5e4   : > { %v3137_v63 = vsel %vm1514_vm9, %v3105_v37, %v6970_v30  ;;  %v3330_v30 = vld [vmem:[%s8121_s3 + $0x48] sm:$0xf] }
 0x5e5   : > { %3749 = vmatpush.msk.msra.mxu2 %vm1653_vm2, %v3330_v30  ;;  %3708 = vmatpush.msk.msra.mxu1 %vm1653_vm2, %v3330_v30 }
 0x5e6   : > { %3750 = vmatpush.msk.msrb.mxu3 %vm1653_vm2, %v3330_v30  ;;  %vm3222_vm2 = vcmask 457728  }
 0x5e7   : > { %2874 = vrot.lane.b32.xlu2 %v8948_v22, %s3883_s23  ;;  %2936 = vrot.lane.b32.xlu1 %v8985_v33, %s3885_s25 }
 0x5e8   : > { %2970 = vrot.lane.b32.xlu0 %v8986_v35, %s3885_s25  ;;  %v3081_v35 = vsel %vm1382_vm7, %v3049_v31, %v6771_v7  ;;  %v8989_v7 = vld [vmem:[#allocation95_spill] sm:$0xff]  ;;  %v8990_v31 = vld [vmem:[#allocation145_spill] sm:$0xff] }
 0x5e9   : > { %v2670_v40 = vpop.permute.xlu2 %2669  ;;  %v7267_v61 = vpop.permute.xlu1 %2649  ;;  %v3113_v33 = vsel %vm1448_vm8, %v3081_v35, %v6863_v54  ;;  %v8991_v35 = vld [vmem:[#allocation91_spill] sm:$0xff] }
 0x5ea   : > { %v7270_v46 = vsel %vm3189_vm15, %v3175_v13, %v2670_v40  ;;  %v7272_v22 = vpop.permute.xlu0 %2653  ;;  %v3145_v25 = vsel %vm1514_vm9, %v3113_v33, %v7055_v29  ;;  %v3052_v60 = vsel %vm1316_vm4, %v3839_v38, %v8991_v35  ;;  %v3328_v33 = vld [vmem:[%s8121_s3 + $0x38] sm:$0xff] }
 0x5eb   : > { %v3178_v54 = vsel %vm3156_vm14, %v3145_v25, %v7178_v8  ;;  %v3329_v8 = vld [vmem:[%s8121_s3 + $0x40] sm:$0xff] }
 0x5ec   : > { %v8993_v25 = vld [vmem:[#allocation117_spill] sm:$0xff]  ;;  %3751 = vmatpush.msra.mxu2 %v3329_v8  ;;  %3442 = vmatpush.msra.mxu1 %v3329_v8 }
 0x5ed   : > { %3752 = vmatpush.msrb.mxu3 %v3329_v8  ;;  %v3840_v8 = vld [vmem:[#allocation2 + $0x140] sm:$0xff] }
 0x5ee   : > { %3753 = vmatpush.msra.mxu2 %v3328_v33  ;;  %3443 = vmatpush.msra.mxu1 %v3328_v33 }
 0x5ef   : > { %2842 = vrot.lane.b32.xlu2 %v6441_v58, %s3883_s23  ;;  %2741 = vrot.lane.b32.xlu1 %v6103_v16, %s3884_s24  ;;  %v3170_v16 = vsel %vm3156_vm14, %v3137_v63, %v7154_v34  ;;  %v3838_v34 = vld [vmem:[#allocation2 + $0xa8] sm:$0xff]  ;;  %v8994_v63 = vld [vmem:[#allocation184_spill] sm:$0xff] }
 0x5f0   : > { %2775 = vrot.lane.b32.xlu0 %v8989_v7, %s3884_s24  ;;  %v3042_v41 = vsel %vm1316_vm4, %v3838_v34, %v8990_v31  ;;  %v3084_v7 = vsel %vm1382_vm7, %v3052_v60, %v8993_v25  ;;  %v8997_v31 = vld [vmem:[#allocation23_spill] sm:$0xff]  ;;  %3754 = vmatpush.msrb.mxu3 %v3328_v33  ;;  %v9001_v33 = vld [vmem:[#allocation50_spill] sm:$0xff] }
 0x5f1   : > { %v2676_v13 = vpop.permute.xlu2 %2675  ;;  %v7299_v58 = vpop.permute.xlu1 %2655  ;;  %v3074_v37 = vsel %vm1382_vm7, %v3042_v41, %v8992_v4  ;;  %v3327_v41 = vld [vmem:[%s8121_s3 + $0x30] sm:$0xff] }
 0x5f2   : > { %v7304_v40 = vsel %vm3189_vm15, %v3178_v54, %v2676_v13  ;;  %v2660_v17 = vpop.permute.xlu0 %2659  ;;  %v3116_v54 = vsel %vm1448_vm8, %v3084_v7, %v8994_v63  ;;  %v8995_v13 = vld [vmem:[#allocation195_spill] sm:$0xff]  ;;  %3755 = vmatpush.msra.mxu2 %v3327_v41  ;;  %3444 = vmatpush.msra.mxu1 %v3327_v41  ;;  %v3324_v7 = vld [vmem:[%s8121_s3 + $0x18] sm:$0xff]  ;;  %v3841_v63 = vld [vmem:[#allocation2 + $0xe0] sm:$0xff] }
 0x5f3   : > { %v7307_v29 = vsel %vm3189_vm15, %v3170_v16, %v2660_v17  ;;  %v3106_v16 = vsel %vm1448_vm8, %v3074_v37, %v8995_v13  ;;  %v8996_v17 = vld [vmem:[#allocation5_spill] sm:$0xff]  ;;  %v3148_v34 = vsel %vm1514_vm9, %v3116_v54, %v7070_v21  ;;  %v8998_v37 = vld [vmem:[#allocation148_spill] sm:$0xff]  ;;  %3756 = vmatpush.msrb.mxu3 %v3327_v41  ;;  %v9003_v41 = vld [vmem:[#allocation75_spill] sm:$0xff] }
 0x5f4   : > { %v3138_v30 = vsel %vm1514_vm9, %v3106_v16, %v7010_v53  ;;  %v3181_v38 = vsel %vm3156_vm14, %v3148_v34, %v7190_v49  ;;  %v3325_v49 = vld [vmem:[%s8121_s3 + $0x20] sm:$0xff]  ;;  %v3055_v25 = vsel %vm1316_vm4, %v3840_v8, %v8998_v37  ;;  %v9000_v16 = vld [vmem:[#allocation55_spill] sm:$0xff] }
 0x5f5   : > { %v8999_v54 = vld [vmem:[#allocation81_spill] sm:$0xff] }
 0x5f6   : > { %v3047_v13 = vsel %vm1316_vm4, %v3841_v63, %v8999_v54 }
 0x5f7   : > { %2876 = vrot.lane.b32.xlu2 %v8951_v10, %s3883_s23  ;;  %2938 = vrot.lane.b32.xlu1 %v8996_v17, %s3885_s25  ;;  %v3171_v10 = vsel %vm3156_vm14, %v3138_v30, %v7116_v59  ;;  %v3326_v59 = vld [vmem:[%s8121_s3 + $0x28] sm:$0xff]  ;;  %v3087_v17 = vsel %vm1382_vm7, %v3055_v25, %v9000_v16  ;;  %v3079_v30 = vsel %vm1382_vm7, %v3047_v13, %v9001_v33 }
 0x5f8   : > { %2972 = vrot.lane.b32.xlu0 %v8997_v31, %s3885_s25  ;;  %3757 = vmatpush.msra.mxu2 %v3326_v59  ;;  %v3119_v34 = vsel %vm1448_vm8, %v3087_v17, %v6889_v45  ;;  %v9002_v31 = vld [vmem:[#allocation93_spill] sm:$0xff]  ;;  %v3323_v45 = vld [vmem:[%s8121_s3 + $0x10] sm:$0xff]  ;;  %v3843_v16 = vld [vmem:[#allocation2 + $0x108] sm:$0xff] }
 0x5f9   : > { %v2682_v35 = vpop.permute.xlu2 %2681  ;;  %v2662_v60 = vpop.permute.xlu1 %2661  ;;  %3445 = vmatpush.msra.mxu1 %v3326_v59  ;;  %3758 = vmatpush.msrb.mxu3 %v3326_v59  ;;  %v9005_v59 = vld [vmem:[#allocation193_spill] sm:$0xff]  ;;  %v9006_v17 = vld [vmem:[#allocation59_spill] sm:$0xff] }
 0x5fa   : > { %v7351_v53 = vsel %vm3189_vm15, %v3181_v38, %v2682_v35  ;;  %v7354_v21 = vsel %vm3189_vm15, %v3171_v10, %v2662_v60  ;;  %v7356_v4 = vpop.permute.xlu0 %2665  ;;  %3759 = vmatpush.msra.mxu2 %v3325_v49  ;;  %v3111_v10 = vsel %vm1448_vm8, %v3079_v30, %v9003_v41  ;;  %v3151_v38 = vsel %vm1514_vm9, %v3119_v34, %v7079_v20  ;;  %v9004_v35 = vld [vmem:[#allocation37_spill] sm:$0xff] }
 0x5fb   : > { %v3184_v60 = vsel %vm3156_vm14, %v3151_v38, %v7202_v52  ;;  %3446 = vmatpush.msra.mxu1 %v3325_v49  ;;  %v3321_v52 = vld [vmem:[%s8121_s3] sm:$0xff]  ;;  %3760 = vmatpush.msrb.mxu3 %v3325_v49  ;;  %v3050_v33 = vsel %vm1316_vm4, %v3843_v16, %v9006_v17  ;;  %v3845_v17 = vld [vmem:[#allocation2 + $0x128] sm:$0xff] }
 0x5fc   : > { %3761 = vmatpush.msra.mxu2 %v3324_v7  ;;  %v9007_v30 = vld [vmem:[#allocation161_spill] sm:$0xff] }
 0x5fd   : > { %3447 = vmatpush.msra.mxu1 %v3324_v7  ;;  %3762 = vmatpush.msrb.mxu3 %v3324_v7  ;;  %v9010_v38 = vld [vmem:[#allocation9_spill] sm:$0xff]  ;;  %v9011_v7 = vld [vmem:[#allocation127_spill] sm:$0xff] }
 0x5fe   : > { %3763 = vmatpush.msra.mxu2 %v3323_v45  ;;  %v9013_v16 = vld [vmem:[#allocation69_spill] sm:$0xff] }
 0x5ff   : > { %2844 = vrot.lane.b32.xlu2 %v8926_v0, %s3883_s23  ;;  %2743 = vrot.lane.b32.xlu1 %v9002_v31, %s3884_s24  ;;  %v3143_v0 = vsel %vm1514_vm9, %v3111_v10, %v6994_v48  ;;  %v3322_v48 = vld [vmem:[%s8121_s3 + $0x8] sm:$0xff]  ;;  %v9008_v31 = vld [vmem:[#allocation104_spill] sm:$0xff] }
 0x600   : > { %2777 = vrot.lane.b32.xlu0 %v9004_v35, %s3884_s24  ;;  %v3176_v20 = vsel %vm3156_vm14, %v3143_v0, %v7176_v36  ;;  %3765 = vmatpush.msra.mxu2 %v3322_v48  ;;  %v3842_v36 = vld [vmem:[#allocation2 + $0xf0] sm:$0xff]  ;;  %v3082_v41 = vsel %vm1382_vm7, %v3050_v33, %v9008_v31  ;;  %v9009_v10 = vld [vmem:[#allocation108_spill] sm:$0xff]  ;;  %v9014_v33 = vld [vmem:[#allocation114_spill] sm:$0xff] }
 0x601   : > { %v2688_v8 = vpop.permute.xlu2 %2687  ;;  %v7394_v37 = vpop.permute.xlu1 %2667  ;;  %v3048_v13 = vsel %vm1316_vm4, %v3842_v36, %v9005_v59  ;;  %3448 = vmatpush.msra.mxu1 %v3323_v45  ;;  %v3114_v35 = vsel %vm1448_vm8, %v3082_v41, %v9011_v7  ;;  %3764 = vmatpush.msrb.mxu3 %v3323_v45  ;;  %v3053_v45 = vsel %vm1316_vm4, %v3845_v17, %v9014_v33  ;;  %v9017_v41 = vld [vmem:[#allocation164_spill] sm:$0xff]  ;;  %v9021_v7 = vld [vmem:[#allocation201_spill] sm:$0xff]  ;;  %v9024_v33 = vld [vmem:[#allocation134_spill] sm:$0xff] }
 0x602   : > { %v7399_v25 = vsel %vm3189_vm15, %v3184_v60, %v2688_v8  ;;  %v2672_v63 = vpop.permute.xlu0 %2671  ;;  %v3080_v34 = vsel %vm1382_vm7, %v3048_v13, %v9007_v30  ;;  %3767 = vmatpush.msra.mxu2 %v3321_v52  ;;  %v9012_v60 = vld [vmem:[#allocation22_spill] sm:$0xff]  ;;  %v3146_v8 = vsel %vm1514_vm9, %v3114_v35, %v7006_v24  ;;  %v3844_v24 = vld [vmem:[#allocation2 + $0x110] sm:$0xff]  ;;  %v3846_v17 = vld [vmem:[#allocation2 + $0x138] sm:$0xff] }
 0x603   : > { %v7405_v54 = vsel %vm3189_vm15, %v3176_v20, %v2672_v63  ;;  %v3112_v49 = vsel %vm1448_vm8, %v3080_v34, %v9009_v10  ;;  %3449 = vmatpush.msra.mxu1 %v3322_v48  ;;  %v3179_v36 = vsel %vm3156_vm14, %v3146_v8, %v7188_v50  ;;  %3766 = vmatpush.msrb.mxu3 %v3322_v48  ;;  %v9015_v30 = vld [vmem:[#allocation178_spill] sm:$0xff]  ;;  %v9018_v48 = vld [vmem:[#allocation57_spill] sm:$0xff] }
 0x604   : > { %v3144_v0 = vsel %vm1514_vm9, %v3112_v49, %v7039_v11  ;;  %v9016_v34 = vld [vmem:[#allocation138_spill] sm:$0xff]  ;;  %v9019_v49 = vld [vmem:[#allocation52_spill] sm:$0xff] }
 0x605   : > { %v3177_v20 = vsel %vm3156_vm14, %v3144_v0, %v7140_v12  ;;  %3450 = vmatpush.msra.mxu1 %v3321_v52  ;;  %v3051_v12 = vsel %vm1316_vm4, %v3844_v24, %v9013_v16  ;;  %3768 = vmatpush.msrb.mxu3 %v3321_v52  ;;  %v3085_v31 = vsel %vm1382_vm7, %v3053_v45, %v9016_v34  ;;  %v9020_v52 = vld [vmem:[#allocation170_spill] sm:$0xff]  ;;  %v9022_v0 = vld [vmem:[#allocation129_spill] sm:$0xff]  ;;  %v9026_v34 = vld [vmem:[#allocation40_spill] sm:$0xff] }
 0x606   : > { %v3083_v50 = vsel %vm1382_vm7, %v3051_v12, %v9015_v30  ;;  %v3054_v45 = vsel %vm1316_vm4, %v3846_v17, %v9024_v33  ;;  %v3847_v30 = vld [vmem:[#allocation2 + $0x150] sm:$0xff] }
 0x607   : > { %2878 = vrot.lane.b32.xlu2 %v6590_v9, %s3883_s23  ;;  %2940 = vrot.lane.b32.xlu1 %v9010_v38, %s3885_s25  ;;  %v3115_v10 = vsel %vm1448_vm8, %v3083_v50, %v9017_v41  ;;  %v3117_v38 = vsel %vm1448_vm8, %v3085_v31, %v9020_v52  ;;  %v9025_v50 = vld [vmem:[#allocation191_spill] sm:$0xff]  ;;  %v3086_v31 = vsel %vm1382_vm7, %v3054_v45, %v9026_v34  ;;  %v9027_v41 = vld [vmem:[#allocation177_spill] sm:$0xff]  ;;  %v9030_v52 = vld [vmem:[#allocation8_spill] sm:$0xff] }
 0x608   : > { %2974 = vrot.lane.b32.xlu0 %v9012_v60, %s3885_s25  ;;  %v3147_v35 = vsel %vm1514_vm9, %v3115_v10, %v9021_v7  ;;  %v9023_v60 = vld [vmem:[#allocation186_spill] sm:$0xff]  ;;  %v9028_v10 = vld [vmem:[#allocation180_spill] sm:$0xff]  ;;  %v3848_v45 = vld [vmem:[#allocation2 + $0xb0] sm:$0xff] }
 0x609   : > { %v7434_v9 = vpop.permute.xlu2 %2866  ;;  %v2674_v63 = vpop.permute.xlu1 %2673  ;;  %v3149_v8 = vsel %vm1514_vm9, %v3117_v38, %v9023_v60  ;;  %v9031_v38 = vld [vmem:[#allocation190_spill] sm:$0xff]  ;;  %v9033_v60 = vld [vmem:[#allocation109_spill] sm:$0xff] }
 0x60a   : > { %v7439_v59 = vsel %vm3189_vm15, %v3177_v20, %v2674_v63  ;;  %v2678_v11 = vpop.permute.xlu0 %2677  ;;  %v3180_v20 = vsel %vm3156_vm14, %v3147_v35, %v7152_v39  ;;  %v3056_v39 = vsel %vm1316_vm4, %v3847_v30, %v9025_v50  ;;  %v9034_v30 = vld [vmem:[#allocation101_spill] sm:$0xff]  ;;  %v9036_v34 = vld [vmem:[#allocation94_spill] sm:$0xff] }
 0x60b   : > { %v7442_v13 = vsel %vm3189_vm15, %v3179_v36, %v2678_v11  ;;  %v3182_v11 = vsel %vm3156_vm14, %v3149_v8, %v7200_v26  ;;  %v3088_v26 = vsel %vm1382_vm7, %v3056_v39, %v9027_v41  ;;  %v3043_v50 = vsel %vm1316_vm4, %v3848_v45, %v9034_v30  ;;  %v9035_v39 = vld [vmem:[#allocation189_spill] sm:$0xff]  ;;  %v9037_v41 = vld [vmem:[#allocation43_spill] sm:$0xff] }
 0x60c   : > { %v3120_v7 = vsel %vm1448_vm8, %v3088_v26, %v9031_v38  ;;  %v9038_v26 = vld [vmem:[#allocation118_spill] sm:$0xff]  ;;  %v9044_v30 = vld [vmem:[#allocation197_spill] sm:$0xff] }
 0x60d   : > { %v3152_v8 = vsel %vm1514_vm9, %v3120_v7, %v9033_v60 }
 0x60f   : > { %2846 = vrot.lane.b32.xlu2 %v9018_v48, %s3883_s23  ;;  %2745 = vrot.lane.b32.xlu1 %v9019_v49, %s3884_s24  ;;  %v3118_v48 = vsel %vm1448_vm8, %v3086_v31, %v9028_v10  ;;  %v9029_v49 = vld [vmem:[#allocation45_spill] sm:$0xff]  ;;  %v9039_v10 = vld [vmem:[#allocation112_spill] sm:$0xff] }
 0x610   : > { %2779 = vrot.lane.b32.xlu0 %v9022_v0, %s3884_s24  ;;  %v3150_v35 = vsel %vm1514_vm9, %v3118_v48, %v7074_v3  ;;  %v9032_v0 = vld [vmem:[#allocation27_spill] sm:$0xff] }
 0x611   : > { %v2869_v63 = vpop.permute.xlu2 %2868  ;;  %v2680_v36 = vpop.permute.xlu1 %2679 }
 0x612   : > { %v7471_v24 = vsel %vm3189_vm15, %v3180_v20, %v2680_v36  ;;  %v2684_v16 = vpop.permute.xlu0 %2683  ;;  %v3183_v20 = vsel %vm3156_vm14, %v3150_v35, %v7164_v2  ;;  %v3075_v2 = vsel %vm1382_vm7, %v3043_v50, %v9035_v39  ;;  %v9045_v39 = vld [vmem:[#allocation80_spill] sm:$0xff] }
 0x613   : > { %v7474_v12 = vsel %vm3189_vm15, %v3182_v11, %v2684_v16  ;;  %v3185_v16 = vsel %vm3156_vm14, %v3152_v8, %v7212_v1  ;;  %v3107_v31 = vsel %vm1448_vm8, %v3075_v2, %v9036_v34  ;;  %v3849_v8 = vld [vmem:[#allocation2 + $0xc0] sm:$0xff]  ;;  %v9047_v34 = vld [vmem:[#allocation26_spill] sm:$0xff] }
 0x614   : > { %v3139_v1 = vsel %vm1514_vm9, %v3107_v31, %v9037_v41 }
 0x615   : > { %v3172_v48 = vsel %vm3156_vm14, %v3139_v1, %v7156_v5 }
 0x617   : > { %2880 = vrot.lane.b32.xlu2 %v9029_v49, %s3883_s23  ;;  %2942 = vrot.lane.b32.xlu1 %v9030_v52, %s3885_s25  ;;  %v9040_v49 = vld [vmem:[#allocation56_spill] sm:$0xff]  ;;  %v3205_v52 = vsel %vm3189_vm15, %v3172_v48, %v7246_v44  ;;  %v9043_v44 = vld [vmem:[#allocation39_spill] sm:$0xff] }
 0x618   : > { %2976 = vrot.lane.b32.xlu0 %v9032_v0, %s3885_s25 }
 0x619   : > { %v7500_v36 = vpop.permute.xlu2 %2836  ;;  %v2686_v11 = vpop.permute.xlu1 %2685 }
 0x61a   : > { %v7505_v17 = vsel %vm3189_vm15, %v3183_v20, %v2686_v11  ;;  %v2690_v33 = vpop.permute.xlu0 %2689  ;;  %v9041_v20 = vld [vmem:[#allocation146_spill] sm:$0xff] }
 0x61b   : > { %v7508_v3 = vsel %vm3189_vm15, %v3185_v16, %v2690_v33  ;;  %v3044_v5 = vsel %vm1316_vm4, %v3849_v8, %v9041_v20  ;;  %v9042_v16 = vld [vmem:[#allocation60_spill] sm:$0xff]  ;;  %v9052_v8 = vld [vmem:[#allocation133_spill] sm:$0xff] }
 0x61c   : > { %v3076_v33 = vsel %vm1382_vm7, %v3044_v5, %v9042_v16  ;;  %v9053_v20 = vld [vmem:[#allocation192_spill] sm:$0xff] }
 0x61d   : > { %v3108_v45 = vsel %vm1448_vm8, %v3076_v33, %v9043_v44  ;;  %v9054_v33 = vld [vmem:[#allocation105_spill] sm:$0xff] }
 0x61e   : > { %v3140_v50 = vsel %vm1514_vm9, %v3108_v45, %v9044_v30  ;;  %v9055_v45 = vld [vmem:[#allocation83_spill] sm:$0xff] }
 0x61f   : > { %2848 = vrot.lane.b32.xlu2 %v9038_v26, %s3883_s23  ;;  %2747 = vrot.lane.b32.xlu1 %v9039_v10, %s3884_s24  ;;  %v3173_v2 = vsel %vm3156_vm14, %v3140_v50, %v7166_v6  ;;  %v9049_v6 = vld [vmem:[#allocation154_spill] sm:$0xff] }
 0x620   : > { %2781 = vrot.lane.b32.xlu0 %v9040_v49, %s3884_s24  ;;  %v3206_v31 = vsel %vm3189_vm15, %v3173_v2, %v7356_v4  ;;  %v9057_v2 = vld [vmem:[#allocation120_spill] sm:$0xff] }
 0x621   : > { %v2871_v38 = vpop.permute.xlu2 %2870  ;;  %v2766_v7 = vpop.permute.xlu1 %2765 }
 0x622   : > { %v3238_v35 = vsel %vm3222_vm2, %v3205_v52, %v2766_v7  ;;  %v2963_v0 = vpop.permute.xlu0 %2962  ;;  %v9048_v52 = vld [vmem:[#allocation99_spill] sm:$0xff]  ;;  %v3850_v7 = vld [vmem:[#allocation2] sm:$0xff] }
 0x623   : > { %v3271_v60 = vsel %vm3255_vm3, %v3238_v35, %v7434_v9  ;;  %v9046_v9 = vld [vmem:[#allocation7_spill] sm:$0xff]  ;;  %v9050_v35 = vld [vmem:[#allocation97_spill] sm:$0xff] }
 0x624   : > { %v3304_v11 = vsel %vm3288_vm5, %v3271_v60, %v2963_v0  ;;  %v3028_v4 = vsel %vm1316_vm4, %v3850_v7, %v9050_v35  ;;  %v9051_v0 = vld [vmem:[#allocation149_spill] sm:$0xff]  ;;  %v3851_v60 = vld [vmem:[#allocation2 + $0xc8] sm:$0xff]  ;;  %v9060_v35 = vld [vmem:[#allocation12_spill] sm:$0xff] }
 0x625   : > { %3724 = vmatmul.msk.f32.vlgmr.msra.gmra.mxu2 %vm3335_vm6, %v3304_v11  ;;  %v3060_v5 = vsel %vm1382_vm7, %v3028_v4, %v9053_v20  ;;  %v9059_v7 = vld [vmem:[#allocation153_spill] sm:$0xff]  ;;  %v9063_v20 = vld [vmem:[#allocation92_spill] sm:$0xff] }
 0x626   : > { %v3092_v30 = vsel %vm1448_vm8, %v3060_v5, %v9055_v45  ;;  %v3852_v5 = vld [vmem:[#allocation2 + $0x8] sm:$0xff] }
 0x627   : > { %2882 = vrot.lane.b32.xlu2 %v9045_v39, %s3883_s23  ;;  %2944 = vrot.lane.b32.xlu1 %v9046_v9, %s3885_s25  ;;  %v9056_v39 = vld [vmem:[#allocation70_spill] sm:$0xff] }
 0x628   : > { %2978 = vrot.lane.b32.xlu0 %v9047_v34, %s3885_s25  ;;  %v3124_v34 = vsel %vm1514_vm9, %v3092_v30, %v9057_v2  ;;  %v9068_v2 = vld [vmem:[#allocation150_spill] sm:$0xff] }
 0x629   : > { %v2839_v41 = vpop.permute.xlu2 %2838  ;;  %v2768_v1 = vpop.permute.xlu1 %2767 }
 0x62a   : > { %v3239_v26 = vsel %vm3222_vm2, %v3206_v31, %v2768_v1  ;;  %v2965_v10 = vpop.permute.xlu0 %2964  ;;  %v9058_v31 = vld [vmem:[#allocation199_spill] sm:$0xff] }
 0x62b   : > { %v3272_v48 = vsel %vm3255_vm3, %v3239_v26, %v2869_v63  ;;  %v3045_v63 = vsel %vm1316_vm4, %v3851_v60, %v9052_v8  ;;  %v3157_v26 = vsel %vm3156_vm14, %v3124_v34, %v7096_v55  ;;  %v9061_v55 = vld [vmem:[#allocation25_spill] sm:$0xff] }
 0x62c   : > { %v3305_v49 = vsel %vm3288_vm5, %v3272_v48, %v2965_v10  ;;  %v3077_v44 = vsel %vm1382_vm7, %v3045_v63, %v9054_v33  ;;  %v3190_v48 = vsel %vm3189_vm15, %v3157_v26, %v7186_v27  ;;  %v9062_v63 = vld [vmem:[#allocation140_spill] sm:$0xff]  ;;  %v9065_v33 = vld [vmem:[#allocation58_spill] sm:$0xff] }
 0x62d   : > { %3725 = vmatmul.msk.f32.gmra.mxu2 %vm3335_vm6, %v3305_v49  ;;  %v3109_v9 = vsel %vm1448_vm8, %v3077_v44, %v9056_v39 }
 0x62e   : > { %v3141_v1 = vsel %vm1514_vm9, %v3109_v9, %v9058_v31 }
 0x62f   : > { %2850 = vrot.lane.b32.xlu2 %v9048_v52, %s3883_s23  ;;  %2749 = vrot.lane.b32.xlu1 %v9049_v6, %s3884_s24  ;;  %v3174_v10 = vsel %vm3156_vm14, %v3141_v1, %v7128_v43 }
 0x630   : > { %2783 = vrot.lane.b32.xlu0 %v9051_v0, %s3884_s24  ;;  %v3207_v49 = vsel %vm3189_vm15, %v3174_v10, %v7394_v37 }
 0x631   : > { %v2873_v11 = vpop.permute.xlu2 %2872  ;;  %v2736_v16 = vpop.permute.xlu1 %2735 }
 0x632   : > { %v2770_v50 = vpop.permute.xlu0 %2769  ;;  %v3223_v52 = vsel %vm3222_vm2, %v3190_v48, %v2736_v16  ;;  %v9064_v16 = vld [vmem:[#allocation128_spill] sm:$0xff]  ;;  %v9069_v48 = vld [vmem:[#allocation135_spill] sm:$0xff] }
 0x633   : > { %v3240_v6 = vsel %vm3222_vm2, %v3207_v49, %v2770_v50  ;;  %v3256_v27 = vsel %vm3255_vm3, %v3223_v52, %v7500_v36  ;;  %v3029_v36 = vsel %vm1316_vm4, %v3852_v5, %v9064_v16  ;;  %v9067_v50 = vld [vmem:[#allocation53_spill] sm:$0xff]  ;;  %v9070_v49 = vld [vmem:[#allocation11_spill] sm:$0xff]  ;;  %v9071_v52 = vld [vmem:[#allocation30_spill] sm:$0xff] }
 0x634   : > { %v3273_v60 = vsel %vm3255_vm3, %v3240_v6, %v2871_v38  ;;  %v9066_v38 = vld [vmem:[#allocation54_spill] sm:$0xff]  ;;  %v9077_v5 = vld [vmem:[#allocation72_spill] sm:$0xff] }
 0x635   : > { %v3061_v44 = vsel %vm1382_vm7, %v3029_v36, %v9066_v38 }
 0x636   : > { %v3093_v39 = vsel %vm1448_vm8, %v3061_v44, %v9067_v50  ;;  %v9079_v44 = vld [vmem:[#allocation144_spill] sm:$0xff] }
 0x637   : > { %2884 = vrot.lane.b32.xlu2 %v9059_v7, %s3883_s23  ;;  %2946 = vrot.lane.b32.xlu1 %v9060_v35, %s3885_s25  ;;  %v3125_v34 = vsel %vm1514_vm9, %v3093_v39, %v9068_v2  ;;  %v9080_v2 = vld [vmem:[#allocation175_spill] sm:$0xff] }
 0x638   : > { %2980 = vrot.lane.b32.xlu0 %v9061_v55, %s3885_s25  ;;  %v3158_v31 = vsel %vm3156_vm14, %v3125_v34, %v7106_v62  ;;  %v9081_v34 = vld [vmem:[#allocation10_spill] sm:$0xff] }
 0x639   : > { %v2841_v43 = vpop.permute.xlu2 %2840  ;;  %v2933_v4 = vpop.permute.xlu1 %2932  ;;  %v3191_v1 = vsel %vm3189_vm15, %v3158_v31, %v7226_v32  ;;  %v9082_v31 = vld [vmem:[#allocation29_spill] sm:$0xff] }
 0x63a   : > { %v2967_v0 = vpop.permute.xlu0 %2966  ;;  %v3289_v37 = vsel %vm3288_vm5, %v3256_v27, %v2933_v4  ;;  %v9072_v4 = vld [vmem:[#allocation98_spill] sm:$0xff] }
 0x63b   : > { %3709 = vmatmul.msk.f32.vlgmr.msra.gmra.mxu1 %vm3335_vm6, %v3289_v37  ;;  %v3306_v8 = vsel %vm3288_vm5, %v3273_v60, %v2967_v0  ;;  %v9073_v27 = vld [vmem:[#allocation46_spill] sm:$0xff]  ;;  %v3853_v0 = vld [vmem:[#allocation2 + $0x18] sm:$0xff]  ;;  %v9075_v60 = vld [vmem:[#allocation107_spill] sm:$0xff] }
 0x63c   : > { %3726 = vmatmul.msk.f32.gmra.mxu2 %vm3335_vm6, %v3306_v8  ;;  %v9074_v37 = vld [vmem:[#allocation158_spill] sm:$0xff] }
 0x63f   : > { %2852 = vrot.lane.b32.xlu2 %v9062_v63, %s3883_s23  ;;  %2751 = vrot.lane.b32.xlu1 %v9063_v20, %s3884_s24 }
 0x640   : > { %2785 = vrot.lane.b32.xlu0 %v9065_v33, %s3884_s24  ;;  %v9078_v33 = vld [vmem:[#allocation139_spill] sm:$0xff] }
 0x641   : > { %v2875_v45 = vpop.permute.xlu2 %2874  ;;  %v2738_v30 = vpop.permute.xlu1 %2737 }
 0x642   : > { %v2772_v9 = vpop.permute.xlu0 %2771  ;;  %v3224_v26 = vsel %vm3222_vm2, %v3191_v1, %v2738_v30 }
 0x643   : > { %v3241_v10 = vsel %vm3222_vm2, %v7270_v46, %v2772_v9  ;;  %v3257_v62 = vsel %vm3255_vm3, %v3224_v26, %v2839_v41  ;;  %v3030_v41 = vsel %vm1316_vm4, %v3853_v0, %v9074_v37 }
 0x644   : > { %v3274_v55 = vsel %vm3255_vm3, %v3241_v10, %v2873_v11  ;;  %v9076_v11 = vld [vmem:[#allocation113_spill] sm:$0xff] }
 0x645   : > { %v3062_v8 = vsel %vm1382_vm7, %v3030_v41, %v9076_v11  ;;  %v9089_v41 = vld [vmem:[#allocation169_spill] sm:$0xff] }
 0x646   : > { %v3094_v16 = vsel %vm1448_vm8, %v3062_v8, %v9077_v5 }
 0x647   : > { %2886 = vrot.lane.b32.xlu2 %v9069_v48, %s3883_s23  ;;  %2948 = vrot.lane.b32.xlu1 %v9070_v49, %s3885_s25  ;;  %v3126_v38 = vsel %vm1514_vm9, %v3094_v16, %v9078_v33  ;;  %v9090_v16 = vld [vmem:[#allocation49_spill] sm:$0xff]  ;;  %v9092_v33 = vld [vmem:[#allocation28_spill] sm:$0xff] }
 0x648   : > { %2982 = vrot.lane.b32.xlu0 %v9071_v52, %s3885_s25  ;;  %v3159_v30 = vsel %vm3156_vm14, %v3126_v38, %v9079_v44  ;;  %v9083_v52 = vld [vmem:[#allocation77_spill] sm:$0xff] }
 0x649   : > { %v2843_v6 = vpop.permute.xlu2 %2842  ;;  %v2935_v7 = vpop.permute.xlu1 %2934  ;;  %v3192_v50 = vsel %vm3189_vm15, %v3159_v30, %v7236_v18 }
 0x64a   : > { %v2969_v35 = vpop.permute.xlu0 %2968  ;;  %v3290_v32 = vsel %vm3288_vm5, %v3257_v62, %v2935_v7  ;;  %v9084_v7 = vld [vmem:[#allocation33_spill] sm:$0xff] }
 0x64b   : > { %3710 = vmatmul.msk.f32.gmra.mxu1 %vm3335_vm6, %v3290_v32  ;;  %v3307_v46 = vsel %vm3288_vm5, %v3274_v55, %v2969_v35  ;;  %v3854_v62 = vld [vmem:[#allocation2 + $0x20] sm:$0xff]  ;;  %v9085_v35 = vld [vmem:[#allocation130_spill] sm:$0xff] }
 0x64c   : > { %3727 = vmatmul.msk.f32.gmra.mxu2 %vm3335_vm6, %v3307_v46  ;;  %v9086_v32 = vld [vmem:[#allocation85_spill] sm:$0xff] }
 0x64f   : > { %2854 = vrot.lane.b32.xlu2 %v9072_v4, %s3883_s23  ;;  %2753 = vrot.lane.b32.xlu1 %v9073_v27, %s3884_s24  ;;  %v9088_v27 = vld [vmem:[#allocation136_spill] sm:$0xff] }
 0x650   : > { %2787 = vrot.lane.b32.xlu0 %v9075_v60, %s3884_s24 }
 0x651   : > { %v2877_v63 = vpop.permute.xlu2 %2876  ;;  %v2740_v20 = vpop.permute.xlu1 %2739 }
 0x652   : > { %v2774_v36 = vpop.permute.xlu0 %2773  ;;  %v3225_v39 = vsel %vm3222_vm2, %v3192_v50, %v2740_v20 }
 0x653   : > { %v3242_v9 = vsel %vm3222_vm2, %v7405_v54, %v2774_v36  ;;  %v3258_v10 = vsel %vm3255_vm3, %v3225_v39, %v2841_v43  ;;  %v3031_v43 = vsel %vm1316_vm4, %v3854_v62, %v9085_v35  ;;  %v9091_v36 = vld [vmem:[#allocation15_spill] sm:$0xff] }
 0x654   : > { %v3275_v49 = vsel %vm3255_vm3, %v3242_v9, %v2875_v45  ;;  %v9087_v45 = vld [vmem:[#allocation65_spill] sm:$0xff]  ;;  %v9093_v39 = vld [vmem:[#allocation111_spill] sm:$0xff]  ;;  %v9094_v9 = vld [vmem:[#allocation126_spill] sm:$0xff] }
 0x655   : > { %v3063_v55 = vsel %vm1382_vm7, %v3031_v43, %v9087_v45  ;;  %v9101_v45 = vld [vmem:[#allocation90_spill] sm:$0xff] }
 0x656   : > { %v3095_v0 = vsel %vm1448_vm8, %v3063_v55, %v9088_v27  ;;  %v9102_v55 = vld [vmem:[#allocation14_spill] sm:$0xff] }
 0x657   : > { %2888 = vrot.lane.b32.xlu2 %v9080_v2, %s3883_s23  ;;  %2950 = vrot.lane.b32.xlu1 %v9081_v34, %s3885_s25  ;;  %v3127_v60 = vsel %vm1514_vm9, %v3095_v0, %v9089_v41  ;;  %v9095_v2 = vld [vmem:[#allocation157_spill] sm:$0xff]  ;;  %v9096_v34 = vld [vmem:[#allocation172_spill] sm:$0xff] }
 0x658   : > { %2984 = vrot.lane.b32.xlu0 %v9082_v31, %s3885_s25  ;;  %v3160_v11 = vsel %vm3156_vm14, %v3127_v60, %v7108_v57  ;;  %v9097_v31 = vld [vmem:[#allocation87_spill] sm:$0xff]  ;;  %v3855_v60 = vld [vmem:[#allocation2 + $0x188] sm:$0xff] }
 0x659   : > { %v2845_v1 = vpop.permute.xlu2 %2844  ;;  %v2937_v26 = vpop.permute.xlu1 %2936  ;;  %v3193_v8 = vsel %vm3189_vm15, %v3160_v11, %v7198_v19  ;;  %v9104_v11 = vld [vmem:[#allocation51_spill] sm:$0xff] }
 0x65a   : > { %v2971_v48 = vpop.permute.xlu0 %2970  ;;  %v3291_v18 = vsel %vm3288_vm5, %v3258_v10, %v2937_v26 }
 0x65b   : > { %3711 = vmatmul.msk.f32.gmra.mxu1 %vm3335_vm6, %v3291_v18  ;;  %v3308_v54 = vsel %vm3288_vm5, %v3275_v49, %v2971_v48  ;;  %v9099_v18 = vld [vmem:[#allocation74_spill] sm:$0xff] }
 0x65c   : > { %3728 = vmatmul.msk.f32.gmra.mxu2 %vm3335_vm6, %v3308_v54 }
 0x65f   : > { %2856 = vrot.lane.b32.xlu2 %v9083_v52, %s3883_s23  ;;  %2755 = vrot.lane.b32.xlu1 %v9084_v7, %s3884_s24  ;;  %v9100_v52 = vld [vmem:[#allocation179_spill] sm:$0xff] }
 0x660   : > { %2789 = vrot.lane.b32.xlu0 %v9086_v32, %s3884_s24 }
 0x661   : > { %v2879_v46 = vpop.permute.xlu2 %2878  ;;  %v2742_v4 = vpop.permute.xlu1 %2741 }
 0x662   : > { %v2776_v37 = vpop.permute.xlu0 %2775  ;;  %v3226_v20 = vsel %vm3222_vm2, %v3193_v8, %v2742_v4  ;;  %v9103_v4 = vld [vmem:[#allocation32_spill] sm:$0xff] }
 0x663   : > { %v3243_v5 = vsel %vm3222_vm2, %v7439_v59, %v2776_v37  ;;  %v3259_v57 = vsel %vm3255_vm3, %v3226_v20, %v2843_v6  ;;  %v3032_v6 = vsel %vm1316_vm4, %v9096_v34, %v9095_v2  ;;  %v9105_v8 = vld [vmem:[#allocation132_spill] sm:$0xff]  ;;  %v9106_v20 = vld [vmem:[#allocation181_spill] sm:$0xff] }
 0x664   : > { %v3276_v50 = vsel %vm3255_vm3, %v3243_v5, %v2877_v63  ;;  %v9098_v63 = vld [vmem:[#allocation84_spill] sm:$0xff]  ;;  %v9107_v5 = vld [vmem:[#allocation63_spill] sm:$0xff]  ;;  %v9111_v34 = vld [vmem:[#allocation13_spill] sm:$0xff] }
 0x665   : > { %v3064_v26 = vsel %vm1382_vm7, %v3032_v6, %v9098_v63  ;;  %v9112_v6 = vld [vmem:[#allocation73_spill] sm:$0xff] }
 0x666   : > { %v3096_v49 = vsel %vm1448_vm8, %v3064_v26, %v9099_v18 }
 0x667   : > { %2890 = vrot.lane.b32.xlu2 %v9090_v16, %s3883_s23  ;;  %2952 = vrot.lane.b32.xlu1 %v9091_v36, %s3885_s25  ;;  %v3128_v7 = vsel %vm1514_vm9, %v3096_v49, %v9100_v52  ;;  %v1927_v49 = vld [vmem:[#allocation2 + $0x198] sm:$0xff]  ;;  %v9114_v52 = vld [vmem:[#allocation82_spill] sm:$0xff] }
 0x668   : > { %2986 = vrot.lane.b32.xlu0 %v9092_v33, %s3885_s25  ;;  %v3161_v62 = vsel %vm3156_vm14, %v3128_v7, %v7118_v15  ;;  %v9115_v7 = vld [vmem:[#allocation31_spill] sm:$0xff] }
 0x669   : > { %v2847_v38 = vpop.permute.xlu2 %2846  ;;  %v2939_v44 = vpop.permute.xlu1 %2938  ;;  %v3194_v35 = vsel %vm3189_vm15, %v3161_v62, %v7238_v42  ;;  %v9117_v62 = vld [vmem:[#allocation123_spill] sm:$0xff] }
 0x66a   : > { %v2973_v30 = vpop.permute.xlu0 %2972  ;;  %v3292_v19 = vsel %vm3288_vm5, %v3259_v57, %v2939_v44  ;;  %v9109_v44 = vld [vmem:[#allocation116_spill] sm:$0xff] }
 0x66b   : > { %3712 = vmatmul.msk.f32.gmra.mxu1 %vm3335_vm6, %v3292_v19  ;;  %v3309_v59 = vsel %vm3288_vm5, %v3276_v50, %v2973_v30  ;;  %v9110_v19 = vld [vmem:[#allocation187_spill] sm:$0xff] }
 0x66c   : > { %3729 = vmatmul.msk.f32.gmra.mxu2 %vm3335_vm6, %v3309_v59 }
 0x66f   : > { %2858 = vrot.lane.b32.xlu2 %v9093_v39, %s3883_s23  ;;  %2757 = vrot.lane.b32.xlu1 %v9094_v9, %s3884_s24 }
 0x670   : > { %2791 = vrot.lane.b32.xlu0 %v9097_v31, %s3884_s24  ;;  %v9113_v31 = vld [vmem:[#allocation38_spill] sm:$0xff] }
 0x671   : > { %v2881_v10 = vpop.permute.xlu2 %2880  ;;  %v2744_v48 = vpop.permute.xlu1 %2743 }
 0x672   : > { %v2778_v54 = vpop.permute.xlu0 %2777  ;;  %v3227_v43 = vsel %vm3222_vm2, %v3194_v35, %v2744_v48 }
 0x673   : > { %v3244_v32 = vsel %vm3222_vm2, %v7304_v40, %v2778_v54  ;;  %v3260_v0 = vsel %vm3255_vm3, %v3227_v43, %v2845_v1  ;;  %v3033_v1 = vsel %vm1316_vm4, %v9106_v20, %v9105_v8  ;;  %v1928_v54 = vld [vmem:[#allocation2 + $0x1a0] sm:$0xff]  ;;  %v1929_v8 = vld [vmem:[#allocation2 + $0x1a8] sm:$0x3] }
 0x674   : > { %v3277_v41 = vsel %vm3255_vm3, %v3244_v32, %v2879_v46  ;;  %v9108_v46 = vld [vmem:[#allocation64_spill] sm:$0xff]  ;;  %v2730_v32 = vrot.slane %v1927_v49, 1 }
 0x675   : > { %v3065_v16 = vsel %vm1382_vm7, %v3033_v1, %v9108_v46  ;;  %v2733_v46 = vrot.slane %v1929_v8, 1 }
 0x676   : > { %v3097_v57 = vsel %vm1448_vm8, %v3065_v16, %v9109_v44  ;;  %v2832_v16 = vrot.slane %v1928_v54, 2 }
 0x677   : > { %2892 = vrot.lane.b32.xlu2 %v9101_v45, %s3883_s23  ;;  %2954 = vrot.lane.b32.xlu1 %v9102_v55, %s3885_s25  ;;  %v3129_v50 = vsel %vm1514_vm9, %v3097_v57, %v9110_v19 }
 0x678   : > { %2988 = vrot.lane.b32.xlu0 %v9103_v4, %s3885_s25  ;;  %v3162_v59 = vsel %vm3156_vm14, %v3129_v50, %v7081_v14  ;;  %v2731_v4 = vrot.slane %v1928_v54, 1 }
 0x679   : > { %v7727_v27 = vpop.permute.xlu2 %2848  ;;  %v2941_v15 = vpop.permute.xlu1 %2940  ;;  %v3195_v39 = vsel %vm3189_vm15, %v3162_v59, %v7248_v56 }
 0x67a   : > { %v2975_v42 = vpop.permute.xlu0 %2974  ;;  %v3293_v37 = vsel %vm3288_vm5, %v3260_v0, %v2941_v15  ;;  %v9119_v15 = vld [vmem:[#allocation167_spill] sm:$0xff]  ;;  %v2734_v50 = vsel %vm327_vm0, %v2731_v4, %v2733_v46 }
 0x67b   : > { %3713 = vmatmul.msk.f32.gmra.mxu1 %vm3335_vm6, %v3293_v37  ;;  %v3310_v40 = vsel %vm3288_vm5, %v3277_v41, %v2975_v42  ;;  %v9120_v37 = vld [vmem:[#allocation122_spill] sm:$0xff] }
 0x67c   : > { %3730 = vmatmul.msk.f32.gmra.mxu2 %vm3335_vm6, %v3310_v40 }
 0x67f   : > { %2691 = vrot.lane.b32.xlu2 %v3855_v60, %s3882_s22  ;;  %2759 = vrot.lane.b32.xlu1 %v9104_v11, %s3884_s24  ;;  %v2732_v11 = vsel %vm327_vm0, %v2730_v32, %v2731_v4 }
 0x680   : > { %2860 = vrot.lane.b32.xlu0 %v9107_v5, %s3883_s23  ;;  %v9121_v5 = vld [vmem:[#allocation61_spill] sm:$0xff] }
 0x681   : > { %v2883_v36 = vpop.permute.xlu2 %2882  ;;  %v2746_v33 = vpop.permute.xlu1 %2745 }
 0x682   : > { %v2780_v30 = vpop.permute.xlu0 %2779  ;;  %v3228_v9 = vsel %vm3222_vm2, %v3195_v39, %v2746_v33  ;;  %v9122_v39 = vld [vmem:[#allocation18_spill] sm:$0xff] }
 0x683   : > { %v3245_v2 = vsel %vm3222_vm2, %v7442_v13, %v2780_v30  ;;  %v3261_v26 = vsel %vm3255_vm3, %v3228_v9, %v2847_v38  ;;  %v9116_v38 = vld [vmem:[#allocation110_spill] sm:$0xff]  ;;  %v9124_v9 = vld [vmem:[#allocation89_spill] sm:$0xff] }
 0x684   : > { %v3278_v18 = vsel %vm3255_vm3, %v3245_v2, %v2881_v10  ;;  %v3034_v35 = vsel %vm1316_vm4, %v9117_v62, %v9116_v38  ;;  %v9118_v10 = vld [vmem:[#allocation103_spill] sm:$0xff] }
 0x685   : > { %v3066_v43 = vsel %vm1382_vm7, %v3034_v35, %v9118_v10  ;;  %v9128_v35 = vld [vmem:[#allocation143_spill] sm:$0xff] }
 0x686   : > { %v3098_v0 = vsel %vm1448_vm8, %v3066_v43, %v9119_v15 }
 0x687   : > { %2956 = vrot.lane.b32.xlu2 %v9111_v34, %s3885_s25  ;;  %2793 = vrot.lane.b32.xlu1 %v9112_v6, %s3884_s24  ;;  %v3130_v41 = vsel %vm1514_vm9, %v3098_v0, %v9120_v37  ;;  %v9125_v34 = vld [vmem:[#allocation124_spill] sm:$0xff] }
 0x688   : > { %2894 = vrot.lane.b32.xlu0 %v9113_v31, %s3883_s23  ;;  %v3163_v40 = vsel %vm3156_vm14, %v3130_v41, %v7120_v28  ;;  %v2831_v28 = vrot.slane %v1927_v49, 2  ;;  %v9131_v37 = vld [vmem:[#allocation156_spill] sm:$0xff]  ;;  %v3856_v41 = vld [vmem:[#allocation2 + $0x60] sm:$0xff] }
 0x689   : > { %v7762_v63 = vpop.permute.xlu2 %2850  ;;  %v2943_v14 = vpop.permute.xlu1 %2942  ;;  %v3196_v60 = vsel %vm3189_vm15, %v3163_v40, %v7210_v23  ;;  %v9132_v40 = vld [vmem:[#allocation131_spill] sm:$0xff] }
 0x68a   : > { %v2977_v56 = vpop.permute.xlu0 %2976  ;;  %v3294_v48 = vsel %vm3288_vm5, %v3261_v26, %v2943_v14  ;;  %v2833_v59 = vsel %vm504_vm1, %v2831_v28, %v2832_v16  ;;  %v9126_v26 = vld [vmem:[#allocation137_spill] sm:$0xff]  ;;  %v9135_v28 = vld [vmem:[#allocation151_spill] sm:$0xff] }
 0x68b   : > { %3714 = vmatmul.msk.f32.gmra.mxu1 %vm3335_vm6, %v3294_v48  ;;  %v3311_v13 = vsel %vm3288_vm5, %v3278_v18, %v2977_v56  ;;  %v9127_v18 = vld [vmem:[#allocation36_spill] sm:$0xff] }
 0x68c   : > { %3731 = vmatmul.msk.f32.gmra.mxu2 %vm3335_vm6, %v3311_v13 }
 0x68f   : > { %2761 = vrot.lane.b32.xlu2 %v9114_v52, %s3884_s24  ;;  %2990 = vrot.lane.b32.xlu1 %v9115_v7, %s3885_s25  ;;  %v7828_v7 = vld [vmem:[%s8122_s4] ss:$0 sm:$0xff] }
 0x690   : > { %2693 = vrot.lane.b32.xlu0 %v1927_v49, %s3882_s22 }
 0x691   : > { %v2885_v45 = vpop.permute.xlu2 %2884  ;;  %v2748_v55 = vpop.permute.xlu1 %2747 }
 0x692   : > { %v2782_v42 = vpop.permute.xlu0 %2781  ;;  %v3229_v20 = vsel %vm3222_vm2, %v3196_v60, %v2748_v55 }
 0x693   : > { %v3246_v1 = vsel %vm3222_vm2, %v7471_v24, %v2782_v42  ;;  %v3262_v44 = vsel %vm3255_vm3, %v3229_v20, %v7727_v27  ;;  %v9123_v27 = vld [vmem:[#allocation78_spill] sm:$0xff] }
 0x694   : > { %v3279_v24 = vsel %vm3255_vm3, %v3246_v1, %v2883_v36  ;;  %v3035_v2 = vsel %vm1316_vm4, %v9124_v9, %v9123_v27  ;;  %v2834_v36 = vrot.slane %v1929_v8, 2  ;;  %v9134_v8 = vld [vmem:[#allocation173_spill] sm:$0xff] }
 0x695   : > { %v3067_v6 = vsel %vm1382_vm7, %v3035_v2, %v9125_v34 }
 0x696   : > { %v3099_v56 = vsel %vm1448_vm8, %v3067_v6, %v9126_v26 }
 0x697   : > { %2862 = vrot.lane.b32.xlu2 %v9121_v5, %s3883_s23  ;;  %2695 = vrot.lane.b32.xlu1 %v1928_v54, %s3882_s22  ;;  %v3131_v13 = vsel %vm1514_vm9, %v3099_v56, %v9127_v18  ;;  %v2835_v54 = vsel %vm504_vm1, %v2832_v16, %v2834_v36  ;;  %v9138_v18 = vld [vmem:[#allocation160_spill] sm:$0xff] }
 0x698   : > { %2795 = vrot.lane.b32.xlu0 %v2732_v11, %s3884_s24  ;;  %v3164_v49 = vsel %vm3156_vm14, %v3131_v13, %v7130_v51  ;;  %v9129_v51 = vld [vmem:[#allocation142_spill] sm:$0xff]  ;;  %v9133_v11 = vld [vmem:[#allocation17_spill] sm:$0xff] }
 0x699   : > { %v7796_v33 = vpop.permute.xlu2 %2852  ;;  %v2945_v23 = vpop.permute.xlu1 %2944  ;;  %v3197_v52 = vsel %vm3189_vm15, %v3164_v49, %v7250_v47  ;;  %v9139_v49 = vld [vmem:[#allocation147_spill] sm:$0xff] }
 0x69a   : > { %v2979_v57 = vpop.permute.xlu0 %2978  ;;  %v3295_v30 = vsel %vm3288_vm5, %v3262_v44, %v2945_v23  ;;  %v9136_v44 = vld [vmem:[#allocation76_spill] sm:$0xff] }
 0x69b   : > { %3715 = vmatmul.msk.f32.gmra.mxu1 %vm3335_vm6, %v3295_v30  ;;  %v3312_v19 = vsel %vm3288_vm5, %v3279_v24, %v2979_v57  ;;  %v9137_v24 = vld [vmem:[#allocation188_spill] sm:$0xff] }
 0x69c   : > { %3732 = vmatmul.msk.f32.gmra.mxu2 %vm3335_vm6, %v3312_v19 }
 0x69f   : > { %2958 = vrot.lane.b32.xlu2 %v9122_v39, %s3885_s25  ;;  %2797 = vrot.lane.b32.xlu1 %v2734_v50, %s3884_s24 }
 0x6a0   : > { %2896 = vrot.lane.b32.xlu0 %v2833_v59, %s3883_s23 }
 0x6a1   : > { %v2887_v31 = vpop.permute.xlu2 %2886  ;;  %v2750_v14 = vpop.permute.xlu1 %2749 }
 0x6a2   : > { %v2784_v48 = vpop.permute.xlu0 %2783  ;;  %v3230_v38 = vsel %vm3222_vm2, %v3197_v52, %v2750_v14 }
 0x6a3   : > { %v3247_v62 = vsel %vm3222_vm2, %v7351_v53, %v2784_v48  ;;  %v3263_v55 = vsel %vm3255_vm3, %v3230_v38, %v7762_v63  ;;  %v9130_v63 = vld [vmem:[#allocation88_spill] sm:$0xff]  ;;  %v3857_v48 = vld [vmem:[#allocation2 + $0x68] sm:$0xff] }
 0x6a4   : > { %v3280_v15 = vsel %vm3255_vm3, %v3247_v62, %v2885_v45  ;;  %v3036_v45 = vsel %vm1316_vm4, %v3856_v41, %v9132_v40  ;;  %v9140_v38 = vld [vmem:[#allocation194_spill] sm:$0xff] }
 0x6a5   : > { %v3068_v20 = vsel %vm1382_vm7, %v3036_v45, %v9134_v8 }
 0x6a6   : > { %v3100_v16 = vsel %vm1448_vm8, %v3068_v20, %v9135_v28 }
 0x6a7   : > { %2992 = vrot.lane.b32.xlu2 %v9128_v35, %s3885_s25  ;;  %2898 = vrot.lane.b32.xlu1 %v2835_v54, %s3883_s23  ;;  %v3132_v57 = vsel %vm1514_vm9, %v3100_v16, %v9136_v44  ;;  %v9145_v16 = vld [vmem:[#allocation168_spill] sm:$0xff] }
 0x6a8   : > { %2994 = vrot.lane.b32.xlu0 %v9129_v51, %s3885_s25  ;;  %v3497_v47 = vpop.f32.mrf.mxu2  ;;  %v3165_v19 = vsel %vm3156_vm14, %v3132_v57, %v9137_v24  ;;  %v9146_v57 = vld [vmem:[#allocation163_spill] sm:$0xff] }
 0x6a9   : > { %v3498_v10 = vadd.f32 %v7828_v7, %v3497_v47  ;;  %v7840_v43 = vpop.permute.xlu2 %2854  ;;  %v2947_v32 = vpop.permute.xlu1 %2946  ;;  %v3198_v50 = vsel %vm3189_vm15, %v3165_v19, %v7267_v61  ;;  %v9141_v47 = vld [vmem:[#allocation119_spill] sm:$0xff] }
 0x6aa   : > { %v2981_v53 = vpop.permute.xlu0 %2980  ;;  %v3296_v4 = vsel %vm3288_vm5, %v3263_v55, %v2947_v32  ;;  %v9142_v32 = vld [vmem:[#allocation125_spill] sm:$0xff] }
 0x6ab   : > { %v3563_v0 = vmax.f32 %v3498_v10, 0.0  ;;  %3716 = vmatmul.msk.f32.gmra.mxu1 %vm3335_vm6, %v3296_v4  ;;  %v3313_v42 = vsel %vm3288_vm5, %v3280_v15, %v2981_v53  ;;  %v9143_v53 = vld [vmem:[#allocation141_spill] sm:$0xff] }
 0x6ac   : > { %3733 = vmatmul.msk.f32.gmra.mxu2 %vm3335_vm6, %v3313_v42 }
 0x6ad   : > { %3595 = vst.msk [vmem:[%s7847_s6 + $0x78] sm:$0xff] %vm1316_vm4, %v3563_v0 }
 0x6af   : > { %2864 = vrot.lane.b32.xlu2 %v9130_v63, %s3883_s23  ;;  %2763 = vrot.lane.b32.xlu1 %v9131_v37, %s3884_s24 }
 0x6b0   : > { %v3500_v60 = vpop.f32.mrf.mxu2  ;;  %2960 = vrot.lane.b32.xlu0 %v9133_v11, %s3885_s25 }
 0x6b1   : > { %v3501_v1 = vadd.f32 %v7828_v7, %v3500_v60  ;;  %v2889_v5 = vpop.permute.xlu2 %2888  ;;  %v2752_v46 = vpop.permute.xlu1 %2751 }
 0x6b2   : > { %v2786_v23 = vpop.permute.xlu0 %2785  ;;  %v3231_v59 = vsel %vm3222_vm2, %v3198_v50, %v2752_v46  ;;  %v9144_v46 = vld [vmem:[#allocation41_spill] sm:$0xff]  ;;  %v9147_v50 = vld [vmem:[#allocation86_spill] sm:$0xff] }
 0x6b3   : > { %v3564_v30 = vmax.f32 %v3501_v1, 0.0  ;;  %v3248_v39 = vsel %vm3222_vm2, %v7474_v12, %v2786_v23  ;;  %v3264_v34 = vsel %vm3255_vm3, %v3231_v59, %v7796_v33  ;;  %v3037_v33 = vsel %vm1316_vm4, %v3857_v48, %v9138_v18  ;;  %v3858_v1 = vld [vmem:[#allocation2 + $0x78] sm:$0xff] }
 0x6b4   : > { %v3281_v61 = vsel %vm3255_vm3, %v3248_v39, %v2887_v31  ;;  %v3069_v31 = vsel %vm1382_vm7, %v3037_v33, %v9139_v49  ;;  %v9148_v39 = vld [vmem:[#allocation115_spill] sm:$0xff]  ;;  %v9149_v49 = vld [vmem:[#allocation62_spill] sm:$0xff] }
 0x6b5   : > { %3596 = vst.msk [vmem:[%s7847_s6 + $0x80] sm:$0xff] %vm1316_vm4, %v3564_v30  ;;  %v3101_v62 = vsel %vm1448_vm8, %v3069_v31, %v9140_v38 }
 0x6b6   : > { %v3133_v10 = vsel %vm1514_vm9, %v3101_v62, %v9141_v47 }
 0x6b7   : > { %v3166_v55 = vsel %vm3156_vm14, %v3133_v10, %v9142_v32  ;;  %v9152_v32 = vld [vmem:[#allocation152_spill] sm:$0xff] }
 0x6b8   : > { %v3452_v27 = vpop.f32.mrf.mxu1  ;;  %v3199_v4 = vsel %vm3189_vm15, %v3166_v55, %v9143_v53  ;;  %v9153_v53 = vld [vmem:[#allocation200_spill] sm:$0xff] }
 0x6b9   : > { %v3453_v9 = vadd.f32 %v7828_v7, %v3452_v27  ;;  %v2857_v2 = vpop.permute.xlu2 %2856  ;;  %v2949_v36 = vpop.permute.xlu1 %2948 }
 0x6ba   : > { %v2983_v6 = vpop.permute.xlu0 %2982  ;;  %v3297_v14 = vsel %vm3288_vm5, %v3264_v34, %v2949_v36 }
 0x6bb   : > { %v3548_v26 = vmax.f32 %v3453_v9, 0.0  ;;  %3717 = vmatmul.msk.f32.gmra.mxu1 %vm3335_vm6, %v3297_v14  ;;  %v3314_v56 = vsel %vm3288_vm5, %v3281_v61, %v2983_v6 }
 0x6bc   : > { %3734 = vmatmul.msk.f32.gmra.mxu2 %vm3335_vm6, %v3314_v56 }
 0x6bd   : > { %3580 = vst.msk [vmem:[%s7847_s6] sm:$0xff] %vm1316_vm4, %v3548_v26 }
 0x6bf   : > { %v3503_v12 = vpop.f32.mrf.mxu2 }
 0x6c0   : > { %v3504_v13 = vadd.f32 %v7828_v7, %v3503_v12 }
 0x6c1   : > { %v2891_v54 = vpop.permute.xlu2 %2890  ;;  %v2754_v52 = vpop.permute.xlu1 %2753 }
 0x6c2   : > { %v3565_v35 = vmax.f32 %v3504_v13, 0.0  ;;  %v2788_v51 = vpop.permute.xlu0 %2787  ;;  %v3232_v15 = vsel %vm3222_vm2, %v3199_v4, %v2754_v52  ;;  %v3859_v13 = vld [vmem:[#allocation2 + $0x80] sm:$0xff]  ;;  %v9150_v52 = vld [vmem:[#allocation35_spill] sm:$0xff] }
 0x6c3   : > { %v3249_v0 = vsel %vm3222_vm2, %v7505_v17, %v2788_v51  ;;  %v3265_v40 = vsel %vm3255_vm3, %v3232_v15, %v7840_v43  ;;  %v3038_v43 = vsel %vm1316_vm4, %v3858_v1, %v9144_v46  ;;  %v3860_v1 = vld [vmem:[#allocation2 + $0x90] sm:$0xff] }
 0x6c4   : > { %3597 = vst.msk [vmem:[%s7847_s6 + $0x88] sm:$0xff] %vm1316_vm4, %v3565_v35  ;;  %v3282_v11 = vsel %vm3255_vm3, %v3249_v0, %v2889_v5  ;;  %v3070_v5 = vsel %vm1382_vm7, %v3038_v43, %v9145_v16  ;;  %v9151_v35 = vld [vmem:[#allocation165_spill] sm:$0xff]  ;;  %v9155_v43 = vld [vmem:[#allocation176_spill] sm:$0xff] }
 0x6c5   : > { %v3102_v30 = vsel %vm1448_vm8, %v3070_v5, %v9146_v57  ;;  %v9157_v5 = vld [vmem:[#allocation166_spill] sm:$0xff] }
 0x6c6   : > { %v3134_v59 = vsel %vm1514_vm9, %v3102_v30, %v9147_v50  ;;  %v9158_v57 = vld [vmem:[#allocation34_spill] sm:$0xff] }
 0x6c7   : > { %v3167_v27 = vsel %vm3156_vm14, %v3134_v59, %v9148_v39 }
 0x6c8   : > { %v3455_v42 = vpop.f32.mrf.mxu1  ;;  %v3200_v9 = vsel %vm3189_vm15, %v3167_v27, %v7272_v22 }
 0x6c9   : > { %v3456_v63 = vadd.f32 %v7828_v7, %v3455_v42  ;;  %v2859_v37 = vpop.permute.xlu2 %2858  ;;  %v2951_v41 = vpop.permute.xlu1 %2950 }
 0x6ca   : > { %v2985_v45 = vpop.permute.xlu0 %2984  ;;  %v3298_v60 = vsel %vm3288_vm5, %v3265_v40, %v2951_v41 }
 0x6cb   : > { %v3549_v8 = vmax.f32 %v3456_v63, 0.0  ;;  %3718 = vmatmul.msk.f32.gmra.mxu1 %vm3335_vm6, %v3298_v60  ;;  %v3315_v20 = vsel %vm3288_vm5, %v3282_v11, %v2985_v45 }
 0x6cc   : > { %3735 = vmatmul.msk.f32.gmra.mxu2 %vm3335_vm6, %v3315_v20 }
 0x6cd   : > { %3581 = vst.msk [vmem:[%s7847_s6 + $0x8] sm:$0xff] %vm1316_vm4, %v3549_v8 }
 0x6cf   : > { %v3506_v17 = vpop.f32.mrf.mxu2 }
 0x6d0   : > { %v3507_v28 = vadd.f32 %v7828_v7, %v3506_v17 }
 0x6d1   : > { %v2893_v23 = vpop.permute.xlu2 %2892  ;;  %v2756_v44 = vpop.permute.xlu1 %2755 }
 0x6d2   : > { %v3566_v24 = vmax.f32 %v3507_v28, 0.0  ;;  %v2790_v19 = vpop.permute.xlu0 %2789  ;;  %v3233_v36 = vsel %vm3222_vm2, %v3200_v9, %v2756_v44  ;;  %v9156_v28 = vld [vmem:[#allocation47_spill] sm:$0xff] }
 0x6d3   : > { %v3250_v34 = vsel %vm3222_vm2, %v7399_v25, %v2790_v19  ;;  %v3266_v56 = vsel %vm3255_vm3, %v3233_v36, %v2857_v2  ;;  %v3039_v2 = vsel %vm1316_vm4, %v3859_v13, %v9149_v49  ;;  %v9159_v19 = vld [vmem:[#allocation66_spill] sm:$0xff]  ;;  %v9162_v13 = vld [vmem:[#allocation71_spill] sm:$0xff] }
 0x6d4   : > { %3598 = vst.msk [vmem:[%s7847_s6 + $0x90] sm:$0xff] %vm1316_vm4, %v3566_v24  ;;  %v3283_v18 = vsel %vm3255_vm3, %v3250_v34, %v2891_v54  ;;  %v3071_v54 = vsel %vm1382_vm7, %v3039_v2, %v9150_v52  ;;  %v9163_v52 = vld [vmem:[#allocation171_spill] sm:$0xff] }
 0x6d5   : > { %v3103_v51 = vsel %vm1448_vm8, %v3071_v54, %v9151_v35  ;;  %v9164_v35 = vld [vmem:[#allocation96_spill] sm:$0xff] }
 0x6d6   : > { %v3135_v55 = vsel %vm1514_vm9, %v3103_v51, %v9152_v32 }
 0x6d7   : > { %v3168_v4 = vsel %vm3156_vm14, %v3135_v55, %v9153_v53 }
 0x6d8   : > { %v3458_v6 = vpop.f32.mrf.mxu1  ;;  %v3201_v15 = vsel %vm3189_vm15, %v3168_v4, %v7299_v58 }
 0x6d9   : > { %v3459_v14 = vadd.f32 %v7828_v7, %v3458_v6  ;;  %v7937_v61 = vpop.permute.xlu2 %2691  ;;  %v2953_v26 = vpop.permute.xlu1 %2952 }
 0x6da   : > { %v2987_v12 = vpop.permute.xlu0 %2986  ;;  %v3299_v48 = vsel %vm3288_vm5, %v3266_v56, %v2953_v26  ;;  %v9160_v26 = vld [vmem:[#allocation162_spill] sm:$0xff] }
 0x6db   : > { %v3550_v33 = vmax.f32 %v3459_v14, 0.0  ;;  %3719 = vmatmul.msk.f32.gmra.mxu1 %vm3335_vm6, %v3299_v48  ;;  %v3316_v22 = vsel %vm3288_vm5, %v3283_v18, %v2987_v12  ;;  %v3861_v14 = vld [vmem:[#allocation2 + $0x158] sm:$0xff]  ;;  %v9161_v48 = vld [vmem:[#allocation79_spill] sm:$0xff] }
 0x6dc   : > { %3736 = vmatmul.msk.f32.gmra.mxu2 %vm3335_vm6, %v3316_v22  ;;  %v3057_v56 = vsel %vm1316_vm4, %v3861_v14, %v9160_v26  ;;  %v9173_v14 = vld [vmem:[#allocation42_spill] sm:$0xff] }
 0x6dd   : > { %3582 = vst.msk [vmem:[%s7847_s6 + $0x10] sm:$0xff] %vm1316_vm4, %v3550_v33  ;;  %v3089_v18 = vsel %vm1382_vm7, %v3057_v56, %v9161_v48  ;;  %v9174_v56 = vld [vmem:[#allocation159_spill] sm:$0xff] }
 0x6de   : > { %v3121_v49 = vsel %vm1448_vm8, %v3089_v18, %v9162_v13 }
 0x6df   : > { %v3509_v25 = vpop.f32.mrf.mxu2  ;;  %v3153_v54 = vsel %vm1514_vm9, %v3121_v49, %v9163_v52 }
 0x6e0   : > { %v3510_v31 = vadd.f32 %v7828_v7, %v3509_v25  ;;  %v3186_v51 = vsel %vm3156_vm14, %v3153_v54, %v9164_v35 }
 0x6e1   : > { %v2957_v38 = vpop.permute.xlu2 %2956  ;;  %v2758_v62 = vpop.permute.xlu1 %2757 }
 0x6e2   : > { %v3567_v47 = vmax.f32 %v3510_v31, 0.0  ;;  %v2792_v10 = vpop.permute.xlu0 %2791  ;;  %v3234_v0 = vsel %vm3222_vm2, %v3201_v15, %v2758_v62 }
 0x6e3   : > { %v3251_v42 = vsel %vm3222_vm2, %v7508_v3, %v2792_v10  ;;  %v3267_v60 = vsel %vm3255_vm3, %v3234_v0, %v2859_v37  ;;  %v9154_v3 = vld [vmem:[#allocation121_spill] sm:$0xff]  ;;  %v3219_v10 = vsel %vm3189_vm15, %v3186_v51, %v7937_v61 }
 0x6e4   : > { %3599 = vst.msk [vmem:[%s7847_s6 + $0x98] sm:$0xff] %vm1316_vm4, %v3567_v47  ;;  %v3284_v20 = vsel %vm3255_vm3, %v3251_v42, %v2893_v23  ;;  %v3040_v46 = vsel %vm1316_vm4, %v3860_v1, %v9154_v3  ;;  %v9168_v3 = vld [vmem:[#allocation198_spill] sm:$0xff] }
 0x6e5   : > { %v3072_v37 = vsel %vm1382_vm7, %v3040_v46, %v9155_v43 }
 0x6e6   : > { %v3104_v16 = vsel %vm1448_vm8, %v3072_v37, %v9156_v28  ;;  %v9169_v37 = vld [vmem:[#allocation48_spill] sm:$0xff] }
 0x6e7   : > { %v3136_v23 = vsel %vm1514_vm9, %v3104_v16, %v9157_v5 }
 0x6e8   : > { %v3461_v63 = vpop.f32.mrf.mxu1  ;;  %v3169_v30 = vsel %vm3156_vm14, %v3136_v23, %v9158_v57 }
 0x6e9   : > { %v3462_v41 = vadd.f32 %v7828_v7, %v3461_v63  ;;  %v2762_v40 = vpop.permute.xlu2 %2761  ;;  %v2955_v45 = vpop.permute.xlu1 %2954  ;;  %v3202_v50 = vsel %vm3189_vm15, %v3169_v30, %v9159_v19  ;;  %v9170_v19 = vld [vmem:[#allocation67_spill] sm:$0xff] }
 0x6ea   : > { %v2989_v11 = vpop.permute.xlu0 %2988  ;;  %v3300_v8 = vsel %vm3288_vm5, %v3267_v60, %v2955_v45  ;;  %v3236_v2 = vsel %vm3222_vm2, %v7307_v29, %v2762_v40  ;;  %v3862_v60 = vld [vmem:[#allocation2 + $0x168] sm:$0xff] }
 0x6eb   : > { %v3551_v17 = vmax.f32 %v3462_v41, 0.0  ;;  %3720 = vmatmul.msk.f32.gmra.mxu1 %vm3335_vm6, %v3300_v8  ;;  %v3317_v58 = vsel %vm3288_vm5, %v3284_v20, %v2989_v11  ;;  %v9165_v11 = vld [vmem:[#allocation182_spill] sm:$0xff]  ;;  %v9166_v20 = vld [vmem:[#allocation185_spill] sm:$0xff] }
 0x6ec   : > { %3737 = vmatmul.msk.f32.gmra.mxu2 %vm3335_vm6, %v3317_v58  ;;  %v3058_v8 = vsel %vm1316_vm4, %v3862_v60, %v9165_v11  ;;  %v9167_v58 = vld [vmem:[#allocation106_spill] sm:$0xff] }
 0x6ed   : > { %3583 = vst.msk [vmem:[%s7847_s6 + $0x18] sm:$0xff] %vm1316_vm4, %v3551_v17  ;;  %v3090_v17 = vsel %vm1382_vm7, %v3058_v8, %v9166_v20 }
 0x6ee   : > { %v3122_v1 = vsel %vm1448_vm8, %v3090_v17, %v9167_v58 }
 0x6ef   : > { %v3512_v44 = vpop.f32.mrf.mxu2  ;;  %v3154_v46 = vsel %vm1514_vm9, %v3122_v1, %v9168_v3 }
 0x6f0   : > { %v3513_v24 = vadd.f32 %v7828_v7, %v3512_v44  ;;  %v3187_v28 = vsel %vm3156_vm14, %v3154_v46, %v9169_v37 }
 0x6f1   : > { %v2863_v59 = vpop.permute.xlu2 %2862  ;;  %v2760_v39 = vpop.permute.xlu1 %2759 }
 0x6f2   : > { %v3568_v27 = vmax.f32 %v3513_v24, 0.0  ;;  %v3235_v9 = vsel %vm3222_vm2, %v3202_v50, %v2760_v39  ;;  %v2861_v36 = vpop.permute.xlu0 %2860  ;;  %v3863_v24 = vld [vmem:[#allocation2 + $0x170] sm:$0xff] }
 0x6f3   : > { %v3268_v34 = vsel %vm3255_vm3, %v3235_v9, %v2861_v36  ;;  %v3059_v50 = vsel %vm1316_vm4, %v3863_v24, %v9170_v19 }
 0x6f4   : > { %3600 = vst.msk [vmem:[%s7847_s6 + $0xa0] sm:$0xff] %vm1316_vm4, %v3568_v27  ;;  %v3301_v6 = vsel %vm3288_vm5, %v3268_v34, %v2957_v38  ;;  %v3269_v38 = vsel %vm3255_vm3, %v3236_v2, %v2863_v59  ;;  %v9171_v27 = vld [vmem:[#allocation196_spill] sm:$0xff]  ;;  %v9172_v34 = vld [vmem:[#allocation155_spill] sm:$0xff] }
 0x6f5   : > { %3721 = vmatmul.msk.f32.gmra.mxu1 %vm3335_vm6, %v3301_v6  ;;  %v3091_v9 = vsel %vm1382_vm7, %v3059_v50, %v9171_v27 }
 0x6f6   : > { %v3123_v6 = vsel %vm1448_vm8, %v3091_v9, %v9172_v34 }
 0x6f7   : > { %v3155_v26 = vsel %vm1514_vm9, %v3123_v6, %v9173_v14 }
 0x6f8   : > { %v3464_v12 = vpop.f32.mrf.mxu1 }
 0x6f9   : > { %v3465_v33 = vadd.f32 %v7828_v7, %v3464_v12  ;;  %v2959_v22 = vpop.permute.xlu2 %2958  ;;  %v2794_v25 = vpop.permute.xlu1 %2793  ;;  %v3188_v12 = vsel %vm3156_vm14, %v3155_v26, %v9174_v56 }
 0x6fa   : > { %v2895_v31 = vpop.permute.xlu0 %2894  ;;  %v3302_v47 = vsel %vm3288_vm5, %v3269_v38, %v2959_v22  ;;  %v3252_v29 = vsel %vm3222_vm2, %v3219_v10, %v2794_v25 }
 0x6fb   : > { %v3552_v62 = vmax.f32 %v3465_v33, 0.0  ;;  %v3285_v53 = vsel %vm3255_vm3, %v3252_v29, %v2895_v31 }
 0x6fd   : > { %3584 = vst.msk [vmem:[%s7847_s6 + $0x20] sm:$0xff] %vm1316_vm4, %v3552_v62  ;;  %3722 = vmatmul.msk.f32.gmra.mxu1 %vm3335_vm6, %v3302_v47 }
 0x6ff   : > { %v3515_v32 = vpop.f32.mrf.mxu2 }
 0x700   : > { %v3516_v55 = vadd.f32 %v7828_v7, %v3515_v32 }
 0x701   : > { %v2991_v4 = vpop.permute.xlu1 %2990  ;;  %v2993_v59 = vpop.permute.xlu2 %2992 }
 0x702   : > { %v3569_v15 = vmax.f32 %v3516_v55, 0.0  ;;  %v2694_v0 = vpop.permute.xlu0 %2693  ;;  %v3318_v42 = vsel %vm3288_vm5, %v3285_v53, %v2991_v4 }
 0x703   : > { %3738 = vmatmul.msk.f32.gmra.mxu2 %vm3335_vm6, %v3318_v42  ;;  %v3220_v5 = vsel %vm3189_vm15, %v3187_v28, %v2694_v0 }
 0x704   : > { %3601 = vst.msk [vmem:[%s7847_s6 + $0xa8] sm:$0xff] %vm1316_vm4, %v3569_v15 }
 0x708   : > { %v3467_v61 = vpop.f32.mrf.mxu1 }
 0x709   : > { %v3468_v63 = vadd.f32 %v7828_v7, %v3467_v61  ;;  %v2696_v41 = vpop.permute.xlu1 %2695  ;;  %v2865_v62 = vpop.permute.xlu2 %2864 }
 0x70a   : > { %v2796_v40 = vpop.permute.xlu0 %2795  ;;  %v3221_v48 = vsel %vm3189_vm15, %v3188_v12, %v2696_v41 }
 0x70b   : > { %v3553_v45 = vmax.f32 %v3468_v63, 0.0  ;;  %v3253_v44 = vsel %vm3222_vm2, %v3220_v5, %v2796_v40 }
 0x70d   : > { %3585 = vst.msk [vmem:[%s7847_s6 + $0x28] sm:$0xff] %vm1316_vm4, %v3553_v45 }
 0x70f   : > { %v3518_v43 = vpop.f32.mrf.mxu2 }
 0x710   : > { %v3519_v16 = vadd.f32 %v7828_v7, %v3518_v43 }
 0x711   : > { %v2798_v23 = vpop.permute.xlu1 %2797 }
 0x712   : > { %v3570_v57 = vmax.f32 %v3519_v16, 0.0  ;;  %v2897_v30 = vpop.permute.xlu0 %2896  ;;  %v3254_v33 = vsel %vm3222_vm2, %v3221_v48, %v2798_v23 }
 0x713   : > { %v3286_v39 = vsel %vm3255_vm3, %v3253_v44, %v2897_v30 }
 0x714   : > { %3602 = vst.msk [vmem:[%s7847_s6 + $0xb0] sm:$0xff] %vm1316_vm4, %v3570_v57  ;;  %v3319_v36 = vsel %vm3288_vm5, %v3286_v39, %v2993_v59 }
 0x715   : > { %3739 = vmatmul.msk.f32.gmra.mxu2 %vm3335_vm6, %v3319_v36 }
 0x718   : > { %v3470_v18 = vpop.f32.mrf.mxu1 }
 0x719   : > { %v3471_v22 = vadd.f32 %v7828_v7, %v3470_v18  ;;  %v2899_v25 = vpop.permute.xlu1 %2898 }
 0x71a   : > { %v3287_v13 = vsel %vm3255_vm3, %v3254_v33, %v2899_v25  ;;  %v2995_v49 = vpop.permute.xlu0 %2994 }
 0x71b   : > { %v3554_v2 = vmax.f32 %v3471_v22, 0.0  ;;  %v3320_v31 = vsel %vm3288_vm5, %v3287_v13, %v2995_v49 }
 0x71c   : > { %3740 = vmatmul.msk.f32.vlgmr.msrb.gmra.mxu3 %vm3335_vm6, %v3320_v31 }
 0x71d   : > { %3586 = vst.msk [vmem:[%s7847_s6 + $0x30] sm:$0xff] %vm1316_vm4, %v3554_v2 }
 0x71f   : > { %v3521_v52 = vpop.f32.mrf.mxu2 }
 0x720   : > { %v3522_v54 = vadd.f32 %v7828_v7, %v3521_v52 }
 0x721   : > { %v2764_v38 = vpop.permute.xlu1 %2763 }
 0x722   : > { %v3571_v35 = vmax.f32 %v3522_v54, 0.0  ;;  %v3237_v51 = vsel %vm3222_vm2, %v7354_v21, %v2764_v38  ;;  %v2961_v47 = vpop.permute.xlu0 %2960 }
 0x723   : > { %v3270_v10 = vsel %vm3255_vm3, %v3237_v51, %v2865_v62 }
 0x724   : > { %3603 = vst.msk [vmem:[%s7847_s6 + $0xb8] sm:$0xff] %vm1316_vm4, %v3571_v35  ;;  %v3303_v29 = vsel %vm3288_vm5, %v3270_v10, %v2961_v47 }
 0x725   : > { %3723 = vmatmul.msk.f32.gmra.mxu1 %vm3335_vm6, %v3303_v29 }
 0x728   : > { %v3473_v32 = vpop.f32.mrf.mxu1 }
 0x729   : > { %v3474_v55 = vadd.f32 %v7828_v7, %v3473_v32 }
 0x72b   : > { %v3555_v53 = vmax.f32 %v3474_v55, 0.0 }
 0x72d   : > { %3587 = vst.msk [vmem:[%s7847_s6 + $0x38] sm:$0xff] %vm1316_vm4, %v3555_v53 }
 0x72f   : > { %v3524_v4 = vpop.f32.mrf.mxu2 }
 0x730   : > { %v3525_v21 = vadd.f32 %v7828_v7, %v3524_v4 }
 0x732   : > { %v3572_v15 = vmax.f32 %v3525_v21, 0.0 }
 0x734   : > { %3604 = vst.msk [vmem:[%s7847_s6 + $0xc0] sm:$0xff] %vm1316_vm4, %v3572_v15 }
 0x738   : > { %v3476_v0 = vpop.f32.mrf.mxu1 }
 0x739   : > { %v3477_v42 = vadd.f32 %v7828_v7, %v3476_v0 }
 0x73b   : > { %v3556_v61 = vmax.f32 %v3477_v42, 0.0 }
 0x73d   : > { %3588 = vst.msk [vmem:[%s7847_s6 + $0x40] sm:$0xff] %vm1316_vm4, %v3556_v61 }
 0x73f   : > { %v3527_v63 = vpop.f32.mrf.mxu2 }
 0x740   : > { %v3528_v41 = vadd.f32 %v7828_v7, %v3527_v63 }
 0x742   : > { %v3573_v40 = vmax.f32 %v3528_v41, 0.0 }
 0x744   : > { %3605 = vst.msk [vmem:[%s7847_s6 + $0xc8] sm:$0xff] %vm1316_vm4, %v3573_v40 }
 0x748   : > { %v3479_v45 = vpop.f32.mrf.mxu1 }
 0x749   : > { %v3480_v60 = vadd.f32 %v7828_v7, %v3479_v45 }
 0x74b   : > { %v3557_v11 = vmax.f32 %v3480_v60, 0.0 }
 0x74d   : > { %3589 = vst.msk [vmem:[%s7847_s6 + $0x48] sm:$0xff] %vm1316_vm4, %v3557_v11 }
 0x74f   : > { %v3530_v8 = vpop.f32.mrf.mxu2 }
 0x750   : > { %v3531_v20 = vadd.f32 %v7828_v7, %v3530_v8 }
 0x752   : > { %v3574_v17 = vmax.f32 %v3531_v20, 0.0 }
 0x754   : > { %3606 = vst.msk [vmem:[%s7847_s6 + $0xd0] sm:$0xff] %vm1316_vm4, %v3574_v17 }
 0x758   : > { %v3482_v58 = vpop.f32.mrf.mxu1 }
 0x759   : > { %v3483_v1 = vadd.f32 %v7828_v7, %v3482_v58 }
 0x75b   : > { %v3558_v3 = vmax.f32 %v3483_v1, 0.0 }
 0x75d   : > { %3590 = vst.msk [vmem:[%s7847_s6 + $0x50] sm:$0xff] %vm1316_vm4, %v3558_v3 }
 0x75f   : > { %v3533_v46 = vpop.f32.mrf.mxu2 }
 0x760   : > { %v3534_v43 = vadd.f32 %v7828_v7, %v3533_v46 }
 0x762   : > { %v3575_v37 = vmax.f32 %v3534_v43, 0.0 }
 0x764   : > { %3607 = vst.msk [vmem:[%s7847_s6 + $0xd8] sm:$0xff] %vm1316_vm4, %v3575_v37 }
 0x768   : > { %v3485_v28 = vpop.f32.mrf.mxu1 }
 0x769   : > { %v3486_v16 = vadd.f32 %v7828_v7, %v3485_v28 }
 0x76b   : > { %v3559_v5 = vmax.f32 %v3486_v16, 0.0 }
 0x76d   : > { %3591 = vst.msk [vmem:[%s7847_s6 + $0x58] sm:$0xff] %vm1316_vm4, %v3559_v5 }
 0x76f   : > { %v3536_v23 = vpop.f32.mrf.mxu2 }
 0x770   : > { %v3537_v44 = vadd.f32 %v7828_v7, %v3536_v23 }
 0x772   : > { %v3576_v57 = vmax.f32 %v3537_v44, 0.0  ;;  %v3488_v30 = vpop.f32.mrf.mxu1 }
 0x773   : > { %v3489_v24 = vadd.f32 %v7828_v7, %v3488_v30 }
 0x774   : > { %3608 = vst.msk [vmem:[%s7847_s6 + $0xe0] sm:$0xff] %vm1316_vm4, %v3576_v57 }
 0x775   : > { %v3560_v19 = vmax.f32 %v3489_v24, 0.0 }
 0x777   : > { %3592 = vst.msk [vmem:[%s7847_s6 + $0x60] sm:$0xff] %vm1316_vm4, %v3560_v19 }
 0x77a   : > { %v3491_v50 = vpop.f32.mrf.mxu1 }
 0x77b   : > { %v3492_v59 = vadd.f32 %v7828_v7, %v3491_v50 }
 0x77d   : > { %v3561_v39 = vmax.f32 %v3492_v59, 0.0 }
 0x77f   : > { %3593 = vst.msk [vmem:[%s7847_s6 + $0x68] sm:$0xff] %vm1316_vm4, %v3561_v39 }
 0x786   : > { %v3539_v27 = vpop.f32.mrf.mxu2 }
 0x787   : > { %v3540_v9 = vadd.f32 %v7828_v7, %v3539_v27 }
 0x789   : > { %v3577_v36 = vmax.f32 %v3540_v9, 0.0 }
 0x78b   : > { %3609 = vst.msk [vmem:[%s7847_s6 + $0xe8] sm:$0xff] %vm1316_vm4, %v3577_v36 }
 0x798   : > { %v3542_v34 = vpop.f32.mrf.mxu2 }
 0x799   : > { %v3543_v6 = vadd.f32 %v7828_v7, %v3542_v34 }
 0x79b   : > { %v3578_v14 = vmax.f32 %v3543_v6, 0.0 }
 0x79d   : > { %3610 = vst.msk [vmem:[%s7847_s6 + $0xf0] sm:$0xff] %vm1316_vm4, %v3578_v14 }
 0x79f   : > { %v3545_v26 = vpop.f32.mrf.mxu3 }
 0x7a0   : > { %v3546_v56 = vadd.f32 %v7828_v7, %v3545_v26 }
 0x7a2   : > { %v3579_v12 = vmax.f32 %v3546_v56, 0.0  ;;  %v3494_v48 = vpop.f32.mrf.mxu1 }
 0x7a3   : > { %v3495_v18 = vadd.f32 %v7828_v7, %v3494_v48 }
 0x7a4   : > { %3611 = vst.msk [vmem:[%s7847_s6 + $0xf8] sm:$0xff] %vm1316_vm4, %v3579_v12 }
 0x7a5   : > { %v3562_v33 = vmax.f32 %v3495_v18, 0.0 }
 0x7a7   : > { %3594 = vst.msk [vmem:[%s7847_s6 + $0x70] sm:$0xff] %vm1316_vm4, %v3562_v33 }
 0x7a8 PF: > { %s15_s18 = sadd.s32 1, %s3870_s18  }
 0x7a9   : > { %p12_p4 = scmp.ge.s32.totalorder %s15_s18, 4  }
 0x7ab   :  { %14 = sbr.rel (!%p12_p4) target bundleno = 1 (0x1), region = 72 }

</bundles_post_ra>
